<compile_context>
chip_gen: v7x
topology: tpu7x:2x2x1
jax: 0.10.0
libtpu: 0.0.40
codegen_flags: <defaults>
</compile_context>

<pallas_src>
import jax
import jax.numpy as jnp
from jax.experimental import pallas as pl
from jax.experimental.pallas import tpu as pltpu


FEATURE_NUM = 512   # module hard-codes 512 in view()/LayerNorm
LN_EPS = 1e-5

# Rows of St processed per grid step.  256 matches the 2x256^2 MXU on
# v6e/v7x and keeps the f32 working set well under the 48 MiB scoped-VMEM
# cap below (safe on v7x's 64 MiB physical VMEM).  On v5e (4x128^2 MXU,
# 128 MiB VMEM) 128-512 also works; tune if needed.
DEFAULT_TB = 256


def _nlblock_kernel(st_ref, lt_ref,
                    w1_ref, b1_ref,        # linear1, pre-scaled by (1/F)**0.5
                    w23_ref, b23_ref,      # fused linear2 || linear3
                    w4_ref, b4_ref,        # linear4
                    gamma_ref, beta_ref,   # LayerNorm affine
                    out_ref):
    tb, l, f = lt_ref.shape

    st = st_ref[...]                             # (TB, F) f32
    lt2d = lt_ref[...].reshape(tb * l, f)        # (TB*L, F)

    # linear1 (weights/bias pre-scaled by the attention scale) -> (TB, F)
    st1 = jnp.dot(st, w1_ref[...], preferred_element_type=jnp.float32) + b1_ref[...]

    # fused linear2 || linear3: a single (TB*L, F) @ (F, 2F) MXU matmul
    lt_fused = (jnp.dot(lt2d, w23_ref[...], preferred_element_type=jnp.float32)
                + b23_ref[...])
    lt1 = lt_fused[:, :f].reshape(tb, l, f)      # linear2(Lt)
    lt2 = lt_fused[:, f:].reshape(tb, l, f)      # linear3(Lt)

    # attention scores: per-row feature contraction on VPU + lane reduce
    # (XLU), keeping the MXU free.  Scale already folded into W1.
    scores = jnp.sum(st1[:, None, :] * lt1, axis=-1)             # (TB, L)
    scores = scores - jnp.max(scores, axis=-1, keepdims=True)
    p = jnp.exp(scores)
    p = p * pl.reciprocal(jnp.sum(p, axis=-1, keepdims=True), approx=False)

    # SLL = softmax-weighted sum over L (sublane reduce) -> (TB, F)
    sll = jnp.sum(p[:, :, None] * lt2, axis=1)

    # LayerNorm over the F features (torch normalized_shape=[1, 512]; the
    # size-1 dim contributes nothing)
    mean = jnp.mean(sll, axis=-1, keepdims=True)
    var = jnp.mean((sll - mean) ** 2, axis=-1, keepdims=True)
    sll = (sll - mean) * jax.lax.rsqrt(var + LN_EPS)
    sll = sll * gamma_ref[...] + beta_ref[...]

    # ReLU
    sll = jnp.maximum(sll, 0.0)

    # linear4: (TB, F) @ (F, F)
    sll = jnp.dot(sll, w4_ref[...], preferred_element_type=jnp.float32) + b4_ref[...]

    # dropout(p=0.2): identity in eval mode.  Residual add.
    out_ref[...] = (st + sll).astype(out_ref.dtype)


def nlblock_forward(St, Lt, params, *, tb=DEFAULT_TB):
    """St: (B, F) float32;  Lt: (B, L, F) float32."""
    B, F = St.shape
    _, L, F2 = Lt.shape
    assert F == FEATURE_NUM and F2 == F

    (w1, b1, w2, b2, w3, b3, w4, b4, gamma, beta) = params

    # Fold the 1/sqrt(F) attention scale into linear1 (st1 only feeds scores).
    scale = (1.0 / F) ** 0.5
    w1s = w1 * scale
    b1s = b1 * scale
    # Fuse linear2 || linear3 into one wide weight -> one MXU matmul per step.
    w23 = jnp.concatenate([w2, w3], axis=1)      # (F, 2F)
    b23 = jnp.concatenate([b2, b3], axis=1)      # (1, 2F)

    tb = int(max(1, min(tb, B)))
    num_blocks = pl.cdiv(B, tb)
    B_pad = num_blocks * tb
    if B_pad != B:
        St_in = jnp.pad(St, ((0, B_pad - B), (0, 0)))
        Lt_in = jnp.pad(Lt, ((0, B_pad - B), (0, 0), (0, 0)))
    else:
        St_in, Lt_in = St, Lt

    const2d = lambda b: (0, 0)   # grid-invariant weights: no re-DMA per step

    out = pl.pallas_call(
        _nlblock_kernel,
        out_shape=jax.ShapeDtypeStruct((B_pad, F), St.dtype),
        grid_spec=pltpu.PrefetchScalarGridSpec(
            num_scalar_prefetch=0,
            grid=(num_blocks,),
            in_specs=[
                pl.BlockSpec((tb, F), lambda b: (b, 0)),           # St
                pl.BlockSpec((tb, L, F), lambda b: (b, 0, 0)),     # Lt
                pl.BlockSpec((F, F), const2d),                     # W1 (scaled)
                pl.BlockSpec((1, F), const2d),                     # b1 (scaled)
                pl.BlockSpec((F, 2 * F), const2d),                 # W2||W3
                pl.BlockSpec((1, 2 * F), const2d),                 # b2||b3
                pl.BlockSpec((F, F), const2d),                     # W4
                pl.BlockSpec((1, F), const2d),                     # b4
                pl.BlockSpec((1, F), const2d),                     # gamma
                pl.BlockSpec((1, F), const2d),                     # beta
            ],
            out_specs=pl.BlockSpec((tb, F), lambda b: (b, 0)),
        ),
        compiler_params=pltpu.CompilerParams(
            dimension_semantics=("parallel",),
            vmem_limit_bytes=48 << 20,   # < v7x's 64 MiB physical; ample on v5e/v6e
        ),
    )(St_in, Lt_in, w1s, b1s, w23, b23, w4, b4, gamma, beta)

    return out[:B] if B_pad != B else out


def init_params(key, feature_num=FEATURE_NUM):
    """Deterministic init matching the PyTorch module's __init__ distributions.

    Linear weights: xavier_uniform_  -> U(-a, a), a = sqrt(6/(fan_in+fan_out))
    Linear biases : torch default    -> U(-1/sqrt(fan_in), 1/sqrt(fan_in))
    LayerNorm     : weight=1, bias=0
    Weights are returned pre-transposed so the kernel computes x @ W.
    """
    F = feature_num
    xav = (6.0 / (F + F)) ** 0.5
    bbnd = 1.0 / (F ** 0.5)
    keys = jax.random.split(key, 8)
    params = []
    for i in range(4):
        w = jax.random.uniform(keys[2 * i], (F, F), jnp.float32, -xav, xav)
        b = jax.random.uniform(keys[2 * i + 1], (1, F), jnp.float32, -bbnd, bbnd)
        params.append(w.T)   # pre-transpose: kernel computes x @ w.T_torch
        params.append(b)
    gamma = jnp.ones((1, F), jnp.float32)
    beta = jnp.zeros((1, F), jnp.float32)
    params.extend([gamma, beta])
    return tuple(params)


def nlblock_reference(St, Lt, params):
    """Pure-JAX reference for numerical checking (mirrors the torch forward)."""
    (w1, b1, w2, b2, w3, b3, w4, b4, gamma, beta) = params
    F = St.shape[-1]
    St_1 = St[:, None, :] @ w1 + b1                       # (B,1,F)
    Lt_1 = Lt @ w2 + b2                                   # (B,L,F)
    SL = jnp.einsum("bqf,blf->bql", St_1, Lt_1) * (1.0 / F) ** 0.5
    SL = jax.nn.softmax(SL, axis=2)                       # (B,1,L)
    Lt_2 = Lt @ w3 + b3                                   # (B,L,F)
    SLL = jnp.einsum("bql,blf->bqf", SL, Lt_2)            # (B,1,F)
    mean = jnp.mean(SLL, axis=(-2, -1), keepdims=True)
    var = jnp.mean((SLL - mean) ** 2, axis=(-2, -1), keepdims=True)
    SLL = (SLL - mean) / jnp.sqrt(var + LN_EPS) * gamma + beta
    SLL = jax.nn.relu(SLL)
    SLL = SLL @ w4 + b4
    # dropout is identity in eval mode
    return St + SLL[:, 0, :]


if __name__ == "__main__":
    key = jax.random.PRNGKey(0)
    k_st, k_lt, k_p = jax.random.split(key, 3)

    B, L, F = 4, 8, FEATURE_NUM
    St = jax.random.normal(k_st, (B, F), jnp.float32)
    Lt = jax.random.normal(k_lt, (B, L, F), jnp.float32)
    params = init_params(k_p, F)

    ref = nlblock_reference(St, Lt, params)

    # 1) default batching (tb clamps to B -> single grid step)
    out = jax.block_until_ready(nlblock_forward(St, Lt, params))
    assert out.shape == (B, F)
    assert jnp.allclose(out, ref, atol=1e-4, rtol=1e-4), \
        f"max abs err {jnp.max(jnp.abs(out - ref))}"

    # 2) multi-step grid (weights stay resident across steps)
    out2 = jax.block_until_ready(nlblock_forward(St, Lt, params, tb=2))
    assert jnp.allclose(out2, ref, atol=1e-4, rtol=1e-4), \
        f"max abs err {jnp.max(jnp.abs(out2 - ref))}"

    # 3) batch not divisible by tb (exercises the padding path)
    out3 = jax.block_until_ready(nlblock_forward(St[:3], Lt[:3], params, tb=2))
    assert jnp.allclose(out3, ref[:3], atol=1e-4, rtol=1e-4), \
        f"max abs err {jnp.max(jnp.abs(out3 - ref[:3]))}"

    print("KERNEL_OK")
</pallas_src>

<mosaic_0001>
module attributes {stable_mosaic.version = 11 : i64} {
  func.func @_nlblock_kernel(%arg0: i32, %arg1: memref<4x512xf32, #tpu.memory_space<vmem>>, %arg2: memref<4x8x512xf32, #tpu.memory_space<vmem>>, %arg3: memref<512x512xf32, #tpu.memory_space<vmem>>, %arg4: memref<1x512xf32, #tpu.memory_space<vmem>>, %arg5: memref<512x1024xf32, #tpu.memory_space<vmem>>, %arg6: memref<1x1024xf32, #tpu.memory_space<vmem>>, %arg7: memref<512x512xf32, #tpu.memory_space<vmem>>, %arg8: memref<1x512xf32, #tpu.memory_space<vmem>>, %arg9: memref<1x512xf32, #tpu.memory_space<vmem>>, %arg10: memref<1x512xf32, #tpu.memory_space<vmem>>, %arg11: memref<4x512xf32, #tpu.memory_space<vmem>>) attributes {dimension_semantics = [#tpu.dimension_semantics<parallel>], iteration_bounds = array<i64: 1>, scalar_prefetch = 0 : i64, scratch_operands = 0 : i64, tpu.core_type = #tpu.core_type<tc>, window_params = [{transform_indices = @transform_0, window_bounds = array<i64: 4, 512>}, {transform_indices = @transform_1, window_bounds = array<i64: 4, 8, 512>}, {pipeline_mode = #tpu.pipeline_mode<synchronous>, transform_indices = @transform_2, window_bounds = array<i64: 512, 512>}, {pipeline_mode = #tpu.pipeline_mode<synchronous>, transform_indices = @transform_3, window_bounds = array<i64: 1, 512>}, {pipeline_mode = #tpu.pipeline_mode<synchronous>, transform_indices = @transform_4, window_bounds = array<i64: 512, 1024>}, {pipeline_mode = #tpu.pipeline_mode<synchronous>, transform_indices = @transform_5, window_bounds = array<i64: 1, 1024>}, {pipeline_mode = #tpu.pipeline_mode<synchronous>, transform_indices = @transform_6, window_bounds = array<i64: 512, 512>}, {pipeline_mode = #tpu.pipeline_mode<synchronous>, transform_indices = @transform_7, window_bounds = array<i64: 1, 512>}, {pipeline_mode = #tpu.pipeline_mode<synchronous>, transform_indices = @transform_8, window_bounds = array<i64: 1, 512>}, {pipeline_mode = #tpu.pipeline_mode<synchronous>, transform_indices = @transform_9, window_bounds = array<i64: 1, 512>}, {transform_indices = @transform_10, window_bounds = array<i64: 4, 512>}]} {
    %c0 = arith.constant 0 : index
    %c0_0 = arith.constant 0 : index
    %0 = vector.load %arg1[%c0, %c0_0] : memref<4x512xf32, #tpu.memory_space<vmem>>, vector<4x512xf32>
    %c0_1 = arith.constant 0 : index
    %c0_2 = arith.constant 0 : index
    %c0_3 = arith.constant 0 : index
    %1 = vector.load %arg2[%c0_1, %c0_2, %c0_3] : memref<4x8x512xf32, #tpu.memory_space<vmem>>, vector<4x8x512xf32>
    %2 = vector.shape_cast %1 : vector<4x8x512xf32> to vector<32x512xf32>
    %c0_4 = arith.constant 0 : index
    %c0_5 = arith.constant 0 : index
    %3 = vector.load %arg3[%c0_4, %c0_5] : memref<512x512xf32, #tpu.memory_space<vmem>>, vector<512x512xf32>
    %cst = arith.constant dense<0.000000e+00> : vector<4x512xf32>
    %4 = tpu.matmul %0, %3, %cst {dimension_numbers = #tpu.dot_dimension_numbers<[1], [0], [0], [1], [0, 0, 1, 1], [], []>} : vector<4x512xf32>, vector<512x512xf32>, vector<4x512xf32> -> vector<4x512xf32>
    %c0_6 = arith.constant 0 : index
    %c0_7 = arith.constant 0 : index
    %5 = vector.load %arg4[%c0_6, %c0_7] : memref<1x512xf32, #tpu.memory_space<vmem>>, vector<1x512xf32>
    %6 = vector.broadcast %5 : vector<1x512xf32> to vector<4x512xf32>
    %7 = arith.addf %4, %6 : vector<4x512xf32>
    %c0_8 = arith.constant 0 : index
    %c0_9 = arith.constant 0 : index
    %8 = vector.load %arg5[%c0_8, %c0_9] : memref<512x1024xf32, #tpu.memory_space<vmem>>, vector<512x1024xf32>
    %cst_10 = arith.constant dense<0.000000e+00> : vector<32x1024xf32>
    %9 = tpu.matmul %2, %8, %cst_10 {dimension_numbers = #tpu.dot_dimension_numbers<[1], [0], [0], [1], [0, 0, 1, 1], [], []>} : vector<32x512xf32>, vector<512x1024xf32>, vector<32x1024xf32> -> vector<32x1024xf32>
    %c0_11 = arith.constant 0 : index
    %c0_12 = arith.constant 0 : index
    %10 = vector.load %arg6[%c0_11, %c0_12] : memref<1x1024xf32, #tpu.memory_space<vmem>>, vector<1x1024xf32>
    %11 = vector.broadcast %10 : vector<1x1024xf32> to vector<32x1024xf32>
    %12 = arith.addf %9, %11 : vector<32x1024xf32>
    %13 = vector.extract_strided_slice %12 {offsets = [0, 0], sizes = [32, 512], strides = [1, 1]} : vector<32x1024xf32> to vector<32x512xf32>
    %14 = vector.shape_cast %13 : vector<32x512xf32> to vector<4x8x512xf32>
    %15 = vector.extract_strided_slice %12 {offsets = [0, 512], sizes = [32, 512], strides = [1, 1]} : vector<32x1024xf32> to vector<32x512xf32>
    %16 = vector.shape_cast %15 : vector<32x512xf32> to vector<4x8x512xf32>
    %17 = vector.shape_cast %7 : vector<4x512xf32> to vector<4x1x512xf32>
    %18 = vector.broadcast %17 : vector<4x1x512xf32> to vector<4x8x512xf32>
    %19 = arith.mulf %18, %14 : vector<4x8x512xf32>
    %cst_13 = arith.constant dense<0.000000e+00> : vector<4x8xf32>
    %20 = vector.multi_reduction <add>, %19, %cst_13 [2] : vector<4x8x512xf32> to vector<4x8xf32>
    %cst_14 = arith.constant dense<0xFF800000> : vector<4xf32>
    %21 = vector.multi_reduction <maximumf>, %20, %cst_14 [1] : vector<4x8xf32> to vector<4xf32>
    %22 = vector.shape_cast %21 : vector<4xf32> to vector<4x1xf32>
    %23 = vector.broadcast %22 : vector<4x1xf32> to vector<4x8xf32>
    %24 = arith.subf %20, %23 : vector<4x8xf32>
    %25 = math.exp %24 : vector<4x8xf32>
    %cst_15 = arith.constant dense<0.000000e+00> : vector<4xf32>
    %26 = vector.multi_reduction <add>, %25, %cst_15 [1] : vector<4x8xf32> to vector<4xf32>
    %27 = vector.shape_cast %26 : vector<4xf32> to vector<4x1xf32>
    %28 = tpu.reciprocal %27 : vector<4x1xf32> -> vector<4x1xf32>
    %29 = vector.broadcast %28 : vector<4x1xf32> to vector<4x8xf32>
    %30 = arith.mulf %25, %29 : vector<4x8xf32>
    %31 = vector.shape_cast %30 : vector<4x8xf32> to vector<4x8x1xf32>
    %32 = vector.broadcast %31 : vector<4x8x1xf32> to vector<4x8x512xf32>
    %33 = arith.mulf %32, %16 : vector<4x8x512xf32>
    %cst_16 = arith.constant dense<0.000000e+00> : vector<4x512xf32>
    %34 = vector.multi_reduction <add>, %33, %cst_16 [1] : vector<4x8x512xf32> to vector<4x512xf32>
    %cst_17 = arith.constant dense<0.000000e+00> : vector<4xf32>
    %35 = vector.multi_reduction <add>, %34, %cst_17 [1] : vector<4x512xf32> to vector<4xf32>
    %36 = vector.shape_cast %35 : vector<4xf32> to vector<4x1xf32>
    %cst_18 = arith.constant 5.120000e+02 : f32
    %37 = vector.broadcast %cst_18 : f32 to vector<4x1xf32>
    %38 = arith.divf %36, %37 : vector<4x1xf32>
    %39 = vector.broadcast %38 : vector<4x1xf32> to vector<4x512xf32>
    %40 = arith.subf %34, %39 : vector<4x512xf32>
    %41 = arith.mulf %40, %40 : vector<4x512xf32>
    %cst_19 = arith.constant dense<0.000000e+00> : vector<4xf32>
    %42 = vector.multi_reduction <add>, %41, %cst_19 [1] : vector<4x512xf32> to vector<4xf32>
    %43 = vector.shape_cast %42 : vector<4xf32> to vector<4x1xf32>
    %cst_20 = arith.constant 5.120000e+02 : f32
    %44 = vector.broadcast %cst_20 : f32 to vector<4x1xf32>
    %45 = arith.divf %43, %44 : vector<4x1xf32>
    %46 = vector.broadcast %38 : vector<4x1xf32> to vector<4x512xf32>
    %47 = arith.subf %34, %46 : vector<4x512xf32>
    %cst_21 = arith.constant 9.99999974E-6 : f32
    %48 = vector.broadcast %cst_21 : f32 to vector<4x1xf32>
    %49 = arith.addf %45, %48 : vector<4x1xf32>
    %50 = math.rsqrt %49 : vector<4x1xf32>
    %51 = vector.broadcast %50 : vector<4x1xf32> to vector<4x512xf32>
    %52 = arith.mulf %47, %51 : vector<4x512xf32>
    %c0_22 = arith.constant 0 : index
    %c0_23 = arith.constant 0 : index
    %53 = vector.load %arg9[%c0_22, %c0_23] : memref<1x512xf32, #tpu.memory_space<vmem>>, vector<1x512xf32>
    %54 = vector.broadcast %53 : vector<1x512xf32> to vector<4x512xf32>
    %55 = arith.mulf %52, %54 : vector<4x512xf32>
    %c0_24 = arith.constant 0 : index
    %c0_25 = arith.constant 0 : index
    %56 = vector.load %arg10[%c0_24, %c0_25] : memref<1x512xf32, #tpu.memory_space<vmem>>, vector<1x512xf32>
    %57 = vector.broadcast %56 : vector<1x512xf32> to vector<4x512xf32>
    %58 = arith.addf %55, %57 : vector<4x512xf32>
    %cst_26 = arith.constant 0.000000e+00 : f32
    %59 = vector.broadcast %cst_26 : f32 to vector<4x512xf32>
    %60 = arith.maximumf %58, %59 : vector<4x512xf32>
    %c0_27 = arith.constant 0 : index
    %c0_28 = arith.constant 0 : index
    %61 = vector.load %arg7[%c0_27, %c0_28] : memref<512x512xf32, #tpu.memory_space<vmem>>, vector<512x512xf32>
    %cst_29 = arith.constant dense<0.000000e+00> : vector<4x512xf32>
    %62 = tpu.matmul %60, %61, %cst_29 {dimension_numbers = #tpu.dot_dimension_numbers<[1], [0], [0], [1], [0, 0, 1, 1], [], []>} : vector<4x512xf32>, vector<512x512xf32>, vector<4x512xf32> -> vector<4x512xf32>
    %c0_30 = arith.constant 0 : index
    %c0_31 = arith.constant 0 : index
    %63 = vector.load %arg8[%c0_30, %c0_31] : memref<1x512xf32, #tpu.memory_space<vmem>>, vector<1x512xf32>
    %64 = vector.broadcast %63 : vector<1x512xf32> to vector<4x512xf32>
    %65 = arith.addf %62, %64 : vector<4x512xf32>
    %66 = arith.addf %0, %65 : vector<4x512xf32>
    %c0_32 = arith.constant 0 : index
    %c0_33 = arith.constant 0 : index
    %67 = vector.load %arg11[%c0_32, %c0_33] : memref<4x512xf32, #tpu.memory_space<vmem>>, vector<4x512xf32>
    tpu.vector_store %arg11[%c0_32, %c0_33], %66 {strides = array<i32>} : memref<4x512xf32, #tpu.memory_space<vmem>>, vector<4x512xf32>,
    return
  }
  func.func @transform_0(%arg0: i32) -> (i32, i32) {
    %c0_i32 = arith.constant 0 : i32
    %c0_i32_0 = arith.constant 0 : i32
    return %arg0, %c0_i32 : i32, i32
  }
  func.func @transform_1(%arg0: i32) -> (i32, i32, i32) {
    %c0_i32 = arith.constant 0 : i32
    %c0_i32_0 = arith.constant 0 : i32
    %c0_i32_1 = arith.constant 0 : i32
    return %arg0, %c0_i32, %c0_i32_0 : i32, i32, i32
  }
  func.func @transform_2(%arg0: i32) -> (i32, i32) {
    %c0_i32 = arith.constant 0 : i32
    %c0_i32_0 = arith.constant 0 : i32
    %c0_i32_1 = arith.constant 0 : i32
    return %c0_i32, %c0_i32_0 : i32, i32
  }
  func.func @transform_3(%arg0: i32) -> (i32, i32) {
    %c0_i32 = arith.constant 0 : i32
    %c0_i32_0 = arith.constant 0 : i32
    %c0_i32_1 = arith.constant 0 : i32
    return %c0_i32, %c0_i32_0 : i32, i32
  }
  func.func @transform_4(%arg0: i32) -> (i32, i32) {
    %c0_i32 = arith.constant 0 : i32
    %c0_i32_0 = arith.constant 0 : i32
    %c0_i32_1 = arith.constant 0 : i32
    return %c0_i32, %c0_i32_0 : i32, i32
  }
  func.func @transform_5(%arg0: i32) -> (i32, i32) {
    %c0_i32 = arith.constant 0 : i32
    %c0_i32_0 = arith.constant 0 : i32
    %c0_i32_1 = arith.constant 0 : i32
    return %c0_i32, %c0_i32_0 : i32, i32
  }
  func.func @transform_6(%arg0: i32) -> (i32, i32) {
    %c0_i32 = arith.constant 0 : i32
    %c0_i32_0 = arith.constant 0 : i32
    %c0_i32_1 = arith.constant 0 : i32
    return %c0_i32, %c0_i32_0 : i32, i32
  }
  func.func @transform_7(%arg0: i32) -> (i32, i32) {
    %c0_i32 = arith.constant 0 : i32
    %c0_i32_0 = arith.constant 0 : i32
    %c0_i32_1 = arith.constant 0 : i32
    return %c0_i32, %c0_i32_0 : i32, i32
  }
  func.func @transform_8(%arg0: i32) -> (i32, i32) {
    %c0_i32 = arith.constant 0 : i32
    %c0_i32_0 = arith.constant 0 : i32
    %c0_i32_1 = arith.constant 0 : i32
    return %c0_i32, %c0_i32_0 : i32, i32
  }
  func.func @transform_9(%arg0: i32) -> (i32, i32) {
    %c0_i32 = arith.constant 0 : i32
    %c0_i32_0 = arith.constant 0 : i32
    %c0_i32_1 = arith.constant 0 : i32
    return %c0_i32, %c0_i32_0 : i32, i32
  }
  func.func @transform_10(%arg0: i32) -> (i32, i32) {
    %c0_i32 = arith.constant 0 : i32
    %c0_i32_0 = arith.constant 0 : i32
    return %arg0, %c0_i32 : i32, i32
  }
}

</mosaic_0001>

<bundles_post_ra>
// kernel: tpu_custom_call.1
= control target key start
LH: loop header
LB: loop body
LE: loop exit
PB: predicated region body
PF: predicated region fallthrough
CT: control target
= control target key end

     0   :  { %15 = vsyncpa [#allocation3], 0  ;;  %s5412_s0 = inlined_call_operand.hbm [shape: f32[4,512], index: 0, kind: input, shape index: {}]   ;;  %s5413_s1 = inlined_call_operand.hbm [shape: f32[4,8,512], index: 1, kind: input, shape index: {}]   ;;  %s5414_s2 = inlined_call_operand.hbm [shape: f32[512,512], index: 2, kind: input, shape index: {}]   ;;  %s5415_s3 = inlined_call_operand.hbm [shape: f32[1,512], index: 3, kind: input, shape index: {}]   ;;  %s5416_s4 = inlined_call_operand.hbm [shape: f32[512,1024], index: 4, kind: input, shape index: {}]   ;;  %s5417_s5 = inlined_call_operand.hbm [shape: f32[1,1024], index: 5, kind: input, shape index: {}]   ;;  %s5418_s6 = inlined_call_operand.hbm [shape: f32[512,512], index: 6, kind: input, shape index: {}]   ;;  %s5419_s7 = inlined_call_operand.hbm [shape: f32[1,512], index: 7, kind: input, shape index: {}]   ;;  %s5420_s8 = inlined_call_operand.hbm [shape: f32[1,512], index: 8, kind: input, shape index: {}]   ;;  %s5421_s9 = inlined_call_operand.hbm [shape: f32[1,512], index: 9, kind: input, shape index: {}]   ;;  %s5422_s10 = inlined_call_operand.hbm [shape: f32[4,512], index: 10, kind: output, shape index: {}]  }
   0x1   :  { %16 = vsyncpa [#allocation6], 0 }
   0x2   :  { %17 = vsyncpa [#allocation9], 0 }
   0x3   :  { %18 = vsyncpa [#allocation12], 0 }
   0x4   :  { %19 = vsyncpa [#allocation15], 0 }
   0x5   :  { %20 = vsyncpa [#allocation18], 0 }
   0x6   :  { %21 = vsyncpa [#allocation4], 0  ;;  %s4735_s13 = smov [#allocation5]   ;;  %s4479_s17 = scalar_lea.hbm %s5413_s1, 2048 }
   0x7   :  { %s37_s14 = sshll.u32 %s4735_s13, 4  ;;  %p4480_p0 = scmp.ne.s32.totalorder %s5413_s1, %s4479_s17  ;;  %s38_s14 = int_to_ptr.vmem [resolvable:$true] %s37_s14 }
   0x8   :  { %p4483_p1 = scmp.lt.u32.totalorder %s4479_s17, %s5413_s1 }
   0xa   :  { %p4485_p2 = pnand %p4483_p1, %p4480_p0 }
   0xc   :  { %4488 = shalt.err (!%p4485_p2)
}
   0xd   :  { %s4489_s22 = scalar_lea.vmem %s38_s14, 2048  ;;  %p4494_p4 = scmp.lt.s32.totalorder %s38_s14, %s38_s14 }
   0xe   :  { %p4490_p3 = scmp.ne.s32.totalorder %s38_s14, %s4489_s22  ;;  %p4495_p5 = scmp.lt.s32.totalorder %s4489_s22, %s4489_s22 }
  0x10   :  { %p4496_p6 = por %p4495_p5, %p4494_p4 }
  0x12   :  { %p4497_p7 = pnand %p4496_p6, %p4490_p3 }
  0x14   :  { %4500 = shalt.err (!%p4497_p7)
}
  0x15   :  { %s4736_s23 = smov 512   ;;  %s4737_s24 = smov 32  }
  0x16   :  { %43 = dma.hbm_to_vmem [thread:$0]  %s5413_s1, 2048, %s38_s14, [#allocation6], %s4736_s23, %s4736_s23, %s4737_s24  }
  0x17   :  { %s4738_s27 = smov [#allocation8]   ;;  %s4739_s29 = smov [#allocation11]  }
  0x18   :  { %s62_s28 = sshll.u32 %s4738_s27, 4  ;;  %s84_s30 = sshll.u32 %s4739_s29, 4  ;;  %s63_s28 = int_to_ptr.vmem [resolvable:$true] %s62_s28  ;;  %s85_s30 = int_to_ptr.vmem [resolvable:$true] %s84_s30 }
  0x19   :  { %s4501_s13 = scalar_lea.hbm %s5415_s3, 64 }
  0x1a   :  { %p4502_p8 = scmp.ne.s32.totalorder %s5415_s3, %s4501_s13  ;;  %p4505_p9 = scmp.lt.u32.totalorder %s4501_s13, %s5415_s3 }
  0x1c   :  { %p4507_p10 = pnand %p4505_p9, %p4502_p8 }
  0x1e   :  { %4510 = shalt.err (!%p4507_p10)
}
  0x1f   :  { %s4511_s1 = scalar_lea.vmem %s63_s28, 64  ;;  %p4516_p12 = scmp.lt.s32.totalorder %s63_s28, %s63_s28 }
  0x20   :  { %p4512_p11 = scmp.ne.s32.totalorder %s63_s28, %s4511_s1  ;;  %p4517_p13 = scmp.lt.s32.totalorder %s4511_s1, %s4511_s1 }
  0x22   :  { %p4518_p0 = por %p4517_p13, %p4516_p12 }
  0x24   :  { %p4519_p1 = pnand %p4518_p0, %p4512_p11 }
  0x26   :  { %4522 = shalt.err (!%p4519_p1)
}
  0x27   :  { %65 = dma.hbm_to_vmem [thread:$0]  %s5415_s3, 64, %s63_s28, [#allocation9]  }
  0x28   :  { %s4523_s22 = scalar_lea.hbm %s5417_s5, 128 }
  0x29   :  { %p4524_p2 = scmp.ne.s32.totalorder %s5417_s5, %s4523_s22  ;;  %p4527_p3 = scmp.lt.u32.totalorder %s4523_s22, %s5417_s5 }
  0x2b   :  { %p4529_p4 = pnand %p4527_p3, %p4524_p2 }
  0x2d   :  { %4532 = shalt.err (!%p4529_p4)
}
  0x2e   :  { %s4533_s11 = scalar_lea.vmem %s85_s30, 128  ;;  %p4538_p6 = scmp.lt.s32.totalorder %s85_s30, %s85_s30 }
  0x2f   :  { %p4534_p5 = scmp.ne.s32.totalorder %s85_s30, %s4533_s11  ;;  %p4539_p7 = scmp.lt.s32.totalorder %s4533_s11, %s4533_s11 }
  0x31   :  { %p4540_p8 = por %p4539_p7, %p4538_p6 }
  0x33   :  { %p4541_p9 = pnand %p4540_p8, %p4534_p5 }
  0x35   :  { %4544 = shalt.err (!%p4541_p9)
}
  0x36   :  { %87 = dma.hbm_to_vmem [thread:$0]  %s5417_s5, 128, %s85_s30, [#allocation12]  }
  0x37   :  { %s4740_s12 = smov [#allocation14]   ;;  %s4741_s15 = smov [#allocation2]  }
  0x38   :  { %s106_s13 = sshll.u32 %s4740_s12, 4  ;;  %s28_s16 = sshll.u32 %s4741_s15, 4  ;;  %s107_s13 = int_to_ptr.vmem [resolvable:$true] %s106_s13  ;;  %s29_s16 = int_to_ptr.vmem [resolvable:$true] %s28_s16 }
  0x39   :  { %s4545_s1 = scalar_lea.hbm %s5419_s7, 64 }
  0x3a   :  { %p4546_p10 = scmp.ne.s32.totalorder %s5419_s7, %s4545_s1  ;;  %p4549_p11 = scmp.lt.u32.totalorder %s4545_s1, %s5419_s7 }
  0x3c   :  { %p4551_p12 = pnand %p4549_p11, %p4546_p10 }
  0x3e   :  { %4554 = shalt.err (!%p4551_p12)
}
  0x3f   :  { %s4555_s5 = scalar_lea.vmem %s107_s13, 64  ;;  %p4560_p0 = scmp.lt.s32.totalorder %s107_s13, %s107_s13 }
  0x40   :  { %p4556_p13 = scmp.ne.s32.totalorder %s107_s13, %s4555_s5  ;;  %p4561_p1 = scmp.lt.s32.totalorder %s4555_s5, %s4555_s5 }
  0x42   :  { %p4562_p2 = por %p4561_p1, %p4560_p0 }
  0x44   :  { %p4563_p3 = pnand %p4562_p2, %p4556_p13 }
  0x46   :  { %4566 = shalt.err (!%p4563_p3)
}
  0x47   :  { %109 = dma.hbm_to_vmem [thread:$0]  %s5419_s7, 64, %s107_s13, [#allocation15]  }
  0x48   :  { %s4567_s27 = scalar_lea.hbm %s5412_s0, 256 }
  0x49   :  { %p4568_p4 = scmp.ne.s32.totalorder %s5412_s0, %s4567_s27  ;;  %p4571_p5 = scmp.lt.u32.totalorder %s4567_s27, %s5412_s0 }
  0x4b   :  { %p4573_p6 = pnand %p4571_p5, %p4568_p4 }
  0x4d   :  { %4576 = shalt.err (!%p4573_p6)
}
  0x4e   :  { %s4577_s12 = scalar_lea.vmem %s29_s16, 256  ;;  %p4582_p8 = scmp.lt.s32.totalorder %s29_s16, %s29_s16 }
  0x4f   :  { %p4578_p7 = scmp.ne.s32.totalorder %s29_s16, %s4577_s12  ;;  %p4583_p9 = scmp.lt.s32.totalorder %s4577_s12, %s4577_s12 }
  0x51   :  { %p4584_p10 = por %p4583_p9, %p4582_p8 }
  0x53   :  { %p4585_p11 = pnand %p4584_p10, %p4578_p7 }
  0x55   :  { %4588 = shalt.err (!%p4585_p11)
}
  0x56   :  { %31 = dma.hbm_to_vmem [thread:$0]  %s5412_s0, 256, %s29_s16, [#allocation3]  }
  0x57   :  { %s4742_s15 = smov [#allocation7]   ;;  %s4743_s18 = smov [#allocation10]  }
  0x58   :  { %s49_s17 = sshll.u32 %s4742_s15, 4  ;;  %s71_s1 = sshll.u32 %s4743_s18, 4  ;;  %s50_s17 = int_to_ptr.vmem [resolvable:$true] %s49_s17  ;;  %s72_s1 = int_to_ptr.vmem [resolvable:$true] %s71_s1 }
  0x59   :  { %s4589_s20 = scalar_lea.hbm %s5414_s2, 32768 }
  0x5a   :  { %p4590_p12 = scmp.ne.s32.totalorder %s5414_s2, %s4589_s20  ;;  %p4593_p13 = scmp.lt.u32.totalorder %s4589_s20, %s5414_s2 }
  0x5c   :  { %p4595_p0 = pnand %p4593_p13, %p4590_p12 }
  0x5e   :  { %4598 = shalt.err (!%p4595_p0)
}
  0x5f   :  { %s4599_s0 = scalar_lea.vmem %s50_s17, 32768  ;;  %p4604_p2 = scmp.lt.s32.totalorder %s50_s17, %s50_s17 }
  0x60   :  { %p4600_p1 = scmp.ne.s32.totalorder %s50_s17, %s4599_s0  ;;  %p4605_p3 = scmp.lt.s32.totalorder %s4599_s0, %s4599_s0 }
  0x62   :  { %p4606_p4 = por %p4605_p3, %p4604_p2 }
  0x64   :  { %p4607_p5 = pnand %p4606_p4, %p4600_p1 }
  0x66   :  { %4610 = shalt.err (!%p4607_p5)
}
  0x67   :  { %55 = dma.hbm_to_vmem [thread:$0]  %s5414_s2, 32768, %s50_s17, [#allocation6], %s4736_s23, %s4736_s23, %s4737_s24  }
  0x68   :  { %s4611_s29 = scalar_lea.hbm %s5416_s4, 65536 }
  0x69   :  { %p4612_p6 = scmp.ne.s32.totalorder %s5416_s4, %s4611_s29  ;;  %p4615_p7 = scmp.lt.u32.totalorder %s4611_s29, %s5416_s4 }
  0x6b   :  { %p4617_p8 = pnand %p4615_p7, %p4612_p6 }
  0x6d   :  { %4620 = shalt.err (!%p4617_p8)
}
  0x6e   :  { %s4621_s7 = scalar_lea.vmem %s72_s1, 65536  ;;  %p4626_p10 = scmp.lt.s32.totalorder %s72_s1, %s72_s1 }
  0x6f   :  { %p4622_p9 = scmp.ne.s32.totalorder %s72_s1, %s4621_s7  ;;  %p4627_p11 = scmp.lt.s32.totalorder %s4621_s7, %s4621_s7 }
  0x71   :  { %p4628_p12 = por %p4627_p11, %p4626_p10 }
  0x73   :  { %p4629_p13 = pnand %p4628_p12, %p4622_p9 }
  0x75   :  { %4632 = shalt.err (!%p4629_p13)
}
  0x76   :  { %s4744_s2 = smov 1024   ;;  %s4745_s13 = smov 64  }
  0x77   :  { %77 = dma.hbm_to_vmem [thread:$0]  %s5416_s4, 65536, %s72_s1, [#allocation9], %s4744_s2, %s4744_s2, %s4745_s13  }
  0x78   :  { %s4746_s18 = smov [#allocation13]   ;;  %s4747_s19 = smov [#allocation16]  }
  0x79   :  { %s93_s14 = sshll.u32 %s4746_s18, 4  ;;  %s116_s20 = sshll.u32 %s4747_s19, 4  ;;  %s94_s14 = int_to_ptr.vmem [resolvable:$true] %s93_s14  ;;  %s117_s20 = int_to_ptr.vmem [resolvable:$true] %s116_s20 }
  0x7a   :  { %s4633_s30 = scalar_lea.hbm %s5418_s6, 32768 }
  0x7b   :  { %p4634_p0 = scmp.ne.s32.totalorder %s5418_s6, %s4633_s30  ;;  %p4637_p1 = scmp.lt.u32.totalorder %s4633_s30, %s5418_s6 }
  0x7d   :  { %p4639_p2 = pnand %p4637_p1, %p4634_p0 }
  0x7f   :  { %4642 = shalt.err (!%p4639_p2)
}
  0x80   :  { %s4643_s4 = scalar_lea.vmem %s94_s14, 32768  ;;  %p4648_p4 = scmp.lt.s32.totalorder %s94_s14, %s94_s14 }
  0x81   :  { %p4644_p3 = scmp.ne.s32.totalorder %s94_s14, %s4643_s4  ;;  %p4649_p5 = scmp.lt.s32.totalorder %s4643_s4, %s4643_s4 }
  0x83   :  { %p4650_p6 = por %p4649_p5, %p4648_p4 }
  0x85   :  { %p4651_p7 = pnand %p4650_p6, %p4644_p3 }
  0x87   :  { %4654 = shalt.err (!%p4651_p7)
}
  0x88   :  { %99 = dma.hbm_to_vmem [thread:$0]  %s5418_s6, 32768, %s94_s14, [#allocation12], %s4736_s23, %s4736_s23, %s4737_s24  }
  0x89   :  { %s4655_s11 = scalar_lea.hbm %s5420_s8, 64 }
  0x8a   :  { %p4656_p8 = scmp.ne.s32.totalorder %s5420_s8, %s4655_s11  ;;  %p4659_p9 = scmp.lt.u32.totalorder %s4655_s11, %s5420_s8 }
  0x8c   :  { %p4661_p10 = pnand %p4659_p9, %p4656_p8 }
  0x8e   :  { %4664 = shalt.err (!%p4661_p10)
}
  0x8f   :  { %s4665_s2 = scalar_lea.vmem %s117_s20, 64  ;;  %p4670_p12 = scmp.lt.s32.totalorder %s117_s20, %s117_s20 }
  0x90   :  { %p4666_p11 = scmp.ne.s32.totalorder %s117_s20, %s4665_s2  ;;  %p4671_p13 = scmp.lt.s32.totalorder %s4665_s2, %s4665_s2 }
  0x92   :  { %p4672_p0 = por %p4671_p13, %p4670_p12 }
  0x94   :  { %p4673_p1 = pnand %p4672_p0, %p4666_p11 }
  0x96   :  { %4676 = shalt.err (!%p4673_p1)
}
  0x97   :  { %119 = dma.hbm_to_vmem [thread:$0]  %s5420_s8, 64, %s117_s20, [#allocation15]  }
  0x98   :  { %s4748_s24 = smov [#allocation17]   ;;  %s4677_s18 = scalar_lea.hbm %s5421_s9, 64 }
  0x99   :  { %s126_s13 = sshll.u32 %s4748_s24, 4  ;;  %p4678_p2 = scmp.ne.s32.totalorder %s5421_s9, %s4677_s18  ;;  %s127_s13 = int_to_ptr.vmem [resolvable:$true] %s126_s13 }
  0x9a   :  { %p4681_p3 = scmp.lt.u32.totalorder %s4677_s18, %s5421_s9 }
  0x9c   :  { %p4683_p4 = pnand %p4681_p3, %p4678_p2 }
  0x9e   :  { %4686 = shalt.err (!%p4683_p4)
}
  0x9f   :  { %s4687_s30 = scalar_lea.vmem %s127_s13, 64  ;;  %p4692_p6 = scmp.lt.s32.totalorder %s127_s13, %s127_s13 }
  0xa0   :  { %p4688_p5 = scmp.ne.s32.totalorder %s127_s13, %s4687_s30  ;;  %p4693_p7 = scmp.lt.s32.totalorder %s4687_s30, %s4687_s30 }
  0xa2   :  { %p4694_p8 = por %p4693_p7, %p4692_p6 }
  0xa4   :  { %p4695_p9 = pnand %p4694_p8, %p4688_p5 }
  0xa6   :  { %4698 = shalt.err (!%p4695_p9)
}
  0xa7   :  { %129 = dma.hbm_to_vmem [thread:$0]  %s5421_s9, 64, %s127_s13, [#allocation18]  }
  0xa8   :  { %4721 = dma.done.wait [#allocation3], 256  }
  0xa9   :  { %4722 = vsyncadd [#allocation3], 4294967040 }
  0xaa   :  { %4723 = dma.done.wait [#allocation6], 34816  }
  0xab   :  { %4724 = vsyncadd [#allocation6], 4294932480 }
  0xac   :  { %4725 = dma.done.wait [#allocation9], 65600  }
  0xad   :  { %4726 = vsyncadd [#allocation9], 4294901696 }
  0xae   :  { %4727 = dma.done.wait [#allocation12], 32896  }
  0xaf   :  { %4728 = vsyncadd [#allocation12], 4294934400 }
  0xb0   :  { %4729 = dma.done.wait [#allocation15], 128  }
  0xb1   :  { %4730 = vsyncadd [#allocation15], 4294967168 }
  0xb2   :  { %4731 = dma.done.wait [#allocation18], 64  }
  0xb3   :  { %4732 = vsyncadd [#allocation18], 4294967232  ;;  %v179_v0 = vld [vmem:[#allocation7 + $0x8] sm:$0xff]  ;;  %v181_v2 = vld [vmem:[#allocation7 + $0x18] sm:$0xff]  ;;  %vm2188_vm0 = vcmask 1041409   ;;  %vm2190_vm1 = vcmask 1042434  }
  0xb4   :  { %v183_v1 = vld [vmem:[#allocation7 + $0x28] sm:$0xff]  ;;  %v185_v4 = vld [vmem:[#allocation7 + $0x38] sm:$0xff]  ;;  %v178_v5 = vld [vmem:[#allocation7] sm:$0xff]  ;;  %vm2192_vm2 = vcmask 1043459   ;;  %vm2195_vm3 = vcmask 60416   ;;  %vm2461_vm4 = vcmask 1043456  }
  0xb5   :  { %v3323_v3 = vpack.c.bf16 %v183_v1, %v179_v0  ;;  %v182_v6 = vld [vmem:[#allocation7 + $0x20] sm:$0xff]  ;;  %v3451_v7 = vpack.c.bf16 %v185_v4, %v181_v2  ;;  %v180_v9 = vld [vmem:[#allocation7 + $0x10] sm:$0xff]  ;;  %v187_v11 = vld [vmem:[#allocation7 + $0x48] sm:$0xff]  ;;  %s4751_s9 = smov [#allocation19]  }
  0xb6   :  { %v3325_v8 = vpack.c.bf16 %v182_v6, %v178_v5  ;;  %v184_v10 = vld [vmem:[#allocation7 + $0x30] sm:$0xff]  ;;  %v191_v13 = vld [vmem:[#allocation7 + $0x68] sm:$0xff]  ;;  %v189_v14 = vld [vmem:[#allocation7 + $0x58] sm:$0xff]  ;;  %s3309_s22 = sshll.u32 %s4751_s9, 4  ;;  %s3310_s22 = int_to_ptr.vmem [resolvable:$true] %s3309_s22 }
  0xb7   :  { %3324 = vmatprep.subr.bf16.mxu0 %v3323_v3  ;;  %v3453_v12 = vpack.c.bf16 %v184_v10, %v180_v9  ;;  %v193_v15 = vld [vmem:[#allocation7 + $0x78] sm:$0xff]  ;;  %3452 = vmatprep.subr.bf16.mxu1 %v3451_v7  ;;  %v3327_v16 = vpack.c.bf16 %v191_v13, %v187_v11  ;;  %v186_v18 = vld [vmem:[#allocation7 + $0x40] sm:$0xff]  ;;  %v188_v20 = vld [vmem:[#allocation7 + $0x50] sm:$0xff]  ;;  %s4699_s0 = scalar_lea.vmem %s3310_s22, 256  ;;  %p4704_p11 = scmp.lt.s32.totalorder %s3310_s22, %s3310_s22 }
  0xb8   :  { %3326 = vmatpush1.bf16.msra.mxu0 %v3325_v8  ;;  %v3455_v17 = vpack.c.bf16 %v193_v15, %v189_v14  ;;  %v190_v19 = vld [vmem:[#allocation7 + $0x60] sm:$0xff]  ;;  %v192_v22 = vld [vmem:[#allocation7 + $0x70] sm:$0xff]  ;;  %v195_v23 = vld [vmem:[#allocation7 + $0x88] sm:$0xff]  ;;  %p4700_p10 = scmp.ne.s32.totalorder %s3310_s22, %s4699_s0  ;;  %p4705_p12 = scmp.lt.s32.totalorder %s4699_s0, %s4699_s0 }
  0xb9   :  { %3454 = vmatpush1.bf16.msra.mxu1 %v3453_v12  ;;  %v3329_v21 = vpack.c.bf16 %v190_v19, %v186_v18  ;;  %v199_v24 = vld [vmem:[#allocation7 + $0xa8] sm:$0xff]  ;;  %3328 = vmatprep.subr.bf16.mxu0 %v3327_v16  ;;  %v3457_v25 = vpack.c.bf16 %v192_v22, %v188_v20  ;;  %v197_v27 = vld [vmem:[#allocation7 + $0x98] sm:$0xff]  ;;  %v194_v29 = vld [vmem:[#allocation7 + $0x80] sm:$0xff] }
  0xba   :  { %3456 = vmatprep.subr.bf16.mxu1 %v3455_v17  ;;  %v3331_v26 = vpack.c.bf16 %v199_v24, %v195_v23  ;;  %v201_v28 = vld [vmem:[#allocation7 + $0xb8] sm:$0xff]  ;;  %v198_v31 = vld [vmem:[#allocation7 + $0xa0] sm:$0xff]  ;;  %v196_v32 = vld [vmem:[#allocation7 + $0x90] sm:$0xff]  ;;  %p4706_p13 = por %p4705_p12, %p4704_p11 }
  0xbb   :  { %v3459_v30 = vpack.c.bf16 %v201_v28, %v197_v27  ;;  %v200_v33 = vld [vmem:[#allocation7 + $0xb0] sm:$0xff]  ;;  %v3333_v34 = vpack.c.bf16 %v198_v31, %v194_v29  ;;  %v203_v35 = vld [vmem:[#allocation7 + $0xc8] sm:$0xff]  ;;  %v205_v37 = vld [vmem:[#allocation7 + $0xd8] sm:$0xff] }
  0xbc   :  { %3330 = vmatpush1.bf16.msra.mxu0 %v3329_v21  ;;  %v207_v36 = vld [vmem:[#allocation7 + $0xe8] sm:$0xff]  ;;  %v3461_v38 = vpack.c.bf16 %v200_v33, %v196_v32  ;;  %v209_v40 = vld [vmem:[#allocation7 + $0xf8] sm:$0xff]  ;;  %v202_v41 = vld [vmem:[#allocation7 + $0xc0] sm:$0xff]  ;;  %p4707_p0 = pnand %p4706_p13, %p4700_p10 }
  0xbd   :  { %3458 = vmatpush1.bf16.msra.mxu1 %v3457_v25  ;;  %3332 = vmatprep.subr.bf16.mxu0 %v3331_v26  ;;  %v3335_v39 = vpack.c.bf16 %v207_v36, %v203_v35  ;;  %v206_v42 = vld [vmem:[#allocation7 + $0xe0] sm:$0xff]  ;;  %v3463_v43 = vpack.c.bf16 %v209_v40, %v205_v37  ;;  %v204_v44 = vld [vmem:[#allocation7 + $0xd0] sm:$0xff]  ;;  %v211_v46 = vld [vmem:[#allocation7 + $0x108] sm:$0xff] }
  0xbe   :  { %3460 = vmatprep.subr.bf16.mxu1 %v3459_v30  ;;  %v208_v45 = vld [vmem:[#allocation7 + $0xf0] sm:$0xff]  ;;  %v215_v47 = vld [vmem:[#allocation7 + $0x128] sm:$0xff]  ;;  %v213_v48 = vld [vmem:[#allocation7 + $0x118] sm:$0xff]  ;;  %v3337_v50 = vpack.c.bf16 %v206_v42, %v202_v41 }
  0xbf   :  { %v217_v49 = vld [vmem:[#allocation7 + $0x138] sm:$0xff]  ;;  %v3465_v51 = vpack.c.bf16 %v208_v45, %v204_v44  ;;  %v3339_v52 = vpack.c.bf16 %v215_v47, %v211_v46  ;;  %v210_v53 = vld [vmem:[#allocation7 + $0x100] sm:$0xff]  ;;  %v212_v55 = vld [vmem:[#allocation7 + $0x110] sm:$0xff] }
  0xc0   :  { %3334 = vmatpush1.bf16.msra.mxu0 %v3333_v34  ;;  %v214_v54 = vld [vmem:[#allocation7 + $0x120] sm:$0xff]  ;;  %v3467_v56 = vpack.c.bf16 %v217_v49, %v213_v48  ;;  %v216_v57 = vld [vmem:[#allocation7 + $0x130] sm:$0xff]  ;;  %v219_v58 = vld [vmem:[#allocation7 + $0x148] sm:$0xff] }
  0xc1   :  { %3462 = vmatpush1.bf16.msra.mxu1 %v3461_v38  ;;  %3336 = vmatprep.subr.bf16.mxu0 %v3335_v39  ;;  %v223_v59 = vld [vmem:[#allocation7 + $0x168] sm:$0xff]  ;;  %v221_v60 = vld [vmem:[#allocation7 + $0x158] sm:$0xff]  ;;  %v3341_v62 = vpack.c.bf16 %v214_v54, %v210_v53  ;;  %v3469_v63 = vpack.c.bf16 %v216_v57, %v212_v55  ;;  %v218_v1 = vld [vmem:[#allocation7 + $0x140] sm:$0xff] }
  0xc2   :  { %3464 = vmatprep.subr.bf16.mxu1 %v3463_v43  ;;  %v225_v61 = vld [vmem:[#allocation7 + $0x178] sm:$0xff]  ;;  %v3343_v0 = vpack.c.bf16 %v223_v59, %v219_v58  ;;  %v222_v2 = vld [vmem:[#allocation7 + $0x160] sm:$0xff]  ;;  %v220_v3 = vld [vmem:[#allocation7 + $0x150] sm:$0xff] }
  0xc3   :  { %v3471_v4 = vpack.c.bf16 %v225_v61, %v221_v60  ;;  %v224_v5 = vld [vmem:[#allocation7 + $0x170] sm:$0xff]  ;;  %v227_v6 = vld [vmem:[#allocation7 + $0x188] sm:$0xff]  ;;  %v229_v8 = vld [vmem:[#allocation7 + $0x198] sm:$0xff]  ;;  %v3345_v10 = vpack.c.bf16 %v222_v2, %v218_v1 }
  0xc4   :  { %3338 = vmatpush1.bf16.msra.mxu0 %v3337_v50  ;;  %v231_v7 = vld [vmem:[#allocation7 + $0x1a8] sm:$0xff]  ;;  %v233_v9 = vld [vmem:[#allocation7 + $0x1b8] sm:$0xff]  ;;  %v3473_v11 = vpack.c.bf16 %v224_v5, %v220_v3  ;;  %v226_v13 = vld [vmem:[#allocation7 + $0x180] sm:$0xff] }
  0xc5   :  { %3466 = vmatpush1.bf16.msra.mxu1 %v3465_v51  ;;  %3340 = vmatprep.subr.bf16.mxu0 %v3339_v52  ;;  %v3347_v12 = vpack.c.bf16 %v231_v7, %v227_v6  ;;  %v230_v14 = vld [vmem:[#allocation7 + $0x1a0] sm:$0xff]  ;;  %v228_v15 = vld [vmem:[#allocation7 + $0x190] sm:$0xff]  ;;  %v3475_v16 = vpack.c.bf16 %v233_v9, %v229_v8  ;;  %v235_v18 = vld [vmem:[#allocation7 + $0x1c8] sm:$0xff] }
  0xc6   :  { %3468 = vmatprep.subr.bf16.mxu1 %v3467_v56  ;;  %v232_v17 = vld [vmem:[#allocation7 + $0x1b0] sm:$0xff]  ;;  %v239_v19 = vld [vmem:[#allocation7 + $0x1e8] sm:$0xff]  ;;  %v237_v20 = vld [vmem:[#allocation7 + $0x1d8] sm:$0xff]  ;;  %v3349_v22 = vpack.c.bf16 %v230_v14, %v226_v13 }
  0xc7   :  { %v241_v21 = vld [vmem:[#allocation7 + $0x1f8] sm:$0xff]  ;;  %v3477_v23 = vpack.c.bf16 %v232_v17, %v228_v15  ;;  %v3351_v24 = vpack.c.bf16 %v239_v19, %v235_v18  ;;  %v234_v25 = vld [vmem:[#allocation7 + $0x1c0] sm:$0xff]  ;;  %v236_v27 = vld [vmem:[#allocation7 + $0x1d0] sm:$0xff] }
  0xc8   :  { %3342 = vmatpush1.bf16.msra.mxu0 %v3341_v62  ;;  %v238_v26 = vld [vmem:[#allocation7 + $0x1e0] sm:$0xff]  ;;  %v3479_v28 = vpack.c.bf16 %v241_v21, %v237_v20  ;;  %v240_v29 = vld [vmem:[#allocation7 + $0x1f0] sm:$0xff]  ;;  %v243_v30 = vld [vmem:[#allocation7 + $0x208] sm:$0xff] }
  0xc9   :  { %3470 = vmatpush1.bf16.msra.mxu1 %v3469_v63  ;;  %3344 = vmatprep.subr.bf16.mxu0 %v3343_v0  ;;  %v247_v31 = vld [vmem:[#allocation7 + $0x228] sm:$0xff]  ;;  %v245_v32 = vld [vmem:[#allocation7 + $0x218] sm:$0xff]  ;;  %v3353_v34 = vpack.c.bf16 %v238_v26, %v234_v25  ;;  %v3481_v35 = vpack.c.bf16 %v240_v29, %v236_v27  ;;  %v242_v37 = vld [vmem:[#allocation7 + $0x200] sm:$0xff] }
  0xca   :  { %3472 = vmatprep.subr.bf16.mxu1 %v3471_v4  ;;  %v249_v33 = vld [vmem:[#allocation7 + $0x238] sm:$0xff]  ;;  %v3355_v36 = vpack.c.bf16 %v247_v31, %v243_v30  ;;  %v246_v38 = vld [vmem:[#allocation7 + $0x220] sm:$0xff]  ;;  %v244_v39 = vld [vmem:[#allocation7 + $0x210] sm:$0xff] }
  0xcb   :  { %v3483_v40 = vpack.c.bf16 %v249_v33, %v245_v32  ;;  %v248_v41 = vld [vmem:[#allocation7 + $0x230] sm:$0xff]  ;;  %v251_v42 = vld [vmem:[#allocation7 + $0x248] sm:$0xff]  ;;  %v253_v44 = vld [vmem:[#allocation7 + $0x258] sm:$0xff]  ;;  %v3357_v46 = vpack.c.bf16 %v246_v38, %v242_v37 }
  0xcc   :  { %3346 = vmatpush1.bf16.msra.mxu0 %v3345_v10  ;;  %v255_v43 = vld [vmem:[#allocation7 + $0x268] sm:$0xff]  ;;  %v257_v45 = vld [vmem:[#allocation7 + $0x278] sm:$0xff]  ;;  %v3485_v47 = vpack.c.bf16 %v248_v41, %v244_v39  ;;  %v250_v49 = vld [vmem:[#allocation7 + $0x240] sm:$0xff] }
  0xcd   :  { %3474 = vmatpush1.bf16.msra.mxu1 %v3473_v11  ;;  %3348 = vmatprep.subr.bf16.mxu0 %v3347_v12  ;;  %v3359_v48 = vpack.c.bf16 %v255_v43, %v251_v42  ;;  %v254_v50 = vld [vmem:[#allocation7 + $0x260] sm:$0xff]  ;;  %v252_v51 = vld [vmem:[#allocation7 + $0x250] sm:$0xff]  ;;  %v3487_v52 = vpack.c.bf16 %v257_v45, %v253_v44  ;;  %v259_v54 = vld [vmem:[#allocation7 + $0x288] sm:$0xff] }
  0xce   :  { %3476 = vmatprep.subr.bf16.mxu1 %v3475_v16  ;;  %v256_v53 = vld [vmem:[#allocation7 + $0x270] sm:$0xff]  ;;  %v263_v55 = vld [vmem:[#allocation7 + $0x2a8] sm:$0xff]  ;;  %v261_v56 = vld [vmem:[#allocation7 + $0x298] sm:$0xff]  ;;  %v3361_v58 = vpack.c.bf16 %v254_v50, %v250_v49 }
  0xcf   :  { %v265_v57 = vld [vmem:[#allocation7 + $0x2b8] sm:$0xff]  ;;  %v3489_v59 = vpack.c.bf16 %v256_v53, %v252_v51  ;;  %v3363_v60 = vpack.c.bf16 %v263_v55, %v259_v54  ;;  %v258_v61 = vld [vmem:[#allocation7 + $0x280] sm:$0xff]  ;;  %v260_v63 = vld [vmem:[#allocation7 + $0x290] sm:$0xff] }
  0xd0   :  { %3350 = vmatpush1.bf16.msra.mxu0 %v3349_v22  ;;  %v262_v62 = vld [vmem:[#allocation7 + $0x2a0] sm:$0xff]  ;;  %v3491_v0 = vpack.c.bf16 %v265_v57, %v261_v56  ;;  %v264_v1 = vld [vmem:[#allocation7 + $0x2b0] sm:$0xff]  ;;  %v267_v2 = vld [vmem:[#allocation7 + $0x2c8] sm:$0xff] }
  0xd1   :  { %3478 = vmatpush1.bf16.msra.mxu1 %v3477_v23  ;;  %3352 = vmatprep.subr.bf16.mxu0 %v3351_v24  ;;  %v271_v3 = vld [vmem:[#allocation7 + $0x2e8] sm:$0xff]  ;;  %v269_v4 = vld [vmem:[#allocation7 + $0x2d8] sm:$0xff]  ;;  %v3365_v6 = vpack.c.bf16 %v262_v62, %v258_v61  ;;  %v266_v7 = vld [vmem:[#allocation7 + $0x2c0] sm:$0xff]  ;;  %v3493_v8 = vpack.c.bf16 %v264_v1, %v260_v63 }
  0xd2   :  { %3480 = vmatprep.subr.bf16.mxu1 %v3479_v28  ;;  %v273_v5 = vld [vmem:[#allocation7 + $0x2f8] sm:$0xff]  ;;  %v3367_v9 = vpack.c.bf16 %v271_v3, %v267_v2  ;;  %v270_v10 = vld [vmem:[#allocation7 + $0x2e0] sm:$0xff]  ;;  %v268_v11 = vld [vmem:[#allocation7 + $0x2d0] sm:$0xff] }
  0xd3   :  { %v272_v12 = vld [vmem:[#allocation7 + $0x2f0] sm:$0xff]  ;;  %v3495_v13 = vpack.c.bf16 %v273_v5, %v269_v4  ;;  %v275_v14 = vld [vmem:[#allocation7 + $0x308] sm:$0xff]  ;;  %v277_v17 = vld [vmem:[#allocation7 + $0x318] sm:$0xff]  ;;  %v3369_v20 = vpack.c.bf16 %v270_v10, %v266_v7 }
  0xd4   :  { %3354 = vmatpush1.bf16.msra.mxu0 %v3353_v34  ;;  %v279_v15 = vld [vmem:[#allocation7 + $0x328] sm:$0xff]  ;;  %v4936_v16 = vld [vmem:[#allocation2] sm:$0xff]  ;;  %v281_v18 = vld [vmem:[#allocation7 + $0x338] sm:$0xff]  ;;  %v3497_v21 = vpack.c.bf16 %v272_v12, %v268_v11 }
  0xd5   :  { %3482 = vmatpush1.bf16.msra.mxu1 %v3481_v35  ;;  %3356 = vmatprep.subr.bf16.mxu0 %v3355_v36  ;;  %v458_v19 = vcombine.high %v4936_v16, %v4936_v16  ;;  %v3371_v22 = vpack.c.bf16 %v279_v15, %v275_v14  ;;  %v274_v23 = vld [vmem:[#allocation7 + $0x300] sm:$0xff]  ;;  %v276_v25 = vld [vmem:[#allocation7 + $0x310] sm:$0xff]  ;;  %v3499_v26 = vpack.c.bf16 %v281_v18, %v277_v17  ;;  %v283_v28 = vld [vmem:[#allocation7 + $0x348] sm:$0xff] }
  0xd6   :  { %3484 = vmatprep.subr.bf16.mxu1 %v3483_v40  ;;  %v278_v24 = vld [vmem:[#allocation7 + $0x320] sm:$0xff]  ;;  %v280_v27 = vld [vmem:[#allocation7 + $0x330] sm:$0xff]  ;;  %v287_v29 = vld [vmem:[#allocation7 + $0x368] sm:$0xff] }
  0xd7   :  { %526 = vmatprep.mubr.f32.mxu0 %v458_v19  ;;  %v285_v30 = vld [vmem:[#allocation7 + $0x358] sm:$0xff]  ;;  %668 = vmatprep.mubr.f32.mxu1 %v458_v19  ;;  %v3373_v32 = vpack.c.bf16 %v278_v24, %v274_v23  ;;  %v3501_v33 = vpack.c.bf16 %v280_v27, %v276_v25  ;;  %v3375_v34 = vpack.c.bf16 %v287_v29, %v283_v28  ;;  %v282_v35 = vld [vmem:[#allocation7 + $0x340] sm:$0xff]  ;;  %v284_v37 = vld [vmem:[#allocation7 + $0x350] sm:$0xff] }
  0xd8   :  { %3358 = vmatpush1.bf16.msra.mxu0 %v3357_v46  ;;  %v289_v31 = vld [vmem:[#allocation7 + $0x378] sm:$0xff]  ;;  %v286_v36 = vld [vmem:[#allocation7 + $0x360] sm:$0xff]  ;;  %v288_v39 = vld [vmem:[#allocation7 + $0x370] sm:$0xff] }
  0xd9   :  { %3486 = vmatpush1.bf16.msra.mxu1 %v3485_v47  ;;  %3360 = vmatprep.subr.bf16.mxu0 %v3359_v48  ;;  %v3503_v38 = vpack.c.bf16 %v289_v31, %v285_v30  ;;  %v291_v40 = vld [vmem:[#allocation7 + $0x388] sm:$0xff]  ;;  %v293_v42 = vld [vmem:[#allocation7 + $0x398] sm:$0xff]  ;;  %v3377_v44 = vpack.c.bf16 %v286_v36, %v282_v35  ;;  %v3505_v45 = vpack.c.bf16 %v288_v39, %v284_v37  ;;  %v290_v47 = vld [vmem:[#allocation7 + $0x380] sm:$0xff] }
  0xda   :  { %3488 = vmatprep.subr.bf16.mxu1 %v3487_v52  ;;  %v295_v41 = vld [vmem:[#allocation7 + $0x3a8] sm:$0xff]  ;;  %v297_v43 = vld [vmem:[#allocation7 + $0x3b8] sm:$0xff]  ;;  %v294_v48 = vld [vmem:[#allocation7 + $0x3a0] sm:$0xff] }
  0xdb   :  { %v3379_v46 = vpack.c.bf16 %v295_v41, %v291_v40  ;;  %v292_v49 = vld [vmem:[#allocation7 + $0x390] sm:$0xff]  ;;  %v3507_v50 = vpack.c.bf16 %v297_v43, %v293_v42  ;;  %v299_v52 = vld [vmem:[#allocation7 + $0x3c8] sm:$0xff]  ;;  %v301_v54 = vld [vmem:[#allocation7 + $0x3d8] sm:$0xff]  ;;  %v3381_v56 = vpack.c.bf16 %v294_v48, %v290_v47 }
  0xdc   :  { %3362 = vmatpush1.bf16.msra.mxu0 %v3361_v58  ;;  %v296_v51 = vld [vmem:[#allocation7 + $0x3b0] sm:$0xff]  ;;  %v303_v53 = vld [vmem:[#allocation7 + $0x3e8] sm:$0xff]  ;;  %v305_v55 = vld [vmem:[#allocation7 + $0x3f8] sm:$0xff] }
  0xdd   :  { %3490 = vmatpush1.bf16.msra.mxu1 %v3489_v59  ;;  %3364 = vmatprep.subr.bf16.mxu0 %v3363_v60  ;;  %v3509_v57 = vpack.c.bf16 %v296_v51, %v292_v49  ;;  %v3383_v58 = vpack.c.bf16 %v303_v53, %v299_v52  ;;  %v298_v59 = vld [vmem:[#allocation7 + $0x3c0] sm:$0xff]  ;;  %v300_v61 = vld [vmem:[#allocation7 + $0x3d0] sm:$0xff]  ;;  %v3511_v62 = vpack.c.bf16 %v305_v55, %v301_v54  ;;  %v311_v1 = vld [vmem:[#allocation7 + $0x428] sm:$0xff] }
  0xde   :  { %3492 = vmatprep.subr.bf16.mxu1 %v3491_v0  ;;  %v302_v60 = vld [vmem:[#allocation7 + $0x3e0] sm:$0xff]  ;;  %v304_v63 = vld [vmem:[#allocation7 + $0x3f0] sm:$0xff]  ;;  %v307_v0 = vld [vmem:[#allocation7 + $0x408] sm:$0xff] }
  0xdf   :  { %v309_v2 = vld [vmem:[#allocation7 + $0x418] sm:$0xff]  ;;  %v3385_v4 = vpack.c.bf16 %v302_v60, %v298_v59  ;;  %v3513_v5 = vpack.c.bf16 %v304_v63, %v300_v61  ;;  %v306_v7 = vld [vmem:[#allocation7 + $0x400] sm:$0xff]  ;;  %v312_v11 = vld [vmem:[#allocation7 + $0x430] sm:$0xff] }
  0xe0   :  { %3366 = vmatpush1.bf16.msra.mxu0 %v3365_v6  ;;  %v313_v3 = vld [vmem:[#allocation7 + $0x438] sm:$0xff]  ;;  %v3387_v6 = vpack.c.bf16 %v311_v1, %v307_v0  ;;  %v315_v12 = vld [vmem:[#allocation7 + $0x448] sm:$0xff]  ;;  %v320_v24 = vld [vmem:[#allocation7 + $0x470] sm:$0xff] }
  0xe1   :  { %3494 = vmatpush1.bf16.msra.mxu1 %v3493_v8  ;;  %3368 = vmatprep.subr.bf16.mxu0 %v3367_v9  ;;  %v310_v8 = vld [vmem:[#allocation7 + $0x420] sm:$0xff]  ;;  %v308_v9 = vld [vmem:[#allocation7 + $0x410] sm:$0xff]  ;;  %v3515_v10 = vpack.c.bf16 %v313_v3, %v309_v2  ;;  %v317_v14 = vld [vmem:[#allocation7 + $0x458] sm:$0xff] }
  0xe2   :  { %3496 = vmatprep.subr.bf16.mxu1 %v3495_v13  ;;  %v319_v13 = vld [vmem:[#allocation7 + $0x468] sm:$0xff]  ;;  %v321_v15 = vld [vmem:[#allocation7 + $0x478] sm:$0xff]  ;;  %v3389_v17 = vpack.c.bf16 %v310_v8, %v306_v7  ;;  %v3517_v18 = vpack.c.bf16 %v312_v11, %v308_v9  ;;  %v328_v36 = vld [vmem:[#allocation7 + $0x4b0] sm:$0xff] }
  0xe3   :  { %v3391_v19 = vpack.c.bf16 %v319_v13, %v315_v12  ;;  %v3519_v23 = vpack.c.bf16 %v321_v15, %v317_v14  ;;  %v323_v25 = vld [vmem:[#allocation7 + $0x488] sm:$0xff]  ;;  %v325_v27 = vld [vmem:[#allocation7 + $0x498] sm:$0xff]  ;;  %v330_v43 = vld [vmem:[#allocation7 + $0x4c0] sm:$0xff] }
  0xe4   :  { %3370 = vmatpush1.bf16.msra.mxu0 %v3369_v20  ;;  %v314_v20 = vld [vmem:[#allocation7 + $0x440] sm:$0xff]  ;;  %v329_v28 = vld [vmem:[#allocation7 + $0x4b8] sm:$0xff]  ;;  %v331_v37 = vld [vmem:[#allocation7 + $0x4c8] sm:$0xff] }
  0xe5   :  { %3498 = vmatpush1.bf16.msra.mxu1 %v3497_v21  ;;  %3372 = vmatprep.subr.bf16.mxu0 %v3371_v22  ;;  %v318_v21 = vld [vmem:[#allocation7 + $0x460] sm:$0xff]  ;;  %v316_v22 = vld [vmem:[#allocation7 + $0x450] sm:$0xff]  ;;  %v3523_v35 = vpack.c.bf16 %v329_v28, %v325_v27  ;;  %v333_v39 = vld [vmem:[#allocation7 + $0x4d8] sm:$0xff] }
  0xe6   :  { %3500 = vmatprep.subr.bf16.mxu1 %v3499_v26  ;;  %v327_v26 = vld [vmem:[#allocation7 + $0x4a8] sm:$0xff]  ;;  %v3393_v29 = vpack.c.bf16 %v318_v21, %v314_v20  ;;  %v3521_v30 = vpack.c.bf16 %v320_v24, %v316_v22  ;;  %v337_v40 = vld [vmem:[#allocation7 + $0x4f8] sm:$0xff]  ;;  %v336_v47 = vld [vmem:[#allocation7 + $0x4f0] sm:$0xff] }
  0xe7   :  { %v3395_v31 = vpack.c.bf16 %v327_v26, %v323_v25  ;;  %v339_v48 = vld [vmem:[#allocation7 + $0x508] sm:$0xff]  ;;  %v345_v51 = vld [vmem:[#allocation7 + $0x538] sm:$0xff]  ;;  %v338_v55 = vld [vmem:[#allocation7 + $0x500] sm:$0xff] }
  0xe8   :  { %3374 = vmatpush1.bf16.msra.mxu0 %v3373_v32  ;;  %v322_v32 = vld [vmem:[#allocation7 + $0x480] sm:$0xff]  ;;  %v343_v49 = vld [vmem:[#allocation7 + $0x528] sm:$0xff]  ;;  %v344_v59 = vld [vmem:[#allocation7 + $0x530] sm:$0xff] }
  0xe9   :  { %3502 = vmatpush1.bf16.msra.mxu1 %v3501_v33  ;;  %3376 = vmatprep.subr.bf16.mxu0 %v3375_v34  ;;  %v326_v33 = vld [vmem:[#allocation7 + $0x4a0] sm:$0xff]  ;;  %v324_v34 = vld [vmem:[#allocation7 + $0x490] sm:$0xff]  ;;  %v3403_v54 = vpack.c.bf16 %v343_v49, %v339_v48  ;;  %v347_v60 = vld [vmem:[#allocation7 + $0x548] sm:$0xff] }
  0xea   :  { %3504 = vmatprep.subr.bf16.mxu1 %v3503_v38  ;;  %v335_v38 = vld [vmem:[#allocation7 + $0x4e8] sm:$0xff]  ;;  %v3397_v41 = vpack.c.bf16 %v326_v33, %v322_v32  ;;  %v353_v63 = vld [vmem:[#allocation7 + $0x578] sm:$0xff]  ;;  %v346_v3 = vld [vmem:[#allocation7 + $0x540] sm:$0xff] }
  0xeb   :  { %v3399_v42 = vpack.c.bf16 %v335_v38, %v331_v37  ;;  %v351_v61 = vld [vmem:[#allocation7 + $0x568] sm:$0xff]  ;;  %v352_v7 = vld [vmem:[#allocation7 + $0x570] sm:$0xff]  ;;  %v361_v11 = vld [vmem:[#allocation7 + $0x5b8] sm:$0xff] }
  0xec   :  { %3378 = vmatpush1.bf16.msra.mxu0 %v3377_v44  ;;  %v334_v44 = vld [vmem:[#allocation7 + $0x4e0] sm:$0xff]  ;;  %v3407_v2 = vpack.c.bf16 %v351_v61, %v347_v60  ;;  %v355_v8 = vld [vmem:[#allocation7 + $0x588] sm:$0xff]  ;;  %v360_v21 = vld [vmem:[#allocation7 + $0x5b0] sm:$0xff] }
  0xed   :  { %3506 = vmatpush1.bf16.msra.mxu1 %v3505_v45  ;;  %3380 = vmatprep.subr.bf16.mxu0 %v3379_v46  ;;  %v332_v45 = vld [vmem:[#allocation7 + $0x4d0] sm:$0xff]  ;;  %v3527_v46 = vpack.c.bf16 %v337_v40, %v333_v39  ;;  %v3401_v52 = vpack.c.bf16 %v334_v44, %v330_v43  ;;  %v359_v9 = vld [vmem:[#allocation7 + $0x5a8] sm:$0xff]  ;;  %v354_v13 = vld [vmem:[#allocation7 + $0x580] sm:$0xff] }
  0xee   :  { %3508 = vmatprep.subr.bf16.mxu1 %v3507_v50  ;;  %v341_v50 = vld [vmem:[#allocation7 + $0x518] sm:$0xff]  ;;  %v3529_v53 = vpack.c.bf16 %v336_v47, %v332_v45  ;;  %v3411_v15 = vpack.c.bf16 %v359_v9, %v355_v8  ;;  %v363_v22 = vld [vmem:[#allocation7 + $0x5c8] sm:$0xff]  ;;  %v364_v32 = vld [vmem:[#allocation7 + $0x5d0] sm:$0xff] }
  0xef   :  { %v365_v25 = vld [vmem:[#allocation7 + $0x5d8] sm:$0xff]  ;;  %v372_v43 = vld [vmem:[#allocation7 + $0x610] sm:$0xff]  ;;  %v383_v47 = vld [vmem:[#allocation7 + $0x668] sm:$0xff] }
  0xf0   :  { %3382 = vmatpush1.bf16.msra.mxu0 %v3381_v56  ;;  %v342_v56 = vld [vmem:[#allocation7 + $0x520] sm:$0xff]  ;;  %v369_v26 = vld [vmem:[#allocation7 + $0x5f8] sm:$0xff]  ;;  %v376_v45 = vld [vmem:[#allocation7 + $0x630] sm:$0xff] }
  0xf1   :  { %3510 = vmatpush1.bf16.msra.mxu1 %v3509_v57  ;;  %3384 = vmatprep.subr.bf16.mxu0 %v3383_v58  ;;  %v340_v57 = vld [vmem:[#allocation7 + $0x510] sm:$0xff]  ;;  %v3531_v58 = vpack.c.bf16 %v345_v51, %v341_v50  ;;  %v3405_v0 = vpack.c.bf16 %v342_v56, %v338_v55  ;;  %v3543_v33 = vpack.c.bf16 %v369_v26, %v365_v25  ;;  %v373_v37 = vld [vmem:[#allocation7 + $0x618] sm:$0xff] }
  0xf2   :  { %3512 = vmatprep.subr.bf16.mxu1 %v3511_v62  ;;  %v349_v62 = vld [vmem:[#allocation7 + $0x558] sm:$0xff]  ;;  %v3533_v1 = vpack.c.bf16 %v344_v59, %v340_v57  ;;  %v3549_v51 = vpack.c.bf16 %v376_v45, %v372_v43  ;;  %v380_v55 = vld [vmem:[#allocation7 + $0x650] sm:$0xff]  ;;  %v391_v59 = vld [vmem:[#allocation7 + $0x6a8] sm:$0xff] }
  0xf3   :  { %v377_v38 = vld [vmem:[#allocation7 + $0x638] sm:$0xff]  ;;  %v384_v57 = vld [vmem:[#allocation7 + $0x670] sm:$0xff]  ;;  %v419_v43 = vld [vmem:[#allocation7 + $0x788] sm:$0xff] }
  0xf4   :  { %3386 = vmatpush1.bf16.msra.mxu0 %v3385_v4  ;;  %v350_v4 = vld [vmem:[#allocation7 + $0x560] sm:$0xff]  ;;  %v3547_v44 = vpack.c.bf16 %v377_v38, %v373_v37  ;;  %v381_v48 = vld [vmem:[#allocation7 + $0x658] sm:$0xff] }
  0xf5   :  { %3514 = vmatpush1.bf16.msra.mxu1 %v3513_v5  ;;  %3388 = vmatprep.subr.bf16.mxu0 %v3387_v6  ;;  %v348_v5 = vld [vmem:[#allocation7 + $0x550] sm:$0xff]  ;;  %v3535_v6 = vpack.c.bf16 %v353_v63, %v349_v62  ;;  %v3409_v12 = vpack.c.bf16 %v350_v4, %v346_v3  ;;  %v385_v49 = vld [vmem:[#allocation7 + $0x678] sm:$0xff]  ;;  %v3553_v63 = vpack.c.bf16 %v384_v57, %v380_v55  ;;  %v427_v55 = vld [vmem:[#allocation7 + $0x7c8] sm:$0xff] }
  0xf6   :  { %3516 = vmatprep.subr.bf16.mxu1 %v3515_v10  ;;  %v357_v10 = vld [vmem:[#allocation7 + $0x598] sm:$0xff]  ;;  %v3537_v14 = vpack.c.bf16 %v352_v7, %v348_v5  ;;  %v3551_v56 = vpack.c.bf16 %v385_v49, %v381_v48  ;;  %v388_v3 = vld [vmem:[#allocation7 + $0x690] sm:$0xff]  ;;  %v399_v7 = vld [vmem:[#allocation7 + $0x6e8] sm:$0xff] }
  0xf7   :  { %527 = vmatmul.mubr.f32.vlgmr.msra.gmra.mrb[0].mxu0 %v4936_v16  ;;  %v3539_v20 = vpack.c.bf16 %v361_v11, %v357_v10  ;;  %v389_v60 = vld [vmem:[#allocation7 + $0x698] sm:$0xff]  ;;  %v392_v5 = vld [vmem:[#allocation7 + $0x6b0] sm:$0xff] }
  0xf8   :  { %3390 = vmatpush1.bf16.msra.mxu0 %v3389_v17  ;;  %669 = vmatmul.mubr.f32.vlgmr.msra.gmra.mrb[0].mxu1 %v4936_v16  ;;  %v3525_v16 = vpack.c.bf16 %v328_v36, %v324_v34  ;;  %v358_v17 = vld [vmem:[#allocation7 + $0x5a0] sm:$0xff]  ;;  %v368_v34 = vld [vmem:[#allocation7 + $0x5f0] sm:$0xff]  ;;  %v375_v36 = vld [vmem:[#allocation7 + $0x628] sm:$0xff]  ;;  %v3557_v11 = vpack.c.bf16 %v392_v5, %v388_v3 }
  0xf9   :  { %3518 = vmatpush1.bf16.msra.mxu1 %v3517_v18  ;;  %3392 = vmatprep.subr.bf16.mxu0 %v3391_v19  ;;  %v356_v18 = vld [vmem:[#allocation7 + $0x590] sm:$0xff]  ;;  %v4942_v19 = vld [vmem:[#allocation2 + $0x8] sm:$0xff]  ;;  %v3413_v27 = vpack.c.bf16 %v358_v17, %v354_v13  ;;  %v3545_v40 = vpack.c.bf16 %v368_v34, %v364_v32  ;;  %v394_v13 = vld [vmem:[#allocation7 + $0x6c0] sm:$0xff] }
  0xfa   :  { %3520 = vmatprep.subr.bf16.mxu1 %v3519_v23  ;;  %v367_v23 = vld [vmem:[#allocation7 + $0x5e8] sm:$0xff]  ;;  %v459_v24 = vcombine.high %v4942_v19, %v4942_v19  ;;  %v3541_v28 = vpack.c.bf16 %v360_v21, %v356_v18  ;;  %v393_v61 = vld [vmem:[#allocation7 + $0x6b8] sm:$0xff]  ;;  %v400_v18 = vld [vmem:[#allocation7 + $0x6f0] sm:$0xff] }
  0xfb   :  { %v3555_v4 = vpack.c.bf16 %v393_v61, %v389_v60  ;;  %v397_v8 = vld [vmem:[#allocation7 + $0x6d8] sm:$0xff]  ;;  %v407_v21 = vld [vmem:[#allocation7 + $0x728] sm:$0xff] }
  0xfc   :  { %3394 = vmatpush1.bf16.msra.mxu0 %v3393_v29  ;;  %597 = vmatprep.mubr.f32.mxu0 %v459_v24  ;;  %v3415_v29 = vpack.c.bf16 %v367_v23, %v363_v22  ;;  %v401_v9 = vld [vmem:[#allocation7 + $0x6f8] sm:$0xff]  ;;  %v411_v32 = vld [vmem:[#allocation7 + $0x748] sm:$0xff] }
  0xfd   :  { %3522 = vmatpush1.bf16.msra.mxu1 %v3521_v30  ;;  %3396 = vmatprep.subr.bf16.mxu0 %v3395_v31  ;;  %v362_v30 = vld [vmem:[#allocation7 + $0x5c0] sm:$0xff]  ;;  %v3559_v17 = vpack.c.bf16 %v401_v9, %v397_v8  ;;  %v405_v22 = vld [vmem:[#allocation7 + $0x718] sm:$0xff]  ;;  %v747_v3 = vld [vmem:[#allocation10 + $0x8] sm:$0xff] }
  0xfe   :  { %3524 = vmatprep.subr.bf16.mxu1 %v3523_v35  ;;  %v366_v31 = vld [vmem:[#allocation7 + $0x5e0] sm:$0xff]  ;;  %v371_v35 = vld [vmem:[#allocation7 + $0x608] sm:$0xff]  ;;  %739 = vmatprep.mubr.f32.mxu1 %v459_v24  ;;  %v409_v23 = vld [vmem:[#allocation7 + $0x738] sm:$0xff] }
  0xff   :  { %v3417_v39 = vpack.c.bf16 %v366_v31, %v362_v30  ;;  %v3563_v30 = vpack.c.bf16 %v409_v23, %v405_v22  ;;  %v408_v31 = vld [vmem:[#allocation7 + $0x730] sm:$0xff]  ;;  %v413_v34 = vld [vmem:[#allocation7 + $0x758] sm:$0xff] }
 0x100   :  { %3398 = vmatpush1.bf16.msra.mxu0 %v3397_v41  ;;  %v3419_v41 = vpack.c.bf16 %v375_v36, %v371_v35  ;;  %v417_v35 = vld [vmem:[#allocation7 + $0x778] sm:$0xff] }
 0x101   :  { %3526 = vmatpush1.bf16.msra.mxu1 %v3525_v16  ;;  %3400 = vmatprep.subr.bf16.mxu0 %v3399_v42  ;;  %v370_v16 = vld [vmem:[#allocation7 + $0x600] sm:$0xff]  ;;  %v421_v45 = vld [vmem:[#allocation7 + $0x798] sm:$0xff] }
 0x102   :  { %3528 = vmatprep.subr.bf16.mxu1 %v3527_v46  ;;  %v374_v42 = vld [vmem:[#allocation7 + $0x620] sm:$0xff]  ;;  %v379_v46 = vld [vmem:[#allocation7 + $0x648] sm:$0xff]  ;;  %v429_v57 = vld [vmem:[#allocation7 + $0x7d8] sm:$0xff] }
 0x103   :  { %v3421_v50 = vpack.c.bf16 %v374_v42, %v370_v16  ;;  %v3567_v16 = vpack.c.bf16 %v417_v35, %v413_v34  ;;  %v416_v42 = vld [vmem:[#allocation7 + $0x770] sm:$0xff]  ;;  %v749_v5 = vld [vmem:[#allocation10 + $0x18] sm:$0xff] }
 0x104   :  { %3402 = vmatpush1.bf16.msra.mxu0 %v3401_v52  ;;  %v3423_v52 = vpack.c.bf16 %v383_v47, %v379_v46  ;;  %v425_v46 = vld [vmem:[#allocation7 + $0x7b8] sm:$0xff] }
 0x105   :  { %3530 = vmatpush1.bf16.msra.mxu1 %v3529_v53  ;;  %3404 = vmatprep.subr.bf16.mxu0 %v3403_v54  ;;  %v378_v53 = vld [vmem:[#allocation7 + $0x640] sm:$0xff] }
 0x106   :  { %3532 = vmatprep.subr.bf16.mxu1 %v3531_v58  ;;  %v382_v54 = vld [vmem:[#allocation7 + $0x660] sm:$0xff]  ;;  %v387_v58 = vld [vmem:[#allocation7 + $0x688] sm:$0xff] }
 0x107   :  { %v3425_v62 = vpack.c.bf16 %v382_v54, %v378_v53  ;;  %v3571_v53 = vpack.c.bf16 %v425_v46, %v421_v45  ;;  %v424_v54 = vld [vmem:[#allocation7 + $0x7b0] sm:$0xff] }
 0x108   :  { %3406 = vmatpush1.bf16.msra.mxu0 %v3405_v0  ;;  %v3427_v0 = vpack.c.bf16 %v391_v59, %v387_v58  ;;  %v433_v58 = vld [vmem:[#allocation7 + $0x7f8] sm:$0xff] }
 0x109   :  { %3534 = vmatpush1.bf16.msra.mxu1 %v3533_v1  ;;  %3408 = vmatprep.subr.bf16.mxu0 %v3407_v2  ;;  %v386_v1 = vld [vmem:[#allocation7 + $0x680] sm:$0xff] }
 0x10a   :  { %3536 = vmatprep.subr.bf16.mxu1 %v3535_v6  ;;  %v390_v2 = vld [vmem:[#allocation7 + $0x6a0] sm:$0xff]  ;;  %v395_v6 = vld [vmem:[#allocation7 + $0x6c8] sm:$0xff] }
 0x10b   :  { %v3429_v10 = vpack.c.bf16 %v390_v2, %v386_v1  ;;  %v3575_v1 = vpack.c.bf16 %v433_v58, %v429_v57  ;;  %v432_v2 = vld [vmem:[#allocation7 + $0x7f0] sm:$0xff] }
 0x10c   :  { %3410 = vmatpush1.bf16.msra.mxu0 %v3409_v12  ;;  %v3431_v12 = vpack.c.bf16 %v399_v7, %v395_v6  ;;  %v757_v6 = vld [vmem:[#allocation10 + $0x58] sm:$0xff] }
 0x10d   :  { %3538 = vmatpush1.bf16.msra.mxu1 %v3537_v14  ;;  %3412 = vmatprep.subr.bf16.mxu0 %v3411_v15  ;;  %v398_v14 = vld [vmem:[#allocation7 + $0x6e0] sm:$0xff]  ;;  %v396_v15 = vld [vmem:[#allocation7 + $0x6d0] sm:$0xff] }
 0x10e   :  { %3540 = vmatprep.subr.bf16.mxu1 %v3539_v20  ;;  %v403_v20 = vld [vmem:[#allocation7 + $0x708] sm:$0xff]  ;;  %v3433_v24 = vpack.c.bf16 %v398_v14, %v394_v13  ;;  %v3561_v25 = vpack.c.bf16 %v400_v18, %v396_v15  ;;  %v3707_v13 = vpack.c.bf16 %v757_v6, %v749_v5  ;;  %v756_v14 = vld [vmem:[#allocation10 + $0x50] sm:$0xff]  ;;  %v765_v18 = vld [vmem:[#allocation10 + $0x98] sm:$0xff] }
 0x10f   :  { %v3435_v26 = vpack.c.bf16 %v407_v21, %v403_v20  ;;  %v763_v15 = vld [vmem:[#allocation10 + $0x88] sm:$0xff]  ;;  %v773_v20 = vld [vmem:[#allocation10 + $0xd8] sm:$0xff] }
 0x110   :  { %3414 = vmatpush1.bf16.msra.mxu0 %v3413_v27  ;;  %v402_v27 = vld [vmem:[#allocation7 + $0x700] sm:$0xff] }
 0x111   :  { %3542 = vmatpush1.bf16.msra.mxu1 %v3541_v28  ;;  %3416 = vmatprep.subr.bf16.mxu0 %v3415_v29  ;;  %v406_v28 = vld [vmem:[#allocation7 + $0x720] sm:$0xff]  ;;  %v404_v29 = vld [vmem:[#allocation7 + $0x710] sm:$0xff] }
 0x112   :  { %3544 = vmatprep.subr.bf16.mxu1 %v3543_v33  ;;  %v415_v33 = vld [vmem:[#allocation7 + $0x768] sm:$0xff]  ;;  %v3437_v36 = vpack.c.bf16 %v406_v28, %v402_v27  ;;  %v3565_v37 = vpack.c.bf16 %v408_v31, %v404_v29  ;;  %v3711_v27 = vpack.c.bf16 %v773_v20, %v765_v18  ;;  %v772_v28 = vld [vmem:[#allocation10 + $0xd0] sm:$0xff]  ;;  %v781_v31 = vld [vmem:[#allocation10 + $0x118] sm:$0xff] }
 0x113   :  { %v3439_v38 = vpack.c.bf16 %v415_v33, %v411_v32  ;;  %v779_v29 = vld [vmem:[#allocation10 + $0x108] sm:$0xff]  ;;  %v789_v32 = vld [vmem:[#allocation10 + $0x158] sm:$0xff] }
 0x114   :  { %3418 = vmatpush1.bf16.msra.mxu0 %v3417_v39  ;;  %v410_v39 = vld [vmem:[#allocation7 + $0x740] sm:$0xff]  ;;  %v163_v33 = vld [vmem:[#allocation5 + $0x8] sm:$0xff] }
 0x115   :  { %3546 = vmatpush1.bf16.msra.mxu1 %v3545_v40  ;;  %3420 = vmatprep.subr.bf16.mxu0 %v3419_v41  ;;  %v414_v40 = vld [vmem:[#allocation7 + $0x760] sm:$0xff]  ;;  %v412_v41 = vld [vmem:[#allocation7 + $0x750] sm:$0xff] }
 0x116   :  { %3548 = vmatprep.subr.bf16.mxu1 %v3547_v44  ;;  %v423_v44 = vld [vmem:[#allocation7 + $0x7a8] sm:$0xff]  ;;  %v3441_v47 = vpack.c.bf16 %v414_v40, %v410_v39  ;;  %v3569_v48 = vpack.c.bf16 %v416_v42, %v412_v41  ;;  %v780_v39 = vld [vmem:[#allocation10 + $0x110] sm:$0xff]  ;;  %v3715_v40 = vpack.c.bf16 %v789_v32, %v781_v31 }
 0x117   :  { %v3443_v49 = vpack.c.bf16 %v423_v44, %v419_v43  ;;  %v788_v41 = vld [vmem:[#allocation10 + $0x150] sm:$0xff]  ;;  %v803_v42 = vld [vmem:[#allocation10 + $0x1c8] sm:$0xff]  ;;  %v797_v43 = vld [vmem:[#allocation10 + $0x198] sm:$0xff] }
 0x118   :  { %3422 = vmatpush1.bf16.msra.mxu0 %v3421_v50  ;;  %v418_v50 = vld [vmem:[#allocation7 + $0x780] sm:$0xff]  ;;  %v3717_v45 = vpack.c.bf16 %v788_v41, %v780_v39  ;;  %v883_v39 = vld [vmem:[#allocation10 + $0x448] sm:$0xff] }
 0x119   :  { %3550 = vmatpush1.bf16.msra.mxu1 %v3549_v51  ;;  %3424 = vmatprep.subr.bf16.mxu0 %v3423_v52  ;;  %v422_v51 = vld [vmem:[#allocation7 + $0x7a0] sm:$0xff]  ;;  %v420_v52 = vld [vmem:[#allocation7 + $0x790] sm:$0xff] }
 0x11a   :  { %3552 = vmatprep.subr.bf16.mxu1 %v3551_v56  ;;  %v431_v56 = vld [vmem:[#allocation7 + $0x7e8] sm:$0xff]  ;;  %v3445_v59 = vpack.c.bf16 %v422_v51, %v418_v50  ;;  %v3573_v60 = vpack.c.bf16 %v424_v54, %v420_v52  ;;  %v805_v44 = vld [vmem:[#allocation10 + $0x1d8] sm:$0xff]  ;;  %v804_v51 = vld [vmem:[#allocation10 + $0x1d0] sm:$0xff] }
 0x11b   :  { %v3447_v61 = vpack.c.bf16 %v431_v56, %v427_v55  ;;  %v3719_v50 = vpack.c.bf16 %v805_v44, %v797_v43  ;;  %v811_v52 = vld [vmem:[#allocation10 + $0x208] sm:$0xff]  ;;  %v813_v54 = vld [vmem:[#allocation10 + $0x218] sm:$0xff]  ;;  %v874_v44 = vld [vmem:[#allocation10 + $0x400] sm:$0xff] }
 0x11c   :  { %3426 = vmatpush1.bf16.msra.mxu0 %v3425_v62  ;;  %v426_v62 = vld [vmem:[#allocation7 + $0x7c0] sm:$0xff] }
 0x11d   :  { %3554 = vmatpush1.bf16.msra.mxu1 %v3553_v63  ;;  %3428 = vmatprep.subr.bf16.mxu0 %v3427_v0  ;;  %v430_v63 = vld [vmem:[#allocation7 + $0x7e0] sm:$0xff]  ;;  %v428_v0 = vld [vmem:[#allocation7 + $0x7d0] sm:$0xff] }
 0x11e   :  { %3556 = vmatprep.subr.bf16.mxu1 %v3555_v4  ;;  %v755_v4 = vld [vmem:[#allocation10 + $0x48] sm:$0xff]  ;;  %v3449_v7 = vpack.c.bf16 %v430_v63, %v426_v62  ;;  %v3577_v8 = vpack.c.bf16 %v432_v2, %v428_v0  ;;  %v821_v55 = vld [vmem:[#allocation10 + $0x258] sm:$0xff]  ;;  %v820_v63 = vld [vmem:[#allocation10 + $0x250] sm:$0xff] }
 0x11f   :  { %v3579_v9 = vpack.c.bf16 %v755_v4, %v747_v3  ;;  %v3723_v62 = vpack.c.bf16 %v821_v55, %v813_v54  ;;  %v827_v0 = vld [vmem:[#allocation10 + $0x288] sm:$0xff]  ;;  %v829_v2 = vld [vmem:[#allocation10 + $0x298] sm:$0xff]  ;;  %v890_v55 = vld [vmem:[#allocation10 + $0x480] sm:$0xff] }
 0x120   :  { %3430 = vmatpush1.bf16.msra.mxu0 %v3429_v10  ;;  %v746_v10 = vld [vmem:[#allocation10] sm:$0xff]  ;;  %v837_v3 = vld [vmem:[#allocation10 + $0x2d8] sm:$0xff] }
 0x121   :  { %3558 = vmatpush1.bf16.msra.mxu1 %v3557_v11  ;;  %3432 = vmatprep.subr.bf16.mxu0 %v3431_v12  ;;  %v754_v11 = vld [vmem:[#allocation10 + $0x40] sm:$0xff]  ;;  %v748_v12 = vld [vmem:[#allocation10 + $0x10] sm:$0xff]  ;;  %v885_v41 = vld [vmem:[#allocation10 + $0x458] sm:$0xff] }
 0x122   :  { %3560 = vmatprep.subr.bf16.mxu1 %v3559_v17  ;;  %v771_v17 = vld [vmem:[#allocation10 + $0xc8] sm:$0xff]  ;;  %v3581_v21 = vpack.c.bf16 %v754_v11, %v746_v10  ;;  %v3709_v22 = vpack.c.bf16 %v756_v14, %v748_v12  ;;  %v3727_v10 = vpack.c.bf16 %v837_v3, %v829_v2  ;;  %v836_v11 = vld [vmem:[#allocation10 + $0x2d0] sm:$0xff]  ;;  %v845_v14 = vld [vmem:[#allocation10 + $0x318] sm:$0xff] }
 0x123   :  { %v3583_v23 = vpack.c.bf16 %v771_v17, %v763_v15  ;;  %v843_v12 = vld [vmem:[#allocation10 + $0x308] sm:$0xff]  ;;  %v853_v15 = vld [vmem:[#allocation10 + $0x358] sm:$0xff]  ;;  %v906_v3 = vld [vmem:[#allocation10 + $0x500] sm:$0xff] }
 0x124   :  { %3434 = vmatpush1.bf16.msra.mxu0 %v3433_v24  ;;  %v762_v24 = vld [vmem:[#allocation10 + $0x80] sm:$0xff] }
 0x125   :  { %3562 = vmatpush1.bf16.msra.mxu1 %v3561_v25  ;;  %3436 = vmatprep.subr.bf16.mxu0 %v3435_v26  ;;  %v770_v25 = vld [vmem:[#allocation10 + $0xc0] sm:$0xff]  ;;  %v764_v26 = vld [vmem:[#allocation10 + $0x90] sm:$0xff] }
 0x126   :  { %3564 = vmatprep.subr.bf16.mxu1 %v3563_v30  ;;  %v787_v30 = vld [vmem:[#allocation10 + $0x148] sm:$0xff]  ;;  %v3585_v34 = vpack.c.bf16 %v770_v25, %v762_v24  ;;  %v3713_v35 = vpack.c.bf16 %v772_v28, %v764_v26  ;;  %v3731_v24 = vpack.c.bf16 %v853_v15, %v845_v14  ;;  %v852_v25 = vld [vmem:[#allocation10 + $0x350] sm:$0xff]  ;;  %v861_v28 = vld [vmem:[#allocation10 + $0x398] sm:$0xff] }
 0x127   :  { %v859_v26 = vld [vmem:[#allocation10 + $0x388] sm:$0xff]  ;;  %v922_v15 = vld [vmem:[#allocation10 + $0x580] sm:$0xff] }
 0x128   :  { %3438 = vmatpush1.bf16.msra.mxu0 %v3437_v36  ;;  %v3587_v36 = vpack.c.bf16 %v787_v30, %v779_v29  ;;  %v869_v29 = vld [vmem:[#allocation10 + $0x3d8] sm:$0xff] }
 0x129   :  { %3566 = vmatpush1.bf16.msra.mxu1 %v3565_v37  ;;  %3440 = vmatprep.subr.bf16.mxu0 %v3439_v38  ;;  %v778_v37 = vld [vmem:[#allocation10 + $0x100] sm:$0xff] }
 0x12a   :  { %3568 = vmatprep.subr.bf16.mxu1 %v3567_v16  ;;  %v786_v38 = vld [vmem:[#allocation10 + $0x140] sm:$0xff]  ;;  %v795_v16 = vld [vmem:[#allocation10 + $0x188] sm:$0xff] }
 0x12b   :  { %v3591_v46 = vpack.c.bf16 %v803_v42, %v795_v16 }
 0x12c   :  { %3442 = vmatpush1.bf16.msra.mxu0 %v3441_v47  ;;  %v794_v47 = vld [vmem:[#allocation10 + $0x180] sm:$0xff] }
 0x12d   :  { %3570 = vmatpush1.bf16.msra.mxu1 %v3569_v48  ;;  %3444 = vmatprep.subr.bf16.mxu0 %v3443_v49  ;;  %v802_v48 = vld [vmem:[#allocation10 + $0x1c0] sm:$0xff]  ;;  %v796_v49 = vld [vmem:[#allocation10 + $0x190] sm:$0xff] }
 0x12e   :  { %3572 = vmatprep.subr.bf16.mxu1 %v3571_v53  ;;  %v819_v53 = vld [vmem:[#allocation10 + $0x248] sm:$0xff]  ;;  %v3593_v56 = vpack.c.bf16 %v802_v48, %v794_v47  ;;  %v3721_v57 = vpack.c.bf16 %v804_v51, %v796_v49  ;;  %v884_v47 = vld [vmem:[#allocation10 + $0x450] sm:$0xff]  ;;  %v901_v51 = vld [vmem:[#allocation10 + $0x4d8] sm:$0xff] }
 0x12f   :  { %v3595_v58 = vpack.c.bf16 %v819_v53, %v811_v52  ;;  %v891_v48 = vld [vmem:[#allocation10 + $0x488] sm:$0xff] }
 0x130   :  { %3446 = vmatpush1.bf16.msra.mxu0 %v3445_v59  ;;  %v810_v59 = vld [vmem:[#allocation10 + $0x200] sm:$0xff]  ;;  %v899_v49 = vld [vmem:[#allocation10 + $0x4c8] sm:$0xff] }
 0x131   :  { %3574 = vmatpush1.bf16.msra.mxu1 %v3573_v60  ;;  %3448 = vmatprep.subr.bf16.mxu0 %v3447_v61  ;;  %v818_v60 = vld [vmem:[#allocation10 + $0x240] sm:$0xff]  ;;  %v812_v61 = vld [vmem:[#allocation10 + $0x210] sm:$0xff]  ;;  %v3615_v54 = vpack.c.bf16 %v899_v49, %v891_v48 }
 0x132   :  { %3576 = vmatprep.subr.bf16.mxu1 %v3575_v1  ;;  %v835_v1 = vld [vmem:[#allocation10 + $0x2c8] sm:$0xff]  ;;  %v3597_v4 = vpack.c.bf16 %v818_v60, %v810_v59  ;;  %v3725_v5 = vpack.c.bf16 %v820_v63, %v812_v61  ;;  %v900_v59 = vld [vmem:[#allocation10 + $0x4d0] sm:$0xff]  ;;  %v917_v63 = vld [vmem:[#allocation10 + $0x558] sm:$0xff] }
 0x133   :  { %v3599_v6 = vpack.c.bf16 %v835_v1, %v827_v0  ;;  %v907_v60 = vld [vmem:[#allocation10 + $0x508] sm:$0xff] }
 0x134   :  { %3450 = vmatpush1.bf16.msra.mxu0 %v3449_v7  ;;  %v826_v7 = vld [vmem:[#allocation10 + $0x280] sm:$0xff]  ;;  %v915_v61 = vld [vmem:[#allocation10 + $0x548] sm:$0xff] }
 0x135   :  { %3578 = vmatpush1.bf16.msra.mxu1 %v3577_v8  ;;  %3580 = vmatprep.subr.bf16.mxu0 %v3579_v9  ;;  %v834_v8 = vld [vmem:[#allocation10 + $0x2c0] sm:$0xff]  ;;  %v828_v9 = vld [vmem:[#allocation10 + $0x290] sm:$0xff]  ;;  %v3619_v2 = vpack.c.bf16 %v915_v61, %v907_v60 }
 0x136   :  { %3708 = vmatprep.subr.bf16.mxu1 %v3707_v13  ;;  %v851_v13 = vld [vmem:[#allocation10 + $0x348] sm:$0xff]  ;;  %v3601_v17 = vpack.c.bf16 %v834_v8, %v826_v7  ;;  %v3729_v18 = vpack.c.bf16 %v836_v11, %v828_v9  ;;  %v916_v7 = vld [vmem:[#allocation10 + $0x550] sm:$0xff]  ;;  %v933_v11 = vld [vmem:[#allocation10 + $0x5d8] sm:$0xff] }
 0x137   :  { %598 = vmatmul.mubr.f32.vlgmr.msra.gmra.mrb[0].mxu0 %v4942_v19  ;;  %v3603_v20 = vpack.c.bf16 %v851_v13, %v843_v12  ;;  %v923_v8 = vld [vmem:[#allocation10 + $0x588] sm:$0xff] }
 0x138   :  { %740 = vmatmul.mubr.f32.vlgmr.msra.gmra.mrb[0].mxu1 %v4942_v19  ;;  %3582 = vmatpush1.bf16.msra.mxu0 %v3581_v21  ;;  %v3589_v19 = vpack.c.bf16 %v786_v38, %v778_v37  ;;  %v842_v21 = vld [vmem:[#allocation10 + $0x300] sm:$0xff]  ;;  %v868_v37 = vld [vmem:[#allocation10 + $0x3d0] sm:$0xff]  ;;  %v875_v38 = vld [vmem:[#allocation10 + $0x408] sm:$0xff] }
 0x139   :  { %3710 = vmatpush1.bf16.msra.mxu1 %v3709_v22  ;;  %3584 = vmatprep.subr.bf16.mxu0 %v3583_v23  ;;  %v850_v22 = vld [vmem:[#allocation10 + $0x340] sm:$0xff]  ;;  %v844_v23 = vld [vmem:[#allocation10 + $0x310] sm:$0xff]  ;;  %v3611_v43 = vpack.c.bf16 %v883_v39, %v875_v38  ;;  %v931_v9 = vld [vmem:[#allocation10 + $0x5c8] sm:$0xff] }
 0x13a   :  { %3712 = vmatprep.subr.bf16.mxu1 %v3711_v27  ;;  %1364 = vmatprep.mubr.f32.mxu0 %v163_v33  ;;  %v867_v27 = vld [vmem:[#allocation10 + $0x3c8] sm:$0xff]  ;;  %v3605_v30 = vpack.c.bf16 %v850_v22, %v842_v21  ;;  %v3733_v31 = vpack.c.bf16 %v852_v25, %v844_v23  ;;  %v3623_v14 = vpack.c.bf16 %v931_v9, %v923_v8  ;;  %v932_v21 = vld [vmem:[#allocation10 + $0x5d0] sm:$0xff]  ;;  %v949_v25 = vld [vmem:[#allocation10 + $0x658] sm:$0xff] }
 0x13b   :  { %1542 = vmatprep.mubr.f32.mxu1 %v163_v33  ;;  %v3607_v32 = vpack.c.bf16 %v867_v27, %v859_v26  ;;  %v858_v33 = vld [vmem:[#allocation10 + $0x380] sm:$0xff]  ;;  %v939_v22 = vld [vmem:[#allocation10 + $0x608] sm:$0xff] }
 0x13c   :  { %3586 = vmatpush1.bf16.msra.mxu0 %v3585_v34  ;;  %v866_v34 = vld [vmem:[#allocation10 + $0x3c0] sm:$0xff]  ;;  %v947_v23 = vld [vmem:[#allocation10 + $0x648] sm:$0xff] }
 0x13d   :  { %3714 = vmatpush1.bf16.msra.mxu1 %v3713_v35  ;;  %3588 = vmatprep.subr.bf16.mxu0 %v3587_v36  ;;  %v860_v35 = vld [vmem:[#allocation10 + $0x390] sm:$0xff]  ;;  %v3735_v36 = vpack.c.bf16 %v869_v29, %v861_v28  ;;  %v3609_v16 = vpack.c.bf16 %v866_v34, %v858_v33  ;;  %v3627_v28 = vpack.c.bf16 %v947_v23, %v939_v22  ;;  %v938_v29 = vld [vmem:[#allocation10 + $0x600] sm:$0xff]  ;;  %v955_v34 = vld [vmem:[#allocation10 + $0x688] sm:$0xff] }
 0x13e   :  { %3716 = vmatprep.subr.bf16.mxu1 %v3715_v40  ;;  %v877_v40 = vld [vmem:[#allocation10 + $0x418] sm:$0xff]  ;;  %v3737_v42 = vpack.c.bf16 %v868_v37, %v860_v35  ;;  %v948_v33 = vld [vmem:[#allocation10 + $0x650] sm:$0xff]  ;;  %v963_v35 = vld [vmem:[#allocation10 + $0x6c8] sm:$0xff] }
 0x13f   :  { %v965_v37 = vld [vmem:[#allocation10 + $0x6d8] sm:$0xff] }
 0x140   :  { %3590 = vmatpush1.bf16.msra.mxu0 %v3589_v19  ;;  %v882_v19 = vld [vmem:[#allocation10 + $0x440] sm:$0xff] }
 0x141   :  { %3718 = vmatpush1.bf16.msra.mxu1 %v3717_v45  ;;  %3592 = vmatprep.subr.bf16.mxu0 %v3591_v46  ;;  %v876_v45 = vld [vmem:[#allocation10 + $0x410] sm:$0xff]  ;;  %v3739_v46 = vpack.c.bf16 %v885_v41, %v877_v40  ;;  %v3613_v52 = vpack.c.bf16 %v882_v19, %v874_v44  ;;  %v3631_v40 = vpack.c.bf16 %v963_v35, %v955_v34  ;;  %v954_v41 = vld [vmem:[#allocation10 + $0x680] sm:$0xff]  ;;  %v971_v19 = vld [vmem:[#allocation10 + $0x708] sm:$0xff] }
 0x142   :  { %3720 = vmatprep.subr.bf16.mxu1 %v3719_v50  ;;  %v893_v50 = vld [vmem:[#allocation10 + $0x498] sm:$0xff]  ;;  %v3741_v53 = vpack.c.bf16 %v884_v47, %v876_v45  ;;  %v964_v44 = vld [vmem:[#allocation10 + $0x6d0] sm:$0xff]  ;;  %v979_v45 = vld [vmem:[#allocation10 + $0x748] sm:$0xff] }
 0x143   :  { %v981_v47 = vld [vmem:[#allocation10 + $0x758] sm:$0xff]  ;;  %v167_v35 = vld [vmem:[#allocation5 + $0x28] sm:$0xff] }
 0x144   :  { %3594 = vmatpush1.bf16.msra.mxu0 %v3593_v56  ;;  %v898_v56 = vld [vmem:[#allocation10 + $0x4c0] sm:$0xff]  ;;  %v1045_v34 = vld [vmem:[#allocation10 + $0x958] sm:$0xff] }
 0x145   :  { %3722 = vmatpush1.bf16.msra.mxu1 %v3721_v57  ;;  %3596 = vmatprep.subr.bf16.mxu0 %v3595_v58  ;;  %v892_v57 = vld [vmem:[#allocation10 + $0x490] sm:$0xff]  ;;  %v3743_v58 = vpack.c.bf16 %v901_v51, %v893_v50  ;;  %v3617_v0 = vpack.c.bf16 %v898_v56, %v890_v55  ;;  %v3635_v50 = vpack.c.bf16 %v979_v45, %v971_v19  ;;  %v970_v51 = vld [vmem:[#allocation10 + $0x700] sm:$0xff]  ;;  %v987_v56 = vld [vmem:[#allocation10 + $0x788] sm:$0xff] }
 0x146   :  { %3724 = vmatprep.subr.bf16.mxu1 %v3723_v62  ;;  %v909_v62 = vld [vmem:[#allocation10 + $0x518] sm:$0xff]  ;;  %v3745_v1 = vpack.c.bf16 %v900_v59, %v892_v57  ;;  %v980_v55 = vld [vmem:[#allocation10 + $0x750] sm:$0xff]  ;;  %v995_v57 = vld [vmem:[#allocation10 + $0x7c8] sm:$0xff] }
 0x147   :  { %v997_v59 = vld [vmem:[#allocation10 + $0x7d8] sm:$0xff]  ;;  %v1059_v19 = vld [vmem:[#allocation10 + $0x9c8] sm:$0xff] }
 0x148   :  { %3598 = vmatpush1.bf16.msra.mxu0 %v3597_v4  ;;  %v914_v4 = vld [vmem:[#allocation10 + $0x540] sm:$0xff]  ;;  %v1053_v45 = vld [vmem:[#allocation10 + $0x998] sm:$0xff] }
 0x149   :  { %3726 = vmatpush1.bf16.msra.mxu1 %v3725_v5  ;;  %3600 = vmatprep.subr.bf16.mxu0 %v3599_v6  ;;  %v908_v5 = vld [vmem:[#allocation10 + $0x510] sm:$0xff]  ;;  %v3747_v6 = vpack.c.bf16 %v917_v63, %v909_v62  ;;  %v3621_v12 = vpack.c.bf16 %v914_v4, %v906_v3  ;;  %v3639_v62 = vpack.c.bf16 %v995_v57, %v987_v56  ;;  %v986_v63 = vld [vmem:[#allocation10 + $0x780] sm:$0xff]  ;;  %v1003_v4 = vld [vmem:[#allocation10 + $0x808] sm:$0xff] }
 0x14a   :  { %3728 = vmatprep.subr.bf16.mxu1 %v3727_v10  ;;  %v925_v10 = vld [vmem:[#allocation10 + $0x598] sm:$0xff]  ;;  %v3749_v13 = vpack.c.bf16 %v916_v7, %v908_v5  ;;  %v996_v3 = vld [vmem:[#allocation10 + $0x7d0] sm:$0xff]  ;;  %v1011_v5 = vld [vmem:[#allocation10 + $0x848] sm:$0xff] }
 0x14b   :  { %v1013_v7 = vld [vmem:[#allocation10 + $0x858] sm:$0xff]  ;;  %v1060_v56 = vld [vmem:[#allocation10 + $0x9d0] sm:$0xff]  ;;  %v1067_v57 = vld [vmem:[#allocation10 + $0xa08] sm:$0xff] }
 0x14c   :  { %3602 = vmatpush1.bf16.msra.mxu0 %v3601_v17  ;;  %v930_v17 = vld [vmem:[#allocation10 + $0x5c0] sm:$0xff] }
 0x14d   :  { %3730 = vmatpush1.bf16.msra.mxu1 %v3729_v18  ;;  %3604 = vmatprep.subr.bf16.mxu0 %v3603_v20  ;;  %v924_v18 = vld [vmem:[#allocation10 + $0x590] sm:$0xff]  ;;  %v3751_v20 = vpack.c.bf16 %v933_v11, %v925_v10  ;;  %v3625_v26 = vpack.c.bf16 %v930_v17, %v922_v15  ;;  %v3643_v10 = vpack.c.bf16 %v1011_v5, %v1003_v4  ;;  %v1002_v11 = vld [vmem:[#allocation10 + $0x800] sm:$0xff]  ;;  %v1019_v17 = vld [vmem:[#allocation10 + $0x888] sm:$0xff] }
 0x14e   :  { %3732 = vmatprep.subr.bf16.mxu1 %v3731_v24  ;;  %v941_v24 = vld [vmem:[#allocation10 + $0x618] sm:$0xff]  ;;  %v3753_v27 = vpack.c.bf16 %v932_v21, %v924_v18  ;;  %v1012_v15 = vld [vmem:[#allocation10 + $0x850] sm:$0xff]  ;;  %v1027_v18 = vld [vmem:[#allocation10 + $0x8c8] sm:$0xff] }
 0x14f   :  { %v1029_v21 = vld [vmem:[#allocation10 + $0x8d8] sm:$0xff]  ;;  %v1068_v4 = vld [vmem:[#allocation10 + $0xa10] sm:$0xff] }
 0x150   :  { %3606 = vmatpush1.bf16.msra.mxu0 %v3605_v30  ;;  %v946_v30 = vld [vmem:[#allocation10 + $0x640] sm:$0xff] }
 0x151   :  { %3734 = vmatpush1.bf16.msra.mxu1 %v3733_v31  ;;  %3608 = vmatprep.subr.bf16.mxu0 %v3607_v32  ;;  %v940_v31 = vld [vmem:[#allocation10 + $0x610] sm:$0xff]  ;;  %v3755_v32 = vpack.c.bf16 %v949_v25, %v941_v24  ;;  %v3629_v38 = vpack.c.bf16 %v946_v30, %v938_v29  ;;  %v162_v22 = vld [vmem:[#allocation5] sm:$0xff]  ;;  %v3647_v25 = vpack.c.bf16 %v1027_v18, %v1019_v17 }
 0x152   :  { %3736 = vmatprep.subr.bf16.mxu1 %v3735_v36  ;;  %v957_v36 = vld [vmem:[#allocation10 + $0x698] sm:$0xff]  ;;  %v3757_v39 = vpack.c.bf16 %v948_v33, %v940_v31  ;;  %v1028_v30 = vld [vmem:[#allocation10 + $0x8d0] sm:$0xff]  ;;  %v1035_v31 = vld [vmem:[#allocation10 + $0x908] sm:$0xff] }
 0x153   :  { %v1037_v33 = vld [vmem:[#allocation10 + $0x918] sm:$0xff]  ;;  %v1090_v17 = vld [vmem:[#allocation10 + $0xac0] sm:$0xff]  ;;  %v1084_v18 = vld [vmem:[#allocation10 + $0xa90] sm:$0xff] }
 0x154   :  { %3610 = vmatpush1.bf16.msra.mxu0 %v3609_v16  ;;  %v962_v16 = vld [vmem:[#allocation10 + $0x6c0] sm:$0xff] }
 0x155   :  { %3738 = vmatpush1.bf16.msra.mxu1 %v3737_v42  ;;  %3612 = vmatprep.subr.bf16.mxu0 %v3611_v43  ;;  %v956_v42 = vld [vmem:[#allocation10 + $0x690] sm:$0xff]  ;;  %v3759_v43 = vpack.c.bf16 %v965_v37, %v957_v36  ;;  %v3633_v48 = vpack.c.bf16 %v962_v16, %v954_v41  ;;  %v166_v37 = vld [vmem:[#allocation5 + $0x20] sm:$0xff] }
 0x156   :  { %3740 = vmatprep.subr.bf16.mxu1 %v3739_v46  ;;  %v973_v46 = vld [vmem:[#allocation10 + $0x718] sm:$0xff]  ;;  %v3761_v49 = vpack.c.bf16 %v964_v44, %v956_v42  ;;  %v1042_v41 = vld [vmem:[#allocation10 + $0x940] sm:$0xff]  ;;  %v1036_v16 = vld [vmem:[#allocation10 + $0x910] sm:$0xff]  ;;  %v3779_v42 = vpack.c.bf16 %v1045_v34, %v1037_v33 }
 0x157   :  { %v1051_v44 = vld [vmem:[#allocation10 + $0x988] sm:$0xff]  ;;  %v1108_v33 = vld [vmem:[#allocation10 + $0xb50] sm:$0xff] }
 0x158   :  { %3614 = vmatpush1.bf16.msra.mxu0 %v3613_v52  ;;  %v978_v52 = vld [vmem:[#allocation10 + $0x740] sm:$0xff]  ;;  %v1115_v34 = vld [vmem:[#allocation10 + $0xb88] sm:$0xff] }
 0x159   :  { %3742 = vmatpush1.bf16.msra.mxu1 %v3741_v53  ;;  %3616 = vmatprep.subr.bf16.mxu0 %v3615_v54  ;;  %v972_v53 = vld [vmem:[#allocation10 + $0x710] sm:$0xff]  ;;  %v3763_v54 = vpack.c.bf16 %v981_v47, %v973_v46  ;;  %v3637_v60 = vpack.c.bf16 %v978_v52, %v970_v51  ;;  %v1061_v46 = vld [vmem:[#allocation10 + $0x9d8] sm:$0xff]  ;;  %v171_v47 = vld [vmem:[#allocation5 + $0x48] sm:$0xff]  ;;  %v3655_v51 = vpack.c.bf16 %v1059_v19, %v1051_v44 }
 0x15a   :  { %3744 = vmatprep.subr.bf16.mxu1 %v3743_v58  ;;  %v989_v58 = vld [vmem:[#allocation10 + $0x798] sm:$0xff]  ;;  %v3765_v61 = vpack.c.bf16 %v980_v55, %v972_v53  ;;  %v1050_v52 = vld [vmem:[#allocation10 + $0x980] sm:$0xff]  ;;  %v3783_v55 = vpack.c.bf16 %v1061_v46, %v1053_v45  ;;  %v1124_v44 = vld [vmem:[#allocation10 + $0xbd0] sm:$0xff] }
 0x15b   :  { %v1058_v53 = vld [vmem:[#allocation10 + $0x9c0] sm:$0xff]  ;;  %v1131_v19 = vld [vmem:[#allocation10 + $0xc08] sm:$0xff]  ;;  %v1133_v46 = vld [vmem:[#allocation10 + $0xc18] sm:$0xff] }
 0x15c   :  { %3618 = vmatpush1.bf16.msra.mxu0 %v3617_v0  ;;  %v994_v0 = vld [vmem:[#allocation10 + $0x7c0] sm:$0xff]  ;;  %v1139_v45 = vld [vmem:[#allocation10 + $0xc48] sm:$0xff] }
 0x15d   :  { %3746 = vmatpush1.bf16.msra.mxu1 %v3745_v1  ;;  %3620 = vmatprep.subr.bf16.mxu0 %v3619_v2  ;;  %v988_v1 = vld [vmem:[#allocation10 + $0x790] sm:$0xff]  ;;  %v3767_v2 = vpack.c.bf16 %v997_v59, %v989_v58  ;;  %v3641_v8 = vpack.c.bf16 %v994_v0, %v986_v63  ;;  %v1075_v58 = vld [vmem:[#allocation10 + $0xa48] sm:$0xff]  ;;  %v1069_v59 = vld [vmem:[#allocation10 + $0xa18] sm:$0xff] }
 0x15e   :  { %3748 = vmatprep.subr.bf16.mxu1 %v3747_v6  ;;  %v1005_v6 = vld [vmem:[#allocation10 + $0x818] sm:$0xff]  ;;  %v3769_v9 = vpack.c.bf16 %v996_v3, %v988_v1  ;;  %v3659_v1 = vpack.c.bf16 %v1075_v58, %v1067_v57  ;;  %v1074_v3 = vld [vmem:[#allocation10 + $0xa40] sm:$0xff]  ;;  %v1155_v57 = vld [vmem:[#allocation10 + $0xcc8] sm:$0xff] }
 0x15f   :  { %v174_v63 = vld [vmem:[#allocation5 + $0x60] sm:$0xff] }
 0x160   :  { %3622 = vmatpush1.bf16.msra.mxu0 %v3621_v12  ;;  %v1010_v12 = vld [vmem:[#allocation10 + $0x840] sm:$0xff]  ;;  %v1149_v58 = vld [vmem:[#allocation10 + $0xc98] sm:$0xff] }
 0x161   :  { %3750 = vmatpush1.bf16.msra.mxu1 %v3749_v13  ;;  %3624 = vmatprep.subr.bf16.mxu0 %v3623_v14  ;;  %v1004_v13 = vld [vmem:[#allocation10 + $0x810] sm:$0xff]  ;;  %v3771_v14 = vpack.c.bf16 %v1013_v7, %v1005_v6  ;;  %v3645_v23 = vpack.c.bf16 %v1010_v12, %v1002_v11  ;;  %v1083_v7 = vld [vmem:[#allocation10 + $0xa88] sm:$0xff] }
 0x162   :  { %3752 = vmatprep.subr.bf16.mxu1 %v3751_v20  ;;  %v1021_v20 = vld [vmem:[#allocation10 + $0x898] sm:$0xff]  ;;  %v3773_v24 = vpack.c.bf16 %v1012_v15, %v1004_v13  ;;  %v1076_v6 = vld [vmem:[#allocation10 + $0xa50] sm:$0xff]  ;;  %v1082_v15 = vld [vmem:[#allocation10 + $0xa80] sm:$0xff] }
 0x163   :  { %v3775_v29 = vpack.c.bf16 %v1029_v21, %v1021_v20  ;;  %v165_v11 = vld [vmem:[#allocation5 + $0x18] sm:$0xff]  ;;  %v3789_v13 = vpack.c.bf16 %v1076_v6, %v1068_v4  ;;  %v1163_v4 = vld [vmem:[#allocation10 + $0xd08] sm:$0xff] }
 0x164   :  { %3626 = vmatpush1.bf16.msra.mxu0 %v3625_v26  ;;  %v1018_v26 = vld [vmem:[#allocation10 + $0x880] sm:$0xff]  ;;  %v1092_v21 = vld [vmem:[#allocation10 + $0xad0] sm:$0xff]  ;;  %v1165_v6 = vld [vmem:[#allocation10 + $0xd18] sm:$0xff] }
 0x165   :  { %3754 = vmatpush1.bf16.msra.mxu1 %v3753_v27  ;;  %3628 = vmatprep.subr.bf16.mxu0 %v3627_v28  ;;  %v1026_v27 = vld [vmem:[#allocation10 + $0x8c0] sm:$0xff]  ;;  %v1020_v28 = vld [vmem:[#allocation10 + $0x890] sm:$0xff] }
 0x166   :  { %3756 = vmatprep.subr.bf16.mxu1 %v3755_v32  ;;  %v1043_v32 = vld [vmem:[#allocation10 + $0x948] sm:$0xff]  ;;  %v3649_v36 = vpack.c.bf16 %v1026_v27, %v1018_v26  ;;  %v3665_v26 = vpack.c.bf16 %v1090_v17, %v1082_v15  ;;  %v3793_v27 = vpack.c.bf16 %v1092_v21, %v1084_v18  ;;  %v1172_v15 = vld [vmem:[#allocation10 + $0xd50] sm:$0xff]  ;;  %v1189_v21 = vld [vmem:[#allocation10 + $0xdd8] sm:$0xff] }
 0x167   :  { %v1179_v17 = vld [vmem:[#allocation10 + $0xd88] sm:$0xff] }
 0x168   :  { %3630 = vmatpush1.bf16.msra.mxu0 %v3629_v38  ;;  %v3777_v38 = vpack.c.bf16 %v1028_v30, %v1020_v28  ;;  %v1106_v30 = vld [vmem:[#allocation10 + $0xb40] sm:$0xff]  ;;  %v1187_v18 = vld [vmem:[#allocation10 + $0xdc8] sm:$0xff] }
 0x169   :  { %3758 = vmatpush1.bf16.msra.mxu1 %v3757_v39  ;;  %3632 = vmatprep.subr.bf16.mxu0 %v3631_v40  ;;  %v3651_v39 = vpack.c.bf16 %v1043_v32, %v1035_v31  ;;  %v1034_v40 = vld [vmem:[#allocation10 + $0x900] sm:$0xff]  ;;  %v1100_v31 = vld [vmem:[#allocation10 + $0xb10] sm:$0xff] }
 0x16a   :  { %3760 = vmatprep.subr.bf16.mxu1 %v3759_v43  ;;  %v1044_v43 = vld [vmem:[#allocation10 + $0x950] sm:$0xff] }
 0x16c   :  { %3634 = vmatpush1.bf16.msra.mxu0 %v3633_v48  ;;  %v3653_v48 = vpack.c.bf16 %v1042_v41, %v1034_v40  ;;  %v1114_v41 = vld [vmem:[#allocation10 + $0xb80] sm:$0xff] }
 0x16d   :  { %3762 = vmatpush1.bf16.msra.mxu1 %v3761_v49  ;;  %3636 = vmatprep.subr.bf16.mxu0 %v3635_v50  ;;  %v170_v49 = vld [vmem:[#allocation5 + $0x40] sm:$0xff]  ;;  %v3781_v50 = vpack.c.bf16 %v1044_v43, %v1036_v16 }
 0x16e   :  { %3764 = vmatprep.subr.bf16.mxu1 %v3763_v54  ;;  %v1052_v54 = vld [vmem:[#allocation10 + $0x990] sm:$0xff]  ;;  %v1122_v16 = vld [vmem:[#allocation10 + $0xbc0] sm:$0xff] }
 0x16f   :  { %v3785_v0 = vpack.c.bf16 %v1060_v56, %v1052_v54  ;;  %v1147_v56 = vld [vmem:[#allocation10 + $0xc88] sm:$0xff] }
 0x170   :  { %3638 = vmatpush1.bf16.msra.mxu0 %v3637_v60  ;;  %v1077_v60 = vld [vmem:[#allocation10 + $0xa58] sm:$0xff] }
 0x171   :  { %3766 = vmatpush1.bf16.msra.mxu1 %v3765_v61  ;;  %3640 = vmatprep.subr.bf16.mxu0 %v3639_v62  ;;  %v175_v61 = vld [vmem:[#allocation5 + $0x68] sm:$0xff]  ;;  %v3657_v62 = vpack.c.bf16 %v1058_v53, %v1050_v52  ;;  %v3787_v5 = vpack.c.bf16 %v1077_v60, %v1069_v59  ;;  %v1132_v53 = vld [vmem:[#allocation10 + $0xc10] sm:$0xff]  ;;  %v1157_v59 = vld [vmem:[#allocation10 + $0xcd8] sm:$0xff] }
 0x172   :  { %3768 = vmatprep.subr.bf16.mxu1 %v3767_v2  ;;  %v1066_v2 = vld [vmem:[#allocation10 + $0xa00] sm:$0xff] }
 0x173   :  { %v3661_v12 = vpack.c.bf16 %v1074_v3, %v1066_v2  ;;  %v1138_v52 = vld [vmem:[#allocation10 + $0xc40] sm:$0xff]  ;;  %v3807_v2 = vpack.c.bf16 %v1157_v59, %v1149_v58  ;;  %v1156_v3 = vld [vmem:[#allocation10 + $0xcd0] sm:$0xff] }
 0x174   :  { %3642 = vmatpush1.bf16.msra.mxu0 %v3641_v8  ;;  %v1091_v8 = vld [vmem:[#allocation10 + $0xac8] sm:$0xff]  ;;  %v1226_v59 = vld [vmem:[#allocation10 + $0xf00] sm:$0xff] }
 0x175   :  { %3770 = vmatpush1.bf16.msra.mxu1 %v3769_v9  ;;  %3644 = vmatprep.subr.bf16.mxu0 %v3643_v10  ;;  %v1085_v9 = vld [vmem:[#allocation10 + $0xa98] sm:$0xff] }
 0x176   :  { %3772 = vmatprep.subr.bf16.mxu1 %v3771_v14  ;;  %v1093_v10 = vld [vmem:[#allocation10 + $0xad8] sm:$0xff]  ;;  %v3663_v14 = vpack.c.bf16 %v1091_v8, %v1083_v7 }
 0x177   :  { %1365 = vmatmul.mubr.f32.vlgmr.msra.gmra.mrb[2].mxu0 %v162_v22  ;;  %v3791_v20 = vpack.c.bf16 %v1093_v10, %v1085_v9  ;;  %v1173_v7 = vld [vmem:[#allocation10 + $0xd58] sm:$0xff] }
 0x178   :  { %3646 = vmatpush1.bf16.msra.mxu0 %v3645_v23  ;;  %1543 = vmatmul.mubr.f32.vlgmr.msra.gmra.mrb[2].mxu1 %v162_v22  ;;  %v1099_v22 = vld [vmem:[#allocation10 + $0xb08] sm:$0xff] }
 0x179   :  { %3774 = vmatpush1.bf16.msra.mxu1 %v3773_v24  ;;  %3648 = vmatprep.subr.bf16.mxu0 %v3647_v25  ;;  %v1107_v23 = vld [vmem:[#allocation10 + $0xb48] sm:$0xff]  ;;  %v1101_v24 = vld [vmem:[#allocation10 + $0xb18] sm:$0xff] }
 0x17a   :  { %3776 = vmatprep.subr.bf16.mxu1 %v3775_v29  ;;  %1370 = vmatprep.mubr.f32.mxu0 %v167_v35  ;;  %v1109_v25 = vld [vmem:[#allocation10 + $0xb58] sm:$0xff]  ;;  %v3667_v28 = vpack.c.bf16 %v1107_v23, %v1099_v22  ;;  %v1098_v29 = vld [vmem:[#allocation10 + $0xb00] sm:$0xff] }
 0x17b   :  { %1548 = vmatprep.mubr.f32.mxu1 %v167_v35  ;;  %1371 = vmatmul.mubr.f32.gmra.mrb[4].mxu0 %v166_v37  ;;  %v3795_v32 = vpack.c.bf16 %v1109_v25, %v1101_v24  ;;  %v1123_v35 = vld [vmem:[#allocation10 + $0xbc8] sm:$0xff]  ;;  %v3687_v24 = vpack.c.bf16 %v1187_v18, %v1179_v17  ;;  %v1178_v25 = vld [vmem:[#allocation10 + $0xd80] sm:$0xff]  ;;  %v173_v18 = vld [vmem:[#allocation5 + $0x58] sm:$0xff] }
 0x17c   :  { %3650 = vmatpush1.bf16.msra.mxu0 %v3649_v36  ;;  %1549 = vmatmul.mubr.f32.gmra.mrb[4].mxu1 %v166_v37  ;;  %v1117_v36 = vld [vmem:[#allocation10 + $0xb98] sm:$0xff]  ;;  %v3671_v40 = vpack.c.bf16 %v1123_v35, %v1115_v34  ;;  %v168_v17 = vld [vmem:[#allocation5 + $0x30] sm:$0xff] }
 0x17d   :  { %3778 = vmatpush1.bf16.msra.mxu1 %v3777_v38  ;;  %3652 = vmatprep.subr.bf16.mxu0 %v3651_v39  ;;  %v1125_v37 = vld [vmem:[#allocation10 + $0xbd8] sm:$0xff]  ;;  %v3669_v38 = vpack.c.bf16 %v1106_v30, %v1098_v29  ;;  %v3797_v39 = vpack.c.bf16 %v1108_v33, %v1100_v31  ;;  %v1188_v29 = vld [vmem:[#allocation10 + $0xdd0] sm:$0xff]  ;;  %v1195_v30 = vld [vmem:[#allocation10 + $0xe08] sm:$0xff] }
 0x17e   :  { %3780 = vmatprep.subr.bf16.mxu1 %v3779_v42  ;;  %1376 = vmatprep.mubr.f32.mxu0 %v171_v47  ;;  %v1116_v42 = vld [vmem:[#allocation10 + $0xb90] sm:$0xff]  ;;  %v3799_v43 = vpack.c.bf16 %v1125_v37, %v1117_v36  ;;  %v1203_v31 = vld [vmem:[#allocation10 + $0xe48] sm:$0xff]  ;;  %v1205_v33 = vld [vmem:[#allocation10 + $0xe58] sm:$0xff] }
 0x17f   :  { %1554 = vmatprep.mubr.f32.mxu1 %v171_v47  ;;  %1377 = vmatmul.mubr.f32.gmra.mrb[6].mxu0 %v170_v49  ;;  %v1141_v47 = vld [vmem:[#allocation10 + $0xc58] sm:$0xff]  ;;  %v3691_v36 = vpack.c.bf16 %v1203_v31, %v1195_v30  ;;  %v1194_v37 = vld [vmem:[#allocation10 + $0xe00] sm:$0xff]  ;;  %v4749_v30 = vmov 1966171168  }
 0x180   :  { %3654 = vmatpush1.bf16.msra.mxu0 %v3653_v48  ;;  %1555 = vmatmul.mubr.f32.gmra.mrb[6].mxu1 %v170_v49  ;;  %v3673_v48 = vpack.c.bf16 %v1122_v16, %v1114_v41  ;;  %v3801_v49 = vpack.c.bf16 %v1124_v44, %v1116_v42  ;;  %v3803_v54 = vpack.c.bf16 %v1141_v47, %v1133_v46  ;;  %v1204_v41 = vld [vmem:[#allocation10 + $0xe50] sm:$0xff]  ;;  %v1211_v16 = vld [vmem:[#allocation10 + $0xe88] sm:$0xff]  ;;  %v1221_v44 = vld [vmem:[#allocation10 + $0xed8] sm:$0xff]  ;;  %v2019_v31 = vunpack.c.l.s4 %v4749_v30 }
 0x181   :  { %3782 = vmatpush1.bf16.msra.mxu1 %v3781_v50  ;;  %3656 = vmatprep.subr.bf16.mxu0 %v3655_v51  ;;  %v3675_v50 = vpack.c.bf16 %v1139_v45, %v1131_v19  ;;  %v1130_v51 = vld [vmem:[#allocation10 + $0xc00] sm:$0xff]  ;;  %v1219_v42 = vld [vmem:[#allocation10 + $0xec8] sm:$0xff] }
 0x182   :  { %3784 = vmatprep.subr.bf16.mxu1 %v3783_v55  ;;  %1382 = vmatprep.mubr.f32.mxu0 %v175_v61  ;;  %v1140_v55 = vld [vmem:[#allocation10 + $0xc50] sm:$0xff]  ;;  %v3677_v60 = vpack.c.bf16 %v1138_v52, %v1130_v51  ;;  %v3695_v46 = vpack.c.bf16 %v1219_v42, %v1211_v16  ;;  %v1210_v47 = vld [vmem:[#allocation10 + $0xe80] sm:$0xff]  ;;  %v1227_v52 = vld [vmem:[#allocation10 + $0xf08] sm:$0xff] }
 0x183   :  { %1560 = vmatprep.mubr.f32.mxu1 %v175_v61  ;;  %1383 = vmatmul.mubr.f32.gmra.mrb[8].mxu0 %v174_v63  ;;  %v3805_v61 = vpack.c.bf16 %v1140_v55, %v1132_v53  ;;  %v1220_v51 = vld [vmem:[#allocation10 + $0xed0] sm:$0xff]  ;;  %v1235_v53 = vld [vmem:[#allocation10 + $0xf48] sm:$0xff]  ;;  %v1237_v55 = vld [vmem:[#allocation10 + $0xf58] sm:$0xff] }
 0x184   :  { %3658 = vmatpush1.bf16.msra.mxu0 %v3657_v62  ;;  %1561 = vmatmul.mubr.f32.gmra.mrb[8].mxu1 %v174_v63  ;;  %v3679_v62 = vpack.c.bf16 %v1155_v57, %v1147_v56  ;;  %v1146_v63 = vld [vmem:[#allocation10 + $0xc80] sm:$0xff]  ;;  %v3699_v58 = vpack.c.bf16 %v1235_v53, %v1227_v52 }
 0x185   :  { %3786 = vmatpush1.bf16.msra.mxu1 %v3785_v0  ;;  %3660 = vmatprep.subr.bf16.mxu0 %v3659_v1  ;;  %v1154_v0 = vld [vmem:[#allocation10 + $0xcc0] sm:$0xff]  ;;  %v1148_v1 = vld [vmem:[#allocation10 + $0xc90] sm:$0xff] }
 0x186   :  { %3788 = vmatprep.subr.bf16.mxu1 %v3787_v5  ;;  %1453 = vmatprep.mubr.f32.mxu0 %v165_v11  ;;  %v1171_v5 = vld [vmem:[#allocation10 + $0xd48] sm:$0xff]  ;;  %v3681_v8 = vpack.c.bf16 %v1154_v0, %v1146_v63  ;;  %v3809_v9 = vpack.c.bf16 %v1156_v3, %v1148_v1  ;;  %v1236_v63 = vld [vmem:[#allocation10 + $0xf50] sm:$0xff]  ;;  %v1253_v3 = vld [vmem:[#allocation10 + $0xfd8] sm:$0xff] }
 0x187   :  { %1631 = vmatprep.mubr.f32.mxu1 %v165_v11  ;;  %v3683_v10 = vpack.c.bf16 %v1171_v5, %v1163_v4  ;;  %v1162_v11 = vld [vmem:[#allocation10 + $0xd00] sm:$0xff]  ;;  %v1243_v0 = vld [vmem:[#allocation10 + $0xf88] sm:$0xff] }
 0x188   :  { %3662 = vmatpush1.bf16.msra.mxu0 %v3661_v12  ;;  %v1170_v12 = vld [vmem:[#allocation10 + $0xd40] sm:$0xff]  ;;  %v1251_v1 = vld [vmem:[#allocation10 + $0xfc8] sm:$0xff] }
 0x189   :  { %3790 = vmatpush1.bf16.msra.mxu1 %v3789_v13  ;;  %3664 = vmatprep.subr.bf16.mxu0 %v3663_v14  ;;  %v1164_v13 = vld [vmem:[#allocation10 + $0xd10] sm:$0xff]  ;;  %v3811_v14 = vpack.c.bf16 %v1173_v7, %v1165_v6  ;;  %v3685_v22 = vpack.c.bf16 %v1170_v12, %v1162_v11  ;;  %v3703_v6 = vpack.c.bf16 %v1251_v1, %v1243_v0  ;;  %v1242_v7 = vld [vmem:[#allocation10 + $0xf80] sm:$0xff] }
 0x18a   :  { %3792 = vmatprep.subr.bf16.mxu1 %v3791_v20  ;;  %v1181_v20 = vld [vmem:[#allocation10 + $0xd98] sm:$0xff]  ;;  %v3813_v23 = vpack.c.bf16 %v1172_v15, %v1164_v13  ;;  %v1252_v11 = vld [vmem:[#allocation10 + $0xfd0] sm:$0xff] }
 0x18b   :  { %v169_v15 = vld [vmem:[#allocation5 + $0x38] sm:$0xff] }
 0x18c   :  { %3666 = vmatpush1.bf16.msra.mxu0 %v3665_v26  ;;  %v1186_v26 = vld [vmem:[#allocation10 + $0xdc0] sm:$0xff] }
 0x18d   :  { %3794 = vmatpush1.bf16.msra.mxu1 %v3793_v27  ;;  %3668 = vmatprep.subr.bf16.mxu0 %v3667_v28  ;;  %v1180_v27 = vld [vmem:[#allocation10 + $0xd90] sm:$0xff]  ;;  %v3815_v28 = vpack.c.bf16 %v1189_v21, %v1181_v20  ;;  %v3689_v34 = vpack.c.bf16 %v1186_v26, %v1178_v25 }
 0x18e   :  { %3796 = vmatprep.subr.bf16.mxu1 %v3795_v32  ;;  %v1197_v32 = vld [vmem:[#allocation10 + $0xe18] sm:$0xff]  ;;  %v3817_v35 = vpack.c.bf16 %v1188_v29, %v1180_v27  ;;  %v172_v20 = vld [vmem:[#allocation5 + $0x50] sm:$0xff] }
 0x18f   :  { %v177_v21 = vld [vmem:[#allocation5 + $0x78] sm:$0xff]  ;;  %v434_v27 = vld [vmem:[#allocation8] sm:$0xf] }
 0x190   :  { %3670 = vmatpush1.bf16.msra.mxu0 %v3669_v38  ;;  %v1202_v38 = vld [vmem:[#allocation10 + $0xe40] sm:$0xff] }
 0x191   :  { %3798 = vmatpush1.bf16.msra.mxu1 %v3797_v39  ;;  %3672 = vmatprep.subr.bf16.mxu0 %v3671_v40  ;;  %v1196_v39 = vld [vmem:[#allocation10 + $0xe10] sm:$0xff]  ;;  %v3819_v40 = vpack.c.bf16 %v1205_v33, %v1197_v32  ;;  %v3693_v19 = vpack.c.bf16 %v1202_v38, %v1194_v37 }
 0x192   :  { %3800 = vmatprep.subr.bf16.mxu1 %v3799_v43  ;;  %v1213_v43 = vld [vmem:[#allocation10 + $0xe98] sm:$0xff]  ;;  %v3821_v45 = vpack.c.bf16 %v1204_v41, %v1196_v39 }
 0x194   :  { %3674 = vmatpush1.bf16.msra.mxu0 %v3673_v48  ;;  %v1218_v48 = vld [vmem:[#allocation10 + $0xec0] sm:$0xff] }
 0x195   :  { %3802 = vmatpush1.bf16.msra.mxu1 %v3801_v49  ;;  %3676 = vmatprep.subr.bf16.mxu0 %v3675_v50  ;;  %v1212_v49 = vld [vmem:[#allocation10 + $0xe90] sm:$0xff]  ;;  %v3823_v50 = vpack.c.bf16 %v1221_v44, %v1213_v43  ;;  %v3697_v56 = vpack.c.bf16 %v1218_v48, %v1210_v47 }
 0x196   :  { %3804 = vmatprep.subr.bf16.mxu1 %v3803_v54  ;;  %v1229_v54 = vld [vmem:[#allocation10 + $0xf18] sm:$0xff]  ;;  %v3825_v57 = vpack.c.bf16 %v1220_v51, %v1212_v49  ;;  %v1258_v51 = vld [vmem:[#allocation11] sm:$0xff] }
 0x198   :  { %3678 = vmatpush1.bf16.msra.mxu0 %v3677_v60  ;;  %v1234_v60 = vld [vmem:[#allocation10 + $0xf40] sm:$0xff] }
 0x199   :  { %3806 = vmatpush1.bf16.msra.mxu1 %v3805_v61  ;;  %3680 = vmatprep.subr.bf16.mxu0 %v3679_v62  ;;  %v1228_v61 = vld [vmem:[#allocation10 + $0xf10] sm:$0xff]  ;;  %v3827_v62 = vpack.c.bf16 %v1237_v55, %v1229_v54  ;;  %v3701_v4 = vpack.c.bf16 %v1234_v60, %v1226_v59 }
 0x19a   :  { %3808 = vmatprep.subr.bf16.mxu1 %v3807_v2  ;;  %v1245_v2 = vld [vmem:[#allocation10 + $0xf98] sm:$0xff]  ;;  %v3829_v5 = vpack.c.bf16 %v1236_v63, %v1228_v61 }
 0x19c   :  { %3682 = vmatpush1.bf16.msra.mxu0 %v3681_v8  ;;  %v1250_v8 = vld [vmem:[#allocation10 + $0xfc0] sm:$0xff] }
 0x19d   :  { %3810 = vmatpush1.bf16.msra.mxu1 %v3809_v9  ;;  %3684 = vmatprep.subr.bf16.mxu0 %v3683_v10  ;;  %v3831_v9 = vpack.c.bf16 %v1253_v3, %v1245_v2  ;;  %v1244_v10 = vld [vmem:[#allocation10 + $0xf90] sm:$0xff]  ;;  %v3705_v12 = vpack.c.bf16 %v1250_v8, %v1242_v7 }
 0x19e   :  { %3812 = vmatprep.subr.bf16.mxu1 %v3811_v14  ;;  %v3833_v13 = vpack.c.bf16 %v1252_v11, %v1244_v10  ;;  %v164_v14 = vld [vmem:[#allocation5 + $0x10] sm:$0xff] }
 0x1a0   :  { %3686 = vmatpush1.bf16.msra.mxu0 %v3685_v22  ;;  %v176_v22 = vld [vmem:[#allocation5 + $0x70] sm:$0xff] }
 0x1a1   :  { %3814 = vmatpush1.bf16.msra.mxu1 %v3813_v23  ;;  %3688 = vmatprep.subr.bf16.mxu0 %v3687_v24  ;;  %v4460_v23 = vld [vmem:[#allocation5 + $0x8] sm:$0xff]  ;;  %v436_v24 = vlaneseq }
 0x1a2   :  { %3816 = vmatprep.subr.bf16.mxu1 %v3815_v28 }
 0x1a3   :  { %v4949_v25 = vshrl.u32 %v436_v24, 7 }
 0x1a4   :  { %3690 = vmatpush1.bf16.msra.mxu0 %v3689_v34 }
 0x1a5   :  { %3818 = vmatpush1.bf16.msra.mxu1 %v3817_v35  ;;  %3692 = vmatprep.subr.bf16.mxu0 %v3691_v36  ;;  %v4952_v26 = vsub.s32 0, %v4949_v25  ;;  %v4955_v28 = vsub.s32 2, %v4949_v25  ;;  %v4958_v29 = vsub.s32 1, %v4949_v25  ;;  %v4961_v32 = vsub.s32 3, %v4949_v25 }
 0x1a6   :  { %3820 = vmatprep.subr.bf16.mxu1 %v3819_v40  ;;  %v2020_v36 = vunpack.c.0.s8 %v2019_v31 }
 0x1a7   :  { %5426 = vst [vmem:[#allocation27_spill] sm:$0xff] %v4955_v28  ;;  %5427 = vst [vmem:[#allocation28_spill] sm:$0xff] %v4958_v29  ;;  %v439_v33 = vrot.slane %v434_v27, %v4952_v26  ;;  %v447_v34 = vrot.slane %v434_v27, %v4955_v28  ;;  %v443_v35 = vrot.slane %v434_v27, %v4958_v29 }
 0x1a8   :  { %3694 = vmatpush1.bf16.msra.mxu0 %v3693_v19  ;;  %5428 = vst [vmem:[#allocation29_spill] sm:$0xff] %v4961_v32  ;;  %v451_v37 = vrot.slane %v434_v27, %v4961_v32  ;;  %v2023_v43 = vsub.s32 %v2020_v36, %v4949_v25  ;;  %v1263_v53 = vrot.slane %v1258_v51, %v4952_v26 }
 0x1a9   :  { %3822 = vmatpush1.bf16.msra.mxu1 %v3821_v45  ;;  %3696 = vmatprep.subr.bf16.mxu0 %v3695_v46  ;;  %v4970_v54 = vrot.slane %v1258_v51, %v4955_v28  ;;  %v4973_v55 = vrot.slane %v1258_v51, %v4958_v29 }
 0x1aa   :  { %3824 = vmatprep.subr.bf16.mxu1 %v3823_v50 }
 0x1ac   :  { %3698 = vmatpush1.bf16.msra.mxu0 %v3697_v56  ;;  %v4976_v56 = vrot.slane %v1258_v51, %v4961_v32 }
 0x1ad   :  { %3826 = vmatpush1.bf16.msra.mxu1 %v3825_v57  ;;  %3700 = vmatprep.subr.bf16.mxu0 %v3699_v58 }
 0x1ae   :  { %3828 = vmatprep.subr.bf16.mxu1 %v3827_v62 }
 0x1b0   :  { %3702 = vmatpush1.bf16.msra.mxu0 %v3701_v4 }
 0x1b1   :  { %3830 = vmatpush1.bf16.msra.mxu1 %v3829_v5  ;;  %3704 = vmatprep.subr.bf16.mxu0 %v3703_v6 }
 0x1b2   :  { %3832 = vmatprep.subr.bf16.mxu1 %v3831_v9 }
 0x1b4   :  { %3706 = vmatpush1.bf16.msra.mxu0 %v3705_v12 }
 0x1b5   :  { %3834 = vmatpush1.bf16.msra.mxu1 %v3833_v13 }
 0x1b7   :  { %1454 = vmatmul.mubr.f32.vlgmr.msra.gmra.mrb[2].mxu0 %v164_v14 }
 0x1b8   :  { %1632 = vmatmul.mubr.f32.vlgmr.msra.gmra.mrb[2].mxu1 %v164_v14  ;;  %1459 = vmatprep.mubr.f32.mxu0 %v169_v15 }
 0x1b9   :  { %1637 = vmatprep.mubr.f32.mxu1 %v169_v15 }
 0x1bb   :  { %1460 = vmatmul.mubr.f32.gmra.mrb[4].mxu0 %v168_v17 }
 0x1bc   :  { %1638 = vmatmul.mubr.f32.gmra.mrb[4].mxu1 %v168_v17  ;;  %1465 = vmatprep.mubr.f32.mxu0 %v173_v18 }
 0x1bd   :  { %1643 = vmatprep.mubr.f32.mxu1 %v173_v18 }
 0x1bf   :  { %1466 = vmatmul.mubr.f32.gmra.mrb[6].mxu0 %v172_v20 }
 0x1c0   :  { %1644 = vmatmul.mubr.f32.gmra.mrb[6].mxu1 %v172_v20  ;;  %1471 = vmatprep.mubr.f32.mxu0 %v177_v21 }
 0x1c1   :  { %1649 = vmatprep.mubr.f32.mxu1 %v177_v21 }
 0x1c3   :  { %1472 = vmatmul.mubr.f32.gmra.mrb[8].mxu0 %v176_v22 }
 0x1c4   :  { %1650 = vmatmul.mubr.f32.gmra.mrb[8].mxu1 %v176_v22  ;;  %1720 = vmatprep.mubr.f32.mxu0 %v4460_v23 }
 0x1c5   :  { %1898 = vmatprep.mubr.f32.mxu1 %v4460_v23 }
 0x20a   :  { %v599_v38 = vpop.f32.mrb[0].mxu0 }
 0x20b   :  { %v4347_v39 = vadd.f32 %v599_v38, %v439_v33  ;;  %v741_v40 = vpop.f32.mrb[0].mxu1  ;;  %v601_v41 = vpop.f32.mrb[1].mxu0 }
 0x20c   :  { %v4349_v16 = vadd.f32 %v741_v40, %v447_v34  ;;  %v4348_v42 = vadd.f32 %v601_v41, %v443_v35  ;;  %v743_v44 = vpop.f32.mrb[1].mxu1 }
 0x20d   :  { %v4350_v19 = vadd.f32 %v743_v44, %v451_v37 }
 0x20e   :  { %v2016_v45 = vcombine.low %v4347_v39, %v4348_v42 }
 0x20f   :  { %v2017_v46 = vcombine.low %v4349_v16, %v4350_v19 }
 0x210   :  { %v2024_v47 = vrot.slane %v2016_v45, %v2023_v43 }
 0x211   :  { %v2031_v48 = vrot.slane %v2017_v46, %v2023_v43 }
 0x213   :  { %v2032_v49 = vcombine.low %v2024_v47, %v2031_v48  ;;  %v2033_v50 = vcombine.high %v2024_v47, %v2031_v48 }
 0x215   :  { %v2040_v52 = vrot.slane %v2032_v49, %v2023_v43  ;;  %v2047_v58 = vrot.slane %v2033_v50, %v2023_v43 }
 0x217   :  { %v2053_v60 = vrot.slane %v2040_v52, %v4952_v26  ;;  %v2061_v0 = vrot.slane %v2040_v52, %v4955_v28  ;;  %v2057_v2 = vrot.slane %v2040_v52, %v4958_v29  ;;  %v2065_v6 = vrot.slane %v2040_v52, %v4961_v32 }
 0x218   :  { %v2048_v10 = vcombine.high %v2040_v52, %v2040_v52  ;;  %v2069_v12 = vrot.slane %v2047_v58, %v4952_v26  ;;  %v2077_v14 = vrot.slane %v2047_v58, %v4955_v28  ;;  %v2073_v21 = vrot.slane %v2047_v58, %v4958_v29 }
 0x219   :  { %v2081_v31 = vrot.slane %v2047_v58, %v4961_v32  ;;  %v2049_v33 = vcombine.high %v2047_v58, %v2047_v58 }
 0x21a   :  { %v2085_v37 = vrot.slane %v2048_v10, %v4952_v26  ;;  %v2093_v16 = vrot.slane %v2048_v10, %v4955_v28  ;;  %v2089_v43 = vrot.slane %v2048_v10, %v4958_v29  ;;  %v2097_v50 = vrot.slane %v2048_v10, %v4961_v32 }
 0x21b   :  { %v2101_v58 = vrot.slane %v2049_v33, %v4952_v26 }
 0x28a   :  { %v1455_v57 = vpop.f32.mrb[2].mxu0 }
 0x28b   :  { %v4351_v59 = vadd.f32 %v1455_v57, %v1263_v53  ;;  %v1633_v61 = vpop.f32.mrb[2].mxu1  ;;  %v1457_v62 = vpop.f32.mrb[3].mxu0 }
 0x28c   :  { %v4359_v63 = vadd.f32 %v1633_v61, %v4970_v54  ;;  %v4352_v1 = vadd.f32 %v1457_v62, %v4973_v55  ;;  %v1635_v3 = vpop.f32.mrb[3].mxu1  ;;  %v2109_v62 = vrot.slane %v2049_v33, %v4955_v28 }
 0x28d   :  { %v2130_v4 = vmul.f32 %v4351_v59, %v2053_v60  ;;  %v4360_v5 = vadd.f32 %v1635_v3, %v4976_v56 }
 0x28e   :  { %v2132_v7 = vmul.f32 %v4359_v63, %v2061_v0  ;;  %v2131_v8 = vmul.f32 %v4352_v1, %v2057_v2  ;;  %v1461_v9 = vpop.f32.mrb[4].mxu0  ;;  %v2105_v0 = vrot.slane %v2049_v33, %v4958_v29 }
 0x28f   :  { %v4353_v11 = vadd.f32 %v1461_v9, %v1263_v53  ;;  %v1639_v13 = vpop.f32.mrb[4].mxu1  ;;  %v1463_v15 = vpop.f32.mrb[5].mxu0  ;;  %v2133_v17 = vmul.f32 %v4360_v5, %v2065_v6  ;;  %v2113_v9 = vrot.slane %v2049_v33, %v4961_v32 }
 0x290   :  { %v4361_v18 = vadd.f32 %v1639_v13, %v4970_v54  ;;  %v4354_v20 = vadd.f32 %v1463_v15, %v4973_v55  ;;  %v1641_v22 = vpop.f32.mrb[5].mxu1  ;;  %v2146_v23 = vadd.f32 %v2131_v8, %v2130_v4 }
 0x291   :  { %v2134_v27 = vmul.f32 %v4353_v11, %v2069_v12  ;;  %v4362_v30 = vadd.f32 %v1641_v22, %v4976_v56 }
 0x292   :  { %v2136_v34 = vmul.f32 %v4361_v18, %v2077_v14  ;;  %v2135_v35 = vmul.f32 %v4354_v20, %v2073_v21  ;;  %v1467_v36 = vpop.f32.mrb[6].mxu0  ;;  %v2147_v38 = vadd.f32 %v2146_v23, %v2132_v7 }
 0x293   :  { %v2137_v39 = vmul.f32 %v4362_v30, %v2081_v31  ;;  %v4355_v40 = vadd.f32 %v1467_v36, %v1263_v53  ;;  %v1645_v41 = vpop.f32.mrb[6].mxu1  ;;  %v1469_v42 = vpop.f32.mrb[7].mxu0  ;;  %v751_v36 = vld [vmem:[#allocation10 + $0x28] sm:$0xff] }
 0x294   :  { %v2151_v44 = vadd.f32 %v2135_v35, %v2134_v27  ;;  %v4363_v19 = vadd.f32 %v1645_v41, %v4970_v54  ;;  %v4356_v45 = vadd.f32 %v1469_v42, %v4973_v55  ;;  %v1647_v46 = vpop.f32.mrb[7].mxu1  ;;  %v2148_v47 = vadd.f32 %v2147_v38, %v2133_v17  ;;  %v750_v38 = vld [vmem:[#allocation10 + $0x20] sm:$0xff]  ;;  %v753_v41 = vld [vmem:[#allocation10 + $0x38] sm:$0xff] }
 0x295   :  { %v2138_v48 = vmul.f32 %v4355_v40, %v2085_v37  ;;  %v4364_v49 = vadd.f32 %v1647_v46, %v4976_v56  ;;  %v2171_v17 = vand.u32 127, %v436_v24  ;;  %v4750_v35 = vmov 0   ;;  %v759_v37 = vld [vmem:[#allocation10 + $0x68] sm:$0xff]  ;;  %v758_v40 = vld [vmem:[#allocation10 + $0x60] sm:$0xff] }
 0x296   :  { %v2140_v51 = vmul.f32 %v4363_v19, %v2093_v16  ;;  %v2139_v52 = vmul.f32 %v4356_v45, %v2089_v43  ;;  %v1473_v57 = vpop.f32.mrb[8].mxu0  ;;  %2149 = vadd.xlane.f32.xlu0 %v2148_v47  ;;  %v2152_v59 = vadd.f32 %v2151_v44, %v2136_v34  ;;  %4444 = vset.pattern.permute.xlu1 %v4750_v35  ;;  %v761_v16 = vld [vmem:[#allocation10 + $0x78] sm:$0xff]  ;;  %v767_v44 = vld [vmem:[#allocation10 + $0xa8] sm:$0xff]  ;;  %v752_v45 = vld [vmem:[#allocation10 + $0x30] sm:$0xff] }
 0x297   :  { %v4357_v60 = vadd.f32 %v1473_v57, %v1263_v53  ;;  %v1651_v61 = vpop.f32.mrb[8].mxu1  ;;  %v1475_v63 = vpop.f32.mrb[9].mxu0  ;;  %v2141_v1 = vmul.f32 %v4364_v49, %v2097_v50  ;;  %4445 = vset.pattern.permute.xlu0 %v4750_v35  ;;  %v3837_v42 = vpack.c.bf16 %v758_v40, %v750_v38  ;;  %v3963_v43 = vpack.c.bf16 %v761_v16, %v753_v41  ;;  %v775_v19 = vld [vmem:[#allocation10 + $0xe8] sm:$0xff]  ;;  %v760_v47 = vld [vmem:[#allocation10 + $0x70] sm:$0xff]  ;;  %v774_v49 = vld [vmem:[#allocation10 + $0xe0] sm:$0xff] }
 0x298   :  { %v4365_v2 = vadd.f32 %v1651_v61, %v4970_v54  ;;  %v4358_v3 = vadd.f32 %v1475_v63, %v4973_v55  ;;  %v1653_v4 = vpop.f32.mrb[9].mxu1  ;;  %v2153_v5 = vadd.f32 %v2152_v59, %v2137_v39  ;;  %v2156_v6 = vadd.f32 %v2139_v52, %v2138_v48  ;;  %v766_v48 = vld [vmem:[#allocation10 + $0xa0] sm:$0xff]  ;;  %v769_v52 = vld [vmem:[#allocation10 + $0xb8] sm:$0xff]  ;;  %v768_v61 = vld [vmem:[#allocation10 + $0xb0] sm:$0xff] }
 0x299   :  { %v2142_v7 = vmul.f32 %v4357_v60, %v2101_v58  ;;  %v4366_v8 = vadd.f32 %v1653_v4, %v4976_v56  ;;  %v5012_v56 = vsub.s32 %v2171_v17, %v4949_v25  ;;  %v3835_v39 = vpack.c.bf16 %v759_v37, %v751_v36  ;;  %3964 = vmatprep.subr.bf16.mxu1 %v3963_v43  ;;  %v777_v57 = vld [vmem:[#allocation10 + $0xf8] sm:$0xff]  ;;  %v783_v58 = vld [vmem:[#allocation10 + $0x128] sm:$0xff]  ;;  %v822_v35 = vld [vmem:[#allocation10 + $0x260] sm:$0xff] }
 0x29a   :  { %v2144_v53 = vmul.f32 %v4365_v2, %v2109_v62  ;;  %v2143_v10 = vmul.f32 %v4358_v3, %v2105_v0  ;;  %2154 = vadd.xlane.f32.xlu0 %v2153_v5  ;;  %v2157_v11 = vadd.f32 %v2156_v6, %v2140_v51  ;;  %v3839_v46 = vpack.c.bf16 %v775_v19, %v767_v44  ;;  %v791_v60 = vld [vmem:[#allocation10 + $0x168] sm:$0xff]  ;;  %v776_v62 = vld [vmem:[#allocation10 + $0xf0] sm:$0xff]  ;;  %v790_v2 = vld [vmem:[#allocation10 + $0x160] sm:$0xff] }
 0x29b   :  { %v2145_v12 = vmul.f32 %v4366_v8, %v2113_v9  ;;  %3836 = vmatprep.subr.bf16.mxu0 %v3835_v39  ;;  %v3965_v50 = vpack.c.bf16 %v760_v47, %v752_v45  ;;  %v3841_v51 = vpack.c.bf16 %v774_v49, %v766_v48  ;;  %v3967_v59 = vpack.c.bf16 %v777_v57, %v769_v52  ;;  %v785_v3 = vld [vmem:[#allocation10 + $0x138] sm:$0xff]  ;;  %v799_v5 = vld [vmem:[#allocation10 + $0x1a8] sm:$0xff]  ;;  %v784_v9 = vld [vmem:[#allocation10 + $0x130] sm:$0xff] }
 0x29c   :  { %v2161_v13 = vadd.f32 %v2143_v10, %v2142_v7  ;;  %v2158_v14 = vadd.f32 %v2157_v11, %v2141_v1  ;;  %3838 = vmatpush1.bf16.msra.mxu0 %v3837_v42  ;;  %v3843_v63 = vpack.c.bf16 %v791_v60, %v783_v58  ;;  %v3969_v0 = vpack.c.bf16 %v776_v62, %v768_v61  ;;  %v782_v1 = vld [vmem:[#allocation10 + $0x120] sm:$0xff]  ;;  %v793_v4 = vld [vmem:[#allocation10 + $0x178] sm:$0xff]  ;;  %v807_v6 = vld [vmem:[#allocation10 + $0x1e8] sm:$0xff] }
 0x29d   :  { %3840 = vmatprep.subr.bf16.mxu0 %v3839_v46  ;;  %3966 = vmatpush1.bf16.msra.mxu1 %v3965_v50  ;;  %v3845_v7 = vpack.c.bf16 %v790_v2, %v782_v1  ;;  %v3971_v8 = vpack.c.bf16 %v793_v4, %v785_v3  ;;  %v798_v10 = vld [vmem:[#allocation10 + $0x1a0] sm:$0xff]  ;;  %v3847_v11 = vpack.c.bf16 %v807_v6, %v799_v5  ;;  %v823_v17 = vld [vmem:[#allocation10 + $0x268] sm:$0xff]  ;;  %v816_v40 = vld [vmem:[#allocation10 + $0x230] sm:$0xff] }
 0x29e   :  { %2159 = vadd.xlane.f32.xlu1 %v2158_v14  ;;  %v2162_v15 = vadd.f32 %v2161_v13, %v2144_v53  ;;  %3968 = vmatprep.subr.bf16.mxu1 %v3967_v59  ;;  %v792_v53 = vld [vmem:[#allocation10 + $0x170] sm:$0xff]  ;;  %v801_v13 = vld [vmem:[#allocation10 + $0x1b8] sm:$0xff]  ;;  %v831_v37 = vld [vmem:[#allocation10 + $0x2a8] sm:$0xff] }
 0x29f   :  { %v809_v14 = vld [vmem:[#allocation10 + $0x1f8] sm:$0xff]  ;;  %v839_v38 = vld [vmem:[#allocation10 + $0x2e8] sm:$0xff]  ;;  %v824_v41 = vld [vmem:[#allocation10 + $0x270] sm:$0xff] }
 0x2a0   :  { %v2163_v54 = vadd.f32 %v2162_v15, %v2145_v12  ;;  %3842 = vmatpush1.bf16.msra.mxu0 %v3841_v51  ;;  %v806_v12 = vld [vmem:[#allocation10 + $0x1e0] sm:$0xff]  ;;  %v3973_v15 = vpack.c.bf16 %v792_v53, %v784_v9  ;;  %v833_v42 = vld [vmem:[#allocation10 + $0x2b8] sm:$0xff]  ;;  %v3855_v44 = vpack.c.bf16 %v839_v38, %v831_v37  ;;  %v3981_v46 = vpack.c.bf16 %v824_v41, %v816_v40  ;;  %v847_v47 = vld [vmem:[#allocation10 + $0x328] sm:$0xff] }
 0x2a1   :  { %3844 = vmatprep.subr.bf16.mxu0 %v3843_v63  ;;  %3970 = vmatpush1.bf16.msra.mxu1 %v3969_v0  ;;  %v841_v43 = vld [vmem:[#allocation10 + $0x2f8] sm:$0xff]  ;;  %v830_v19 = vld [vmem:[#allocation10 + $0x2a0] sm:$0xff]  ;;  %v855_v48 = vld [vmem:[#allocation10 + $0x368] sm:$0xff] }
 0x2a2   :  { %2164 = vadd.xlane.f32.xlu1 %v2163_v54  ;;  %v815_v54 = vld [vmem:[#allocation10 + $0x228] sm:$0xff]  ;;  %3972 = vmatprep.subr.bf16.mxu1 %v3971_v8  ;;  %v838_v45 = vld [vmem:[#allocation10 + $0x2e0] sm:$0xff]  ;;  %v3983_v49 = vpack.c.bf16 %v841_v43, %v833_v42  ;;  %v832_v50 = vld [vmem:[#allocation10 + $0x2b0] sm:$0xff]  ;;  %v3859_v59 = vpack.c.bf16 %v855_v48, %v847_v47 }
 0x2a3   :  { %v840_v51 = vld [vmem:[#allocation10 + $0x2f0] sm:$0xff]  ;;  %v3857_v52 = vpack.c.bf16 %v838_v45, %v830_v19  ;;  %v849_v57 = vld [vmem:[#allocation10 + $0x338] sm:$0xff]  ;;  %v846_v60 = vld [vmem:[#allocation10 + $0x320] sm:$0xff] }
 0x2a4   :  { %3846 = vmatpush1.bf16.msra.mxu0 %v3845_v7  ;;  %v857_v58 = vld [vmem:[#allocation10 + $0x378] sm:$0xff]  ;;  %v854_v61 = vld [vmem:[#allocation10 + $0x360] sm:$0xff]  ;;  %v3985_v62 = vpack.c.bf16 %v840_v51, %v832_v50  ;;  %v863_v63 = vld [vmem:[#allocation10 + $0x3a8] sm:$0xff] }
 0x2a5   :  { %3848 = vmatprep.subr.bf16.mxu0 %v3847_v11  ;;  %3974 = vmatpush1.bf16.msra.mxu1 %v3973_v15  ;;  %v871_v0 = vld [vmem:[#allocation10 + $0x3e8] sm:$0xff]  ;;  %v3987_v1 = vpack.c.bf16 %v857_v58, %v849_v57  ;;  %v848_v2 = vld [vmem:[#allocation10 + $0x330] sm:$0xff]  ;;  %v3861_v4 = vpack.c.bf16 %v854_v61, %v846_v60  ;;  %v865_v5 = vld [vmem:[#allocation10 + $0x3b8] sm:$0xff] }
 0x2a6   :  { %v856_v3 = vld [vmem:[#allocation10 + $0x370] sm:$0xff]  ;;  %v873_v6 = vld [vmem:[#allocation10 + $0x3f8] sm:$0xff]  ;;  %v3863_v7 = vpack.c.bf16 %v871_v0, %v863_v63  ;;  %v862_v8 = vld [vmem:[#allocation10 + $0x3a0] sm:$0xff] }
 0x2a7   :  { %v870_v9 = vld [vmem:[#allocation10 + $0x3e0] sm:$0xff]  ;;  %v3989_v53 = vpack.c.bf16 %v856_v3, %v848_v2  ;;  %v887_v11 = vld [vmem:[#allocation10 + $0x468] sm:$0xff]  ;;  %v897_v37 = vld [vmem:[#allocation10 + $0x4b8] sm:$0xff] }
 0x2a8   :  { %v3865_v15 = vpack.c.bf16 %v870_v9, %v862_v8  ;;  %v905_v38 = vld [vmem:[#allocation10 + $0x4f8] sm:$0xff]  ;;  %v894_v40 = vld [vmem:[#allocation10 + $0x4a0] sm:$0xff]  ;;  %v911_v42 = vld [vmem:[#allocation10 + $0x528] sm:$0xff] }
 0x2a9   :  { %v902_v41 = vld [vmem:[#allocation10 + $0x4e0] sm:$0xff]  ;;  %v919_v43 = vld [vmem:[#allocation10 + $0x568] sm:$0xff]  ;;  %v896_v19 = vld [vmem:[#allocation10 + $0x4b0] sm:$0xff] }
 0x2aa   :  { %v904_v45 = vld [vmem:[#allocation10 + $0x4f0] sm:$0xff]  ;;  %v913_v47 = vld [vmem:[#allocation10 + $0x538] sm:$0xff]  ;;  %v910_v50 = vld [vmem:[#allocation10 + $0x520] sm:$0xff] }
 0x2ab   :  { %v921_v48 = vld [vmem:[#allocation10 + $0x578] sm:$0xff]  ;;  %v918_v51 = vld [vmem:[#allocation10 + $0x560] sm:$0xff]  ;;  %v927_v57 = vld [vmem:[#allocation10 + $0x5a8] sm:$0xff] }
 0x2ac   :  { %v935_v58 = vld [vmem:[#allocation10 + $0x5e8] sm:$0xff]  ;;  %v912_v60 = vld [vmem:[#allocation10 + $0x530] sm:$0xff]  ;;  %v929_v63 = vld [vmem:[#allocation10 + $0x5b8] sm:$0xff] }
 0x2ad   :  { %v920_v61 = vld [vmem:[#allocation10 + $0x570] sm:$0xff]  ;;  %v937_v0 = vld [vmem:[#allocation10 + $0x5f8] sm:$0xff]  ;;  %v926_v2 = vld [vmem:[#allocation10 + $0x5a0] sm:$0xff] }
 0x2ae   :  { %v934_v3 = vld [vmem:[#allocation10 + $0x5e0] sm:$0xff]  ;;  %v928_v8 = vld [vmem:[#allocation10 + $0x5b0] sm:$0xff] }
 0x2af   :  { %v936_v9 = vld [vmem:[#allocation10 + $0x5f0] sm:$0xff] }
 0x323   :  { %v5006_v55 = vpop.xlane.xlu0 %2149 }
 0x324   :  { %v2175_v23 = vrot.slane %v5006_v55, %v5012_v56 }
 0x327   :  { %v5009_v18 = vpop.xlane.xlu0 %2154 }
 0x328   :  { %v2179_v21 = vrot.slane %v5009_v18, %v5012_v56 }
 0x32a   :  { %v2189_v30 = vsel %vm2188_vm0, %v2179_v21, %v2175_v23  ;;  %v3975_v21 = vpack.c.bf16 %v809_v14, %v801_v13  ;;  %v808_v23 = vld [vmem:[#allocation10 + $0x1f0] sm:$0xff] }
 0x32b   :  { %v5014_v20 = vpop.xlane.xlu1 %2159  ;;  %v864_v13 = vld [vmem:[#allocation10 + $0x3b0] sm:$0xff] }
 0x32c   :  { %v2183_v22 = vrot.slane %v5014_v20, %v5012_v56  ;;  %3976 = vmatprep.subr.bf16.mxu1 %v3975_v21  ;;  %v872_v14 = vld [vmem:[#allocation10 + $0x3f0] sm:$0xff] }
 0x32e   :  { %v2191_v31 = vsel %vm2190_vm1, %v2183_v22, %v2189_v30  ;;  %v800_v22 = vld [vmem:[#allocation10 + $0x1b0] sm:$0xff]  ;;  %v817_v30 = vld [vmem:[#allocation10 + $0x238] sm:$0xff] }
 0x32f   :  { %v5022_v27 = vpop.xlane.xlu1 %2164  ;;  %v3977_v36 = vpack.c.bf16 %v808_v23, %v800_v22  ;;  %v878_v22 = vld [vmem:[#allocation10 + $0x420] sm:$0xff] }
 0x330   :  { %v2187_v24 = vrot.slane %v5022_v27, %v5012_v56  ;;  %v886_v23 = vld [vmem:[#allocation10 + $0x460] sm:$0xff] }
 0x331   :  { %3978 = vmatpush1.bf16.msra.mxu1 %v3977_v36  ;;  %v3869_v36 = vpack.c.bf16 %v886_v23, %v878_v22  ;;  %v944_v22 = vld [vmem:[#allocation10 + $0x630] sm:$0xff] }
 0x332   :  { %v2193_v33 = vsel %vm2192_vm2, %v2187_v24, %v2191_v31  ;;  %v3849_v24 = vpack.c.bf16 %v806_v12, %v798_v10  ;;  %v825_v31 = vld [vmem:[#allocation10 + $0x278] sm:$0xff]  ;;  %v879_v10 = vld [vmem:[#allocation10 + $0x428] sm:$0xff]  ;;  %v3991_v12 = vpack.c.bf16 %v873_v6, %v865_v5  ;;  %v952_v23 = vld [vmem:[#allocation10 + $0x670] sm:$0xff] }
 0x333   :  { %v2196_v34 = vsel %vm2195_vm3, %v2193_v33, -inf  ;;  %v3851_v33 = vpack.c.bf16 %v823_v17, %v815_v54  ;;  %v3979_v39 = vpack.c.bf16 %v825_v31, %v817_v30  ;;  %v881_v54 = vld [vmem:[#allocation10 + $0x438] sm:$0xff]  ;;  %v3867_v21 = vpack.c.bf16 %v887_v11, %v879_v10  ;;  %v895_v30 = vld [vmem:[#allocation10 + $0x4a8] sm:$0xff] }
 0x334   :  { %2197 = vmax.xlane.f32.xlu0 %v2196_v34  ;;  %v814_v34 = vld [vmem:[#allocation10 + $0x220] sm:$0xff]  ;;  %3850 = vmatpush1.bf16.msra.mxu0 %v3849_v24  ;;  %v889_v17 = vld [vmem:[#allocation10 + $0x478] sm:$0xff]  ;;  %v3993_v24 = vpack.c.bf16 %v872_v14, %v864_v13  ;;  %v903_v31 = vld [vmem:[#allocation10 + $0x4e8] sm:$0xff] }
 0x335   :  { %v3853_v16 = vpack.c.bf16 %v822_v35, %v814_v34  ;;  %3852 = vmatprep.subr.bf16.mxu0 %v3851_v33  ;;  %3980 = vmatprep.subr.bf16.mxu1 %v3979_v39  ;;  %v3995_v33 = vpack.c.bf16 %v889_v17, %v881_v54  ;;  %v880_v34 = vld [vmem:[#allocation10 + $0x430] sm:$0xff]  ;;  %v3871_v39 = vpack.c.bf16 %v903_v31, %v895_v30  ;;  %v943_v5 = vld [vmem:[#allocation10 + $0x628] sm:$0xff]  ;;  %v945_v10 = vld [vmem:[#allocation10 + $0x638] sm:$0xff] }
 0x336   :  { %3982 = vmatpush1.bf16.msra.mxu1 %v3981_v46  ;;  %v888_v35 = vld [vmem:[#allocation10 + $0x470] sm:$0xff]  ;;  %v3873_v46 = vpack.c.bf16 %v902_v41, %v894_v40  ;;  %v951_v6 = vld [vmem:[#allocation10 + $0x668] sm:$0xff]  ;;  %v953_v11 = vld [vmem:[#allocation10 + $0x678] sm:$0xff] }
 0x337   :  { %3984 = vmatprep.subr.bf16.mxu1 %v3983_v49  ;;  %v3875_v49 = vpack.c.bf16 %v919_v43, %v911_v42  ;;  %v942_v13 = vld [vmem:[#allocation10 + $0x620] sm:$0xff]  ;;  %v959_v54 = vld [vmem:[#allocation10 + $0x6a8] sm:$0xff]  ;;  %v961_v30 = vld [vmem:[#allocation10 + $0x6b8] sm:$0xff] }
 0x338   :  { %3854 = vmatpush1.bf16.msra.mxu0 %v3853_v16  ;;  %v3997_v16 = vpack.c.bf16 %v888_v35, %v880_v34  ;;  %v950_v14 = vld [vmem:[#allocation10 + $0x660] sm:$0xff]  ;;  %v967_v17 = vld [vmem:[#allocation10 + $0x6e8] sm:$0xff]  ;;  %v969_v31 = vld [vmem:[#allocation10 + $0x6f8] sm:$0xff] }
 0x339   :  { %3856 = vmatprep.subr.bf16.mxu0 %v3855_v44  ;;  %v3999_v44 = vpack.c.bf16 %v905_v38, %v897_v37  ;;  %v958_v34 = vld [vmem:[#allocation10 + $0x6a0] sm:$0xff]  ;;  %v975_v37 = vld [vmem:[#allocation10 + $0x728] sm:$0xff]  ;;  %v960_v40 = vld [vmem:[#allocation10 + $0x6b0] sm:$0xff] }
 0x33a   :  { %3986 = vmatpush1.bf16.msra.mxu1 %v3985_v62  ;;  %v3877_v62 = vpack.c.bf16 %v918_v51, %v910_v50  ;;  %v966_v35 = vld [vmem:[#allocation10 + $0x6e0] sm:$0xff]  ;;  %v983_v38 = vld [vmem:[#allocation10 + $0x768] sm:$0xff]  ;;  %v968_v41 = vld [vmem:[#allocation10 + $0x6f0] sm:$0xff] }
 0x33b   :  { %3988 = vmatprep.subr.bf16.mxu1 %v3987_v1  ;;  %v3879_v1 = vpack.c.bf16 %v935_v58, %v927_v57  ;;  %v977_v42 = vld [vmem:[#allocation10 + $0x738] sm:$0xff]  ;;  %v976_v50 = vld [vmem:[#allocation10 + $0x730] sm:$0xff] }
 0x33c   :  { %3858 = vmatpush1.bf16.msra.mxu0 %v3857_v52  ;;  %v4001_v52 = vpack.c.bf16 %v904_v45, %v896_v19  ;;  %v985_v43 = vld [vmem:[#allocation10 + $0x778] sm:$0xff]  ;;  %v974_v19 = vld [vmem:[#allocation10 + $0x720] sm:$0xff]  ;;  %v984_v51 = vld [vmem:[#allocation10 + $0x770] sm:$0xff] }
 0x33d   :  { %3860 = vmatprep.subr.bf16.mxu0 %v3859_v59  ;;  %v4003_v59 = vpack.c.bf16 %v921_v48, %v913_v47  ;;  %v982_v45 = vld [vmem:[#allocation10 + $0x760] sm:$0xff]  ;;  %v991_v47 = vld [vmem:[#allocation10 + $0x7a8] sm:$0xff]  ;;  %v993_v57 = vld [vmem:[#allocation10 + $0x7b8] sm:$0xff] }
 0x33e   :  { %3990 = vmatpush1.bf16.msra.mxu1 %v3989_v53  ;;  %v3881_v53 = vpack.c.bf16 %v934_v3, %v926_v2  ;;  %v999_v48 = vld [vmem:[#allocation10 + $0x7e8] sm:$0xff]  ;;  %v1001_v58 = vld [vmem:[#allocation10 + $0x7f8] sm:$0xff]  ;;  %v992_v2 = vld [vmem:[#allocation10 + $0x7b0] sm:$0xff] }
 0x33f   :  { %3992 = vmatprep.subr.bf16.mxu1 %v3991_v12  ;;  %v3883_v12 = vpack.c.bf16 %v951_v6, %v943_v5  ;;  %v1000_v3 = vld [vmem:[#allocation10 + $0x7f0] sm:$0xff]  ;;  %v1009_v5 = vld [vmem:[#allocation10 + $0x838] sm:$0xff] }
 0x340   :  { %3862 = vmatpush1.bf16.msra.mxu0 %v3861_v4  ;;  %v4005_v4 = vpack.c.bf16 %v920_v61, %v912_v60  ;;  %v990_v60 = vld [vmem:[#allocation10 + $0x7a0] sm:$0xff]  ;;  %v1017_v6 = vld [vmem:[#allocation10 + $0x878] sm:$0xff] }
 0x341   :  { %3864 = vmatprep.subr.bf16.mxu0 %v3863_v7  ;;  %v4007_v7 = vpack.c.bf16 %v937_v0, %v929_v63  ;;  %v998_v61 = vld [vmem:[#allocation10 + $0x7e0] sm:$0xff]  ;;  %v1007_v63 = vld [vmem:[#allocation10 + $0x828] sm:$0xff] }
 0x342   :  { %3994 = vmatpush1.bf16.msra.mxu1 %v3993_v24  ;;  %v3885_v24 = vpack.c.bf16 %v950_v14, %v942_v13  ;;  %v1015_v0 = vld [vmem:[#allocation10 + $0x868] sm:$0xff]  ;;  %v1008_v13 = vld [vmem:[#allocation10 + $0x830] sm:$0xff] }
 0x343   :  { %3996 = vmatprep.subr.bf16.mxu1 %v3995_v33  ;;  %v3887_v33 = vpack.c.bf16 %v967_v17, %v959_v54  ;;  %v1016_v14 = vld [vmem:[#allocation10 + $0x870] sm:$0xff]  ;;  %v1025_v54 = vld [vmem:[#allocation10 + $0x8b8] sm:$0xff] }
 0x344   :  { %3866 = vmatpush1.bf16.msra.mxu0 %v3865_v15  ;;  %v4009_v15 = vpack.c.bf16 %v936_v9, %v928_v8  ;;  %v1006_v8 = vld [vmem:[#allocation10 + $0x820] sm:$0xff]  ;;  %v1033_v17 = vld [vmem:[#allocation10 + $0x8f8] sm:$0xff] }
 0x345   :  { %3868 = vmatprep.subr.bf16.mxu0 %v3867_v21  ;;  %v4011_v21 = vpack.c.bf16 %v953_v11, %v945_v10  ;;  %v1014_v9 = vld [vmem:[#allocation10 + $0x860] sm:$0xff]  ;;  %v1023_v10 = vld [vmem:[#allocation10 + $0x8a8] sm:$0xff] }
 0x346   :  { %3998 = vmatpush1.bf16.msra.mxu1 %v3997_v16  ;;  %v3889_v16 = vpack.c.bf16 %v966_v35, %v958_v34  ;;  %v1031_v11 = vld [vmem:[#allocation10 + $0x8e8] sm:$0xff]  ;;  %v4031_v34 = vpack.c.bf16 %v1033_v17, %v1025_v54  ;;  %v1024_v35 = vld [vmem:[#allocation10 + $0x8b0] sm:$0xff]  ;;  %v1089_v17 = vld [vmem:[#allocation10 + $0xab8] sm:$0xff] }
 0x347   :  { %4000 = vmatprep.subr.bf16.mxu1 %v3999_v44  ;;  %v3891_v44 = vpack.c.bf16 %v983_v38, %v975_v37  ;;  %v1041_v38 = vld [vmem:[#allocation10 + $0x938] sm:$0xff] }
 0x348   :  { %3870 = vmatpush1.bf16.msra.mxu0 %v3869_v36  ;;  %v4013_v36 = vpack.c.bf16 %v952_v23, %v944_v22  ;;  %v1022_v22 = vld [vmem:[#allocation10 + $0x8a0] sm:$0xff] }
 0x349   :  { %3872 = vmatprep.subr.bf16.mxu0 %v3871_v39  ;;  %v4015_v39 = vpack.c.bf16 %v969_v31, %v961_v30  ;;  %v1030_v23 = vld [vmem:[#allocation10 + $0x8e0] sm:$0xff]  ;;  %v1039_v30 = vld [vmem:[#allocation10 + $0x928] sm:$0xff] }
 0x34a   :  { %4002 = vmatpush1.bf16.msra.mxu1 %v4001_v52  ;;  %v3893_v52 = vpack.c.bf16 %v982_v45, %v974_v19  ;;  %v1047_v31 = vld [vmem:[#allocation10 + $0x968] sm:$0xff]  ;;  %v3905_v37 = vpack.c.bf16 %v1030_v23, %v1022_v22  ;;  %v4468_v22 = vld [vmem:[#allocation5 + $0x18] sm:$0xff] }
 0x34b   :  { %4004 = vmatprep.subr.bf16.mxu1 %v4003_v59  ;;  %v3895_v59 = vpack.c.bf16 %v999_v48, %v991_v47  ;;  %v1063_v19 = vld [vmem:[#allocation10 + $0x9e8] sm:$0xff]  ;;  %v1048_v47 = vld [vmem:[#allocation10 + $0x970] sm:$0xff]  ;;  %v4463_v48 = vld [vmem:[#allocation5 + $0x20] sm:$0xff] }
 0x34c   :  { %3874 = vmatpush1.bf16.msra.mxu0 %v3873_v46  ;;  %v4017_v46 = vpack.c.bf16 %v968_v41, %v960_v40  ;;  %v4462_v40 = vld [vmem:[#allocation5 + $0x28] sm:$0xff]  ;;  %v3907_v41 = vpack.c.bf16 %v1047_v31, %v1039_v30 }
 0x34d   :  { %3876 = vmatprep.subr.bf16.mxu0 %v3875_v49  ;;  %v4019_v49 = vpack.c.bf16 %v985_v43, %v977_v42  ;;  %v1046_v42 = vld [vmem:[#allocation10 + $0x960] sm:$0xff] }
 0x34e   :  { %4006 = vmatpush1.bf16.msra.mxu1 %v4005_v4  ;;  %v3897_v4 = vpack.c.bf16 %v998_v61, %v990_v60  ;;  %v1071_v61 = vld [vmem:[#allocation10 + $0xa28] sm:$0xff]  ;;  %v1094_v30 = vld [vmem:[#allocation10 + $0xae0] sm:$0xff] }
 0x34f   :  { %4008 = vmatprep.subr.bf16.mxu1 %v4007_v7  ;;  %v3899_v7 = vpack.c.bf16 %v1015_v0, %v1007_v63  ;;  %v1056_v0 = vld [vmem:[#allocation10 + $0x9b0] sm:$0xff] }
 0x350   :  { %3878 = vmatpush1.bf16.msra.mxu0 %v3877_v62  ;;  %v4021_v62 = vpack.c.bf16 %v984_v51, %v976_v50  ;;  %v1057_v50 = vld [vmem:[#allocation10 + $0x9b8] sm:$0xff] }
 0x351   :  { %3880 = vmatprep.subr.bf16.mxu0 %v3879_v1  ;;  %v4023_v1 = vpack.c.bf16 %v1001_v58, %v993_v57  ;;  %v1065_v51 = vld [vmem:[#allocation10 + $0x9f8] sm:$0xff]  ;;  %v1054_v58 = vld [vmem:[#allocation10 + $0x9a0] sm:$0xff] }
 0x352   :  { %4010 = vmatpush1.bf16.msra.mxu1 %v4009_v15  ;;  %v3901_v15 = vpack.c.bf16 %v1014_v9, %v1006_v8  ;;  %v4039_v63 = vpack.c.bf16 %v1065_v51, %v1057_v50  ;;  %v1070_v8 = vld [vmem:[#allocation10 + $0xa20] sm:$0xff]  ;;  %v1129_v50 = vld [vmem:[#allocation10 + $0xbf8] sm:$0xff] }
 0x353   :  { %4012 = vmatprep.subr.bf16.mxu1 %v4011_v21  ;;  %v3903_v21 = vpack.c.bf16 %v1031_v11, %v1023_v10  ;;  %v1078_v9 = vld [vmem:[#allocation10 + $0xa60] sm:$0xff]  ;;  %v1087_v10 = vld [vmem:[#allocation10 + $0xaa8] sm:$0xff] }
 0x354   :  { %3882 = vmatpush1.bf16.msra.mxu0 %v3881_v53  ;;  %v4025_v53 = vpack.c.bf16 %v1000_v3, %v992_v2  ;;  %v4465_v2 = vld [vmem:[#allocation5 + $0x40] sm:$0xff]  ;;  %v1095_v11 = vld [vmem:[#allocation10 + $0xae8] sm:$0xff]  ;;  %v3917_v54 = vpack.c.bf16 %v1078_v9, %v1070_v8 }
 0x355   :  { %3884 = vmatprep.subr.bf16.mxu0 %v3883_v12  ;;  %v4027_v12 = vpack.c.bf16 %v1017_v6, %v1009_v5  ;;  %v1081_v5 = vld [vmem:[#allocation10 + $0xa78] sm:$0xff]  ;;  %v4466_v6 = vld [vmem:[#allocation5 + $0x68] sm:$0xff]  ;;  %v3919_v23 = vpack.c.bf16 %v1095_v11, %v1087_v10  ;;  %v1144_v10 = vld [vmem:[#allocation10 + $0xc70] sm:$0xff] }
 0x356   :  { %4014 = vmatpush1.bf16.msra.mxu1 %v4013_v36  ;;  %v1032_v36 = vld [vmem:[#allocation10 + $0x8f0] sm:$0xff]  ;;  %v1159_v8 = vld [vmem:[#allocation10 + $0xce8] sm:$0xff] }
 0x357   :  { %4016 = vmatprep.subr.bf16.mxu1 %v4015_v39  ;;  %v1049_v39 = vld [vmem:[#allocation10 + $0x978] sm:$0xff]  ;;  %v4033_v43 = vpack.c.bf16 %v1032_v36, %v1024_v35  ;;  %v1088_v36 = vld [vmem:[#allocation10 + $0xab0] sm:$0xff] }
 0x358   :  { %3886 = vmatpush1.bf16.msra.mxu0 %v3885_v24  ;;  %v4029_v24 = vpack.c.bf16 %v1016_v14, %v1008_v13  ;;  %v4035_v45 = vpack.c.bf16 %v1049_v39, %v1041_v38  ;;  %v1072_v13 = vld [vmem:[#allocation10 + $0xa30] sm:$0xff]  ;;  %v1105_v39 = vld [vmem:[#allocation10 + $0xb38] sm:$0xff] }
 0x359   :  { %3888 = vmatprep.subr.bf16.mxu0 %v3887_v33  ;;  %v4461_v33 = vld [vmem:[#allocation5] sm:$0xff]  ;;  %v1080_v14 = vld [vmem:[#allocation10 + $0xa70] sm:$0xff] }
 0x35a   :  { %4018 = vmatpush1.bf16.msra.mxu1 %v4017_v46  ;;  %v1040_v46 = vld [vmem:[#allocation10 + $0x930] sm:$0xff]  ;;  %v4045_v31 = vpack.c.bf16 %v1080_v14, %v1072_v13  ;;  %v1161_v13 = vld [vmem:[#allocation10 + $0xcf8] sm:$0xff] }
 0x35b   :  { %4020 = vmatprep.subr.bf16.mxu1 %v4019_v49  ;;  %v4037_v60 = vpack.c.bf16 %v1048_v47, %v1040_v46  ;;  %v1104_v46 = vld [vmem:[#allocation10 + $0xb30] sm:$0xff] }
 0x35c   :  { %3890 = vmatpush1.bf16.msra.mxu0 %v3889_v16  ;;  %v1038_v16 = vld [vmem:[#allocation10 + $0x920] sm:$0xff]  ;;  %v1112_v47 = vld [vmem:[#allocation10 + $0xb70] sm:$0xff] }
 0x35d   :  { %3892 = vmatprep.subr.bf16.mxu0 %v3891_v44  ;;  %v1055_v44 = vld [vmem:[#allocation10 + $0x9a8] sm:$0xff]  ;;  %v3909_v49 = vpack.c.bf16 %v1046_v42, %v1038_v16  ;;  %v1102_v16 = vld [vmem:[#allocation10 + $0xb20] sm:$0xff] }
 0x35e   :  { %4022 = vmatpush1.bf16.msra.mxu1 %v4021_v62  ;;  %v3911_v57 = vpack.c.bf16 %v1063_v19, %v1055_v44  ;;  %v1079_v62 = vld [vmem:[#allocation10 + $0xa68] sm:$0xff]  ;;  %v1110_v42 = vld [vmem:[#allocation10 + $0xb60] sm:$0xff] }
 0x35f   :  { %4024 = vmatprep.subr.bf16.mxu1 %v4023_v1  ;;  %v1064_v1 = vld [vmem:[#allocation10 + $0x9f0] sm:$0xff]  ;;  %v1119_v44 = vld [vmem:[#allocation10 + $0xba8] sm:$0xff] }
 0x360   :  { %3894 = vmatpush1.bf16.msra.mxu0 %v3893_v52  ;;  %v4464_v52 = vld [vmem:[#allocation5 + $0x48] sm:$0xff] }
 0x361   :  { %3896 = vmatprep.subr.bf16.mxu0 %v3895_v59  ;;  %v1062_v59 = vld [vmem:[#allocation10 + $0x9e0] sm:$0xff]  ;;  %v1127_v19 = vld [vmem:[#allocation10 + $0xbe8] sm:$0xff] }
 0x362   :  { %4026 = vmatpush1.bf16.msra.mxu1 %v4025_v53  ;;  %v3913_v3 = vpack.c.bf16 %v1062_v59, %v1054_v58  ;;  %v4041_v53 = vpack.c.bf16 %v1064_v1, %v1056_v0  ;;  %v3927_v51 = vpack.c.bf16 %v1127_v19, %v1119_v44  ;;  %v4053_v58 = vpack.c.bf16 %v1112_v47, %v1104_v46  ;;  %v1135_v59 = vld [vmem:[#allocation10 + $0xc28] sm:$0xff]  ;;  %v1137_v1 = vld [vmem:[#allocation10 + $0xc38] sm:$0xff]  ;;  %v1168_v19 = vld [vmem:[#allocation10 + $0xd30] sm:$0xff] }
 0x363   :  { %4028 = vmatprep.subr.bf16.mxu1 %v4027_v12 }
 0x364   :  { %3898 = vmatpush1.bf16.msra.mxu0 %v3897_v4  ;;  %v1073_v4 = vld [vmem:[#allocation10 + $0xa38] sm:$0xff] }
 0x365   :  { %3900 = vmatprep.subr.bf16.mxu0 %v3899_v7  ;;  %1899 = vmatmul.mubr.f32.vlgmr.msra.gmra.mrb[10].mxu1 %v4461_v33  ;;  %v3915_v7 = vpack.c.bf16 %v1079_v62, %v1071_v61  ;;  %v4043_v12 = vpack.c.bf16 %v1081_v5, %v1073_v4  ;;  %v1120_v62 = vld [vmem:[#allocation10 + $0xbb0] sm:$0xff]  ;;  %v1134_v4 = vld [vmem:[#allocation10 + $0xc20] sm:$0xff] }
 0x366   :  { %4030 = vmatpush1.bf16.msra.mxu1 %v4029_v24  ;;  %1904 = vmatprep.mubr.f32.mxu1 %v4462_v40  ;;  %v1086_v24 = vld [vmem:[#allocation10 + $0xaa0] sm:$0xff] }
 0x367   :  { %1721 = vmatmul.mubr.f32.vlgmr.msra.gmra.mrb[10].mxu0 %v4461_v33  ;;  %4032 = vmatprep.subr.bf16.mxu1 %v4031_v34  ;;  %v1103_v33 = vld [vmem:[#allocation10 + $0xb28] sm:$0xff]  ;;  %v3921_v38 = vpack.c.bf16 %v1094_v30, %v1086_v24  ;;  %v1142_v5 = vld [vmem:[#allocation10 + $0xc60] sm:$0xff]  ;;  %v1152_v24 = vld [vmem:[#allocation10 + $0xcb0] sm:$0xff] }
 0x368   :  { %3902 = vmatpush1.bf16.msra.mxu0 %v3901_v15  ;;  %1726 = vmatprep.mubr.f32.mxu0 %v4462_v40  ;;  %v4467_v15 = vld [vmem:[#allocation5 + $0x60] sm:$0xff]  ;;  %v1111_v34 = vld [vmem:[#allocation10 + $0xb68] sm:$0xff]  ;;  %v3933_v11 = vpack.c.bf16 %v1142_v5, %v1134_v4  ;;  %v1160_v30 = vld [vmem:[#allocation10 + $0xcf0] sm:$0xff] }
 0x369   :  { %3904 = vmatprep.subr.bf16.mxu0 %v3903_v21  ;;  %1905 = vmatmul.mubr.f32.gmra.mrb[12].mxu1 %v4463_v48  ;;  %v1097_v21 = vld [vmem:[#allocation10 + $0xaf8] sm:$0xff]  ;;  %v1184_v4 = vld [vmem:[#allocation10 + $0xdb0] sm:$0xff] }
 0x36a   :  { %4034 = vmatpush1.bf16.msra.mxu1 %v4033_v43  ;;  %1910 = vmatprep.mubr.f32.mxu1 %v4464_v52  ;;  %v4047_v35 = vpack.c.bf16 %v1097_v21, %v1089_v17  ;;  %v1113_v40 = vld [vmem:[#allocation10 + $0xb78] sm:$0xff]  ;;  %v1167_v21 = vld [vmem:[#allocation10 + $0xd28] sm:$0xff] }
 0x36b   :  { %1727 = vmatmul.mubr.f32.gmra.mrb[12].mxu0 %v4463_v48  ;;  %4036 = vmatprep.subr.bf16.mxu1 %v4035_v45  ;;  %v4051_v45 = vpack.c.bf16 %v1113_v40, %v1105_v39  ;;  %v3925_v48 = vpack.c.bf16 %v1110_v42, %v1102_v16  ;;  %v1191_v39 = vld [vmem:[#allocation10 + $0xde8] sm:$0xff] }
 0x36c   :  { %3906 = vmatpush1.bf16.msra.mxu0 %v3905_v37  ;;  %1732 = vmatprep.mubr.f32.mxu0 %v4464_v52  ;;  %v1096_v37 = vld [vmem:[#allocation10 + $0xaf0] sm:$0xff]  ;;  %v1118_v52 = vld [vmem:[#allocation10 + $0xba0] sm:$0xff] }
 0x36d   :  { %3908 = vmatprep.subr.bf16.mxu0 %v3907_v41  ;;  %1911 = vmatmul.mubr.f32.gmra.mrb[14].mxu1 %v4465_v2  ;;  %v3923_v41 = vpack.c.bf16 %v1111_v34, %v1103_v33  ;;  %v4049_v43 = vpack.c.bf16 %v1096_v37, %v1088_v36  ;;  %v1166_v33 = vld [vmem:[#allocation10 + $0xd20] sm:$0xff]  ;;  %v1169_v34 = vld [vmem:[#allocation10 + $0xd38] sm:$0xff] }
 0x36e   :  { %4038 = vmatpush1.bf16.msra.mxu1 %v4037_v60  ;;  %1916 = vmatprep.mubr.f32.mxu1 %v4466_v6  ;;  %v1143_v60 = vld [vmem:[#allocation10 + $0xc68] sm:$0xff]  ;;  %v1174_v37 = vld [vmem:[#allocation10 + $0xd60] sm:$0xff] }
 0x36f   :  { %1733 = vmatmul.mubr.f32.gmra.mrb[14].mxu0 %v4465_v2  ;;  %4040 = vmatprep.subr.bf16.mxu1 %v4039_v63  ;;  %v1128_v63 = vld [vmem:[#allocation10 + $0xbf0] sm:$0xff]  ;;  %v1145_v2 = vld [vmem:[#allocation10 + $0xc78] sm:$0xff]  ;;  %v3941_v46 = vpack.c.bf16 %v1174_v37, %v1166_v33  ;;  %v1239_v37 = vld [vmem:[#allocation10 + $0xf68] sm:$0xff] }
 0x370   :  { %3910 = vmatpush1.bf16.msra.mxu0 %v3909_v49  ;;  %1738 = vmatprep.mubr.f32.mxu0 %v4466_v6  ;;  %v1121_v49 = vld [vmem:[#allocation10 + $0xbb8] sm:$0xff]  ;;  %v4057_v6 = vpack.c.bf16 %v1128_v63, %v1120_v62  ;;  %v4059_v9 = vpack.c.bf16 %v1145_v2, %v1137_v1  ;;  %v1199_v2 = vld [vmem:[#allocation10 + $0xe28] sm:$0xff] }
 0x371   :  { %3912 = vmatprep.subr.bf16.mxu0 %v3911_v57  ;;  %1917 = vmatmul.mubr.f32.gmra.mrb[16].mxu1 %v4467_v15  ;;  %v1126_v57 = vld [vmem:[#allocation10 + $0xbe0] sm:$0xff]  ;;  %v4055_v61 = vpack.c.bf16 %v1129_v50, %v1121_v49  ;;  %v1193_v1 = vld [vmem:[#allocation10 + $0xdf8] sm:$0xff] }
 0x372   :  { %4042 = vmatpush1.bf16.msra.mxu1 %v4041_v53  ;;  %1987 = vmatprep.mubr.f32.mxu1 %v4468_v22  ;;  %v3929_v0 = vpack.c.bf16 %v1126_v57, %v1118_v52  ;;  %v1136_v53 = vld [vmem:[#allocation10 + $0xc30] sm:$0xff]  ;;  %v1182_v52 = vld [vmem:[#allocation10 + $0xda0] sm:$0xff]  ;;  %v1217_v33 = vld [vmem:[#allocation10 + $0xeb8] sm:$0xff] }
 0x373   :  { %1739 = vmatmul.mubr.f32.gmra.mrb[16].mxu0 %v4467_v15  ;;  %4044 = vmatprep.subr.bf16.mxu1 %v4043_v12  ;;  %v1153_v12 = vld [vmem:[#allocation10 + $0xcb8] sm:$0xff]  ;;  %v1150_v15 = vld [vmem:[#allocation10 + $0xca0] sm:$0xff]  ;;  %v4061_v17 = vpack.c.bf16 %v1144_v10, %v1136_v53 }
 0x374   :  { %3914 = vmatpush1.bf16.msra.mxu0 %v3913_v3  ;;  %1809 = vmatprep.mubr.f32.mxu0 %v4468_v22  ;;  %v3931_v3 = vpack.c.bf16 %v1143_v60, %v1135_v59  ;;  %v1175_v22 = vld [vmem:[#allocation10 + $0xd68] sm:$0xff]  ;;  %v1190_v57 = vld [vmem:[#allocation10 + $0xde0] sm:$0xff] }
 0x375   :  { %3916 = vmatprep.subr.bf16.mxu0 %v3915_v7  ;;  %v1151_v7 = vld [vmem:[#allocation10 + $0xca8] sm:$0xff]  ;;  %v3939_v36 = vpack.c.bf16 %v1175_v22, %v1167_v21 }
 0x376   :  { %4046 = vmatpush1.bf16.msra.mxu1 %v4045_v31  ;;  %v3935_v14 = vpack.c.bf16 %v1159_v8, %v1151_v7  ;;  %v1192_v7 = vld [vmem:[#allocation10 + $0xdf0] sm:$0xff]  ;;  %v1198_v8 = vld [vmem:[#allocation10 + $0xe20] sm:$0xff] }
 0x377   :  { %4048 = vmatprep.subr.bf16.mxu1 %v4047_v35  ;;  %v1177_v35 = vld [vmem:[#allocation10 + $0xd78] sm:$0xff]  ;;  %v4073_v53 = vpack.c.bf16 %v1192_v7, %v1184_v4 }
 0x378   :  { %3918 = vmatpush1.bf16.msra.mxu0 %v3917_v54  ;;  %v1158_v54 = vld [vmem:[#allocation10 + $0xce0] sm:$0xff]  ;;  %v4067_v44 = vpack.c.bf16 %v1177_v35, %v1169_v34  ;;  %v1225_v34 = vld [vmem:[#allocation10 + $0xef8] sm:$0xff]  ;;  %v1231_v35 = vld [vmem:[#allocation10 + $0xf28] sm:$0xff] }
 0x379   :  { %3920 = vmatprep.subr.bf16.mxu0 %v3919_v23  ;;  %v4063_v23 = vpack.c.bf16 %v1161_v13, %v1153_v12  ;;  %v3937_v31 = vpack.c.bf16 %v1158_v54, %v1150_v15  ;;  %v1209_v12 = vld [vmem:[#allocation10 + $0xe78] sm:$0xff]  ;;  %v1215_v13 = vld [vmem:[#allocation10 + $0xea8] sm:$0xff]  ;;  %v1200_v54 = vld [vmem:[#allocation10 + $0xe30] sm:$0xff] }
 0x37a   :  { %4050 = vmatpush1.bf16.msra.mxu1 %v4049_v43  ;;  %v1223_v15 = vld [vmem:[#allocation10 + $0xee8] sm:$0xff]  ;;  %v4474_v4 = vld [vmem:[#allocation5 + $0x78] sm:$0xff] }
 0x37b   :  { %4052 = vmatprep.subr.bf16.mxu1 %v4051_v45  ;;  %v1176_v45 = vld [vmem:[#allocation10 + $0xd70] sm:$0xff]  ;;  %v3951_v21 = vpack.c.bf16 %v1223_v15, %v1215_v13 }
 0x37c   :  { %3922 = vmatpush1.bf16.msra.mxu0 %v3921_v38  ;;  %v1183_v38 = vld [vmem:[#allocation10 + $0xda8] sm:$0xff] }
 0x37d   :  { %3924 = vmatprep.subr.bf16.mxu0 %v3923_v41  ;;  %v4065_v41 = vpack.c.bf16 %v1160_v30, %v1152_v24  ;;  %v3943_v47 = vpack.c.bf16 %v1191_v39, %v1183_v38  ;;  %v1222_v24 = vld [vmem:[#allocation10 + $0xee0] sm:$0xff]  ;;  %v1216_v38 = vld [vmem:[#allocation10 + $0xeb0] sm:$0xff] }
 0x37e   :  { %4054 = vmatpush1.bf16.msra.mxu1 %v4053_v58  ;;  %v4069_v58 = vpack.c.bf16 %v1176_v45, %v1168_v19  ;;  %v1224_v39 = vld [vmem:[#allocation10 + $0xef0] sm:$0xff]  ;;  %v1241_v19 = vld [vmem:[#allocation10 + $0xf78] sm:$0xff]  ;;  %v1247_v45 = vld [vmem:[#allocation10 + $0xfa8] sm:$0xff] }
 0x37f   :  { %4056 = vmatprep.subr.bf16.mxu1 %v4055_v61  ;;  %v3945_v61 = vpack.c.bf16 %v1190_v57, %v1182_v52  ;;  %v1246_v52 = vld [vmem:[#allocation10 + $0xfa0] sm:$0xff] }
 0x380   :  { %3926 = vmatpush1.bf16.msra.mxu0 %v3925_v48  ;;  %v1254_v57 = vld [vmem:[#allocation10 + $0xfe0] sm:$0xff] }
 0x381   :  { %3928 = vmatprep.subr.bf16.mxu0 %v3927_v51 }
 0x382   :  { %4058 = vmatpush1.bf16.msra.mxu1 %v4057_v6 }
 0x383   :  { %4060 = vmatprep.subr.bf16.mxu1 %v4059_v9  ;;  %v1206_v9 = vld [vmem:[#allocation10 + $0xe60] sm:$0xff] }
 0x384   :  { %3930 = vmatpush1.bf16.msra.mxu0 %v3929_v0  ;;  %v1185_v0 = vld [vmem:[#allocation10 + $0xdb8] sm:$0xff]  ;;  %v3949_v10 = vpack.c.bf16 %v1206_v9, %v1198_v8 }
 0x385   :  { %3932 = vmatprep.subr.bf16.mxu0 %v3931_v3  ;;  %v1207_v3 = vld [vmem:[#allocation10 + $0xe68] sm:$0xff] }
 0x386   :  { %4062 = vmatpush1.bf16.msra.mxu1 %v4061_v17  ;;  %v3947_v6 = vpack.c.bf16 %v1207_v3, %v1199_v2  ;;  %v1208_v17 = vld [vmem:[#allocation10 + $0xe70] sm:$0xff] }
 0x387   :  { %4064 = vmatprep.subr.bf16.mxu1 %v4063_v23  ;;  %v4077_v22 = vpack.c.bf16 %v1208_v17, %v1200_v54  ;;  %v1214_v23 = vld [vmem:[#allocation10 + $0xea0] sm:$0xff]  ;;  %v4472_v2 = vld [vmem:[#allocation5 + $0x58] sm:$0xff]  ;;  %v4473_v3 = vld [vmem:[#allocation5 + $0x50] sm:$0xff] }
 0x388   :  { %3934 = vmatpush1.bf16.msra.mxu0 %v3933_v11  ;;  %v1201_v11 = vld [vmem:[#allocation10 + $0xe38] sm:$0xff] }
 0x389   :  { %3936 = vmatprep.subr.bf16.mxu0 %v3935_v14  ;;  %v4075_v14 = vpack.c.bf16 %v1209_v12, %v1201_v11 }
 0x38a   :  { %4066 = vmatpush1.bf16.msra.mxu1 %v4065_v41  ;;  %v4081_v41 = vpack.c.bf16 %v1224_v39, %v1216_v38 }
 0x38b   :  { %4068 = vmatprep.subr.bf16.mxu1 %v4067_v44  ;;  %v1233_v44 = vld [vmem:[#allocation10 + $0xf38] sm:$0xff] }
 0x38c   :  { %3938 = vmatpush1.bf16.msra.mxu0 %v3937_v31  ;;  %v3953_v31 = vpack.c.bf16 %v1222_v24, %v1214_v23 }
 0x38d   :  { %3940 = vmatprep.subr.bf16.mxu0 %v3939_v36  ;;  %v4079_v36 = vpack.c.bf16 %v1225_v34, %v1217_v33 }
 0x38e   :  { %4070 = vmatpush1.bf16.msra.mxu1 %v4069_v58  ;;  %v1249_v58 = vld [vmem:[#allocation10 + $0xfb8] sm:$0xff] }
 0x390   :  { %3942 = vmatpush1.bf16.msra.mxu0 %v3941_v46  ;;  %v4083_v46 = vpack.c.bf16 %v1241_v19, %v1233_v44 }
 0x391   :  { %3944 = vmatprep.subr.bf16.mxu0 %v3943_v47  ;;  %v1255_v47 = vld [vmem:[#allocation10 + $0xfe8] sm:$0xff] }
 0x394   :  { %3946 = vmatpush1.bf16.msra.mxu0 %v3945_v61  ;;  %v1248_v61 = vld [vmem:[#allocation10 + $0xfb0] sm:$0xff] }
 0x395   :  { %3948 = vmatprep.subr.bf16.mxu0 %v3947_v6  ;;  %v4475_v6 = vld [vmem:[#allocation5 + $0x70] sm:$0xff] }
 0x398   :  { %3950 = vmatpush1.bf16.msra.mxu0 %v3949_v10 }
 0x399   :  { %3952 = vmatprep.subr.bf16.mxu0 %v3951_v21 }
 0x39c   :  { %3954 = vmatpush1.bf16.msra.mxu0 %v3953_v31 }
 0x3c1   :  { %v2198_v40 = vpop.xlane.xlu0 %2197 }
 0x3c2   :  { %v2203_v16 = vrot.slane %v2198_v40, %v4952_v26  ;;  %v2207_v42 = vrot.slane %v2198_v40, %v4958_v29  ;;  %v2211_v43 = vrot.slane %v2198_v40, %v4955_v28  ;;  %v2215_v48 = vrot.slane %v2198_v40, %v4961_v32 }
 0x3c3   :  { %v3955_v40 = vpack.c.bf16 %v1239_v37, %v1231_v35 }
 0x3c4   :  { %v2220_v49 = vsub.f32 %v5006_v55, %v2203_v16  ;;  %v2221_v50 = vsub.f32 %v5009_v18, %v2207_v42  ;;  %v2222_v51 = vsub.f32 %v5014_v20, %v2211_v43  ;;  %v2223_v62 = vsub.f32 %v5022_v27, %v2215_v48  ;;  %v1230_v16 = vld [vmem:[#allocation10 + $0xf20] sm:$0xff]  ;;  %v1232_v48 = vld [vmem:[#allocation10 + $0xf30] sm:$0xff] }
 0x3c5   :  { %v4071_v27 = vpack.c.bf16 %v1193_v1, %v1185_v0  ;;  %v1238_v42 = vld [vmem:[#allocation10 + $0xf60] sm:$0xff]  ;;  %3956 = vmatprep.subr.bf16.mxu0 %v3955_v40  ;;  %v4469_v0 = vld [vmem:[#allocation5 + $0x10] sm:$0xff]  ;;  %v4470_v1 = vld [vmem:[#allocation5 + $0x38] sm:$0xff] }
 0x3c6   :  { %v2224_v59 = vmul.f32 1.442695, %v2220_v49  ;;  %v2226_v60 = vmul.f32 1.442695, %v2221_v50  ;;  %v2228_v63 = vmul.f32 1.442695, %v2222_v51  ;;  %v3957_v43 = vpack.c.bf16 %v1238_v42, %v1230_v16 }
 0x3c7   :  { %v2230_v55 = vmul.f32 1.442695, %v2223_v62  ;;  %4072 = vmatprep.subr.bf16.mxu1 %v4071_v27  ;;  %v1240_v49 = vld [vmem:[#allocation10 + $0xf70] sm:$0xff]  ;;  %v3959_v50 = vpack.c.bf16 %v1255_v47, %v1247_v45 }
 0x3c8   :  { %4448 = vpow2.f32 %v2224_v59  ;;  %4074 = vmatpush1.bf16.msra.mxu1 %v4073_v53  ;;  %3958 = vmatpush1.bf16.msra.mxu0 %v3957_v43  ;;  %v4085_v51 = vpack.c.bf16 %v1240_v49, %v1232_v48  ;;  %v3961_v59 = vpack.c.bf16 %v1254_v57, %v1246_v52  ;;  %v1256_v62 = vld [vmem:[#allocation10 + $0xff0] sm:$0xff]  ;;  %v1286_v52 = vsub.s32 6, %v4949_v25 }
 0x3c9   :  { %4450 = vpow2.f32 %v2226_v60  ;;  %4076 = vmatprep.subr.bf16.mxu1 %v4075_v14  ;;  %v1257_v60 = vld [vmem:[#allocation10 + $0xff8] sm:$0xff]  ;;  %3960 = vmatprep.subr.bf16.mxu0 %v3959_v50  ;;  %v4471_v27 = vld [vmem:[#allocation5 + $0x30] sm:$0xff]  ;;  %v1290_v57 = vsub.s32 7, %v4949_v25 }
 0x3ca   :  { %4452 = vpow2.f32 %v2228_v63  ;;  %v4087_v63 = vpack.c.bf16 %v1257_v60, %v1249_v58 }
 0x3cb   :  { %4454 = vpow2.f32 %v2230_v55  ;;  %v4089_v55 = vpack.c.bf16 %v1256_v62, %v1248_v61 }
 0x3cc   :  { %4078 = vmatpush1.bf16.msra.mxu1 %v4077_v22  ;;  %3962 = vmatpush1.bf16.msra.mxu0 %v3961_v59 }
 0x3cd   :  { %4080 = vmatprep.subr.bf16.mxu1 %v4079_v36 }
 0x3cf   :  { %1810 = vmatmul.mubr.f32.vlgmr.msra.gmra.mrb[10].mxu0 %v4469_v0 }
 0x3d0   :  { %4082 = vmatpush1.bf16.msra.mxu1 %v4081_v41  ;;  %1815 = vmatprep.mubr.f32.mxu0 %v4470_v1 }
 0x3d1   :  { %4084 = vmatprep.subr.bf16.mxu1 %v4083_v46 }
 0x3d2   :  { %v5038_v18 = vpop.eup %4448 }
 0x3d3   :  { %v5040_v20 = vpop.eup %4450  ;;  %2237 = vperm.xlu1 %4444, %v5038_v18   ;;  %1816 = vmatmul.mubr.f32.gmra.mrb[12].mxu0 %v4471_v27 }
 0x3d4   :  { %2240 = vperm.xlu0 %4445, %v5040_v20   ;;  %v5044_v5 = vpop.eup %4452  ;;  %4086 = vmatpush1.bf16.msra.mxu1 %v4085_v51  ;;  %v1278_v51 = vsub.s32 4, %v4949_v25 }
 0x3d5   :  { %v5047_v30 = vpop.eup %4454  ;;  %4088 = vmatprep.subr.bf16.mxu1 %v4087_v63  ;;  %1821 = vmatprep.mubr.f32.mxu0 %v4472_v2 }
 0x3d7   :  { %2243 = vperm.xlu1 %4444, %v5044_v5   ;;  %1822 = vmatmul.mubr.f32.gmra.mrb[14].mxu0 %v4473_v3 }
 0x3d8   :  { %4090 = vmatpush1.bf16.msra.mxu1 %v4089_v55  ;;  %1827 = vmatprep.mubr.f32.mxu0 %v4474_v4 }
 0x3db   :  { %2246 = vperm.xlu1 %4444, %v5047_v30   ;;  %1988 = vmatmul.mubr.f32.vlgmr.msra.gmra.mrb[10].mxu1 %v4469_v0 }
 0x3dc   :  { %1993 = vmatprep.mubr.f32.mxu1 %v4470_v1  ;;  %1828 = vmatmul.mubr.f32.gmra.mrb[16].mxu0 %v4475_v6 }
 0x3df   :  { %1994 = vmatmul.mubr.f32.gmra.mrb[12].mxu1 %v4471_v27 }
 0x3e0   :  { %1999 = vmatprep.mubr.f32.mxu1 %v4472_v2 }
 0x3e3   :  { %2000 = vmatmul.mubr.f32.gmra.mrb[14].mxu1 %v4473_v3 }
 0x3e4   :  { %2005 = vmatprep.mubr.f32.mxu1 %v4474_v4 }
 0x3e7   :  { %2006 = vmatmul.mubr.f32.gmra.mrb[16].mxu1 %v4475_v6 }
 0x452   :  { %v2238_v7 = vpop.permute.xlu1 %2237 }
 0x453   :  { %v2241_v8 = vpop.permute.xlu0 %2240  ;;  %v2251_v10 = vrot.slane %v2238_v7, %v5012_v56 }
 0x454   :  { %v2255_v53 = vrot.slane %v2241_v8, %v5012_v56 }
 0x456   :  { %v2244_v9 = vpop.permute.xlu1 %2243  ;;  %v2264_v13 = vsel %vm2188_vm0, %v2255_v53, %v2251_v10 }
 0x457   :  { %v2259_v11 = vrot.slane %v2244_v9, %v5012_v56 }
 0x459   :  { %v2265_v15 = vsel %vm2190_vm1, %v2259_v11, %v2264_v13 }
 0x45a   :  { %v2247_v12 = vpop.permute.xlu1 %2246 }
 0x45b   :  { %v2263_v14 = vrot.slane %v2247_v12, %v5012_v56 }
 0x45d   :  { %v2266_v54 = vsel %vm2192_vm2, %v2263_v14, %v2265_v15 }
 0x45e   :  { %v2268_v17 = vsel %vm2195_vm3, %v2266_v54, 0.0 }
 0x45f   :  { %2269 = vadd.xlane.f32.xlu1 %v2268_v17 }
 0x4a2   :  { %v1811_v21 = vpop.f32.mrb[10].mxu0 }
 0x4a3   :  { %v1813_v22 = vpop.f32.mrb[11].mxu0 }
 0x4a6   :  { %v1817_v24 = vpop.f32.mrb[12].mxu0 }
 0x4a7   :  { %v1819_v33 = vpop.f32.mrb[13].mxu0 }
 0x4aa   :  { %v1823_v35 = vpop.f32.mrb[14].mxu0 }
 0x4ab   :  { %v1825_v37 = vpop.f32.mrb[15].mxu0 }
 0x4ae   :  { %v1989_v23 = vpop.f32.mrb[10].mxu1 }
 0x4af   :  { %v1991_v31 = vpop.f32.mrb[11].mxu1  ;;  %v5058_v39 = vpop.f32.mrb[16].mxu0 }
 0x4b0   :  { %v5062_v40 = vpop.f32.mrb[17].mxu0 }
 0x4b2   :  { %v1995_v34 = vpop.f32.mrb[12].mxu1 }
 0x4b3   :  { %v1997_v36 = vpop.f32.mrb[13].mxu1 }
 0x4b6   :  { %v2001_v38 = vpop.f32.mrb[14].mxu1 }
 0x4b7   :  { %v5060_v56 = vpop.f32.mrb[15].mxu1 }
 0x4ba   :  { %v5064_v41 = vpop.f32.mrb[16].mxu1 }
 0x4bb   :  { %v5066_v16 = vpop.f32.mrb[17].mxu1 }
 0x4ec   :  { %v2270_v42 = vpop.xlane.xlu1 %2269 }
 0x4ed   :  { %4456 = vrcp.f32 %v2270_v42 }
 0x4f7   :  { %v4457_v43 = vpop.eup %4456 }
 0x4f8   :  { %v2276_v44 = vrot.slane %v4457_v43, %v4952_v26  ;;  %v2280_v45 = vrot.slane %v4457_v43, %v4958_v29  ;;  %v2284_v47 = vrot.slane %v4457_v43, %v4955_v28  ;;  %v2288_v49 = vrot.slane %v4457_v43, %v4961_v32 }
 0x4fa   :  { %v2293_v19 = vmul.f32 %v5038_v18, %v2276_v44  ;;  %v2294_v46 = vmul.f32 %v5040_v20, %v2280_v45  ;;  %v2295_v48 = vmul.f32 %v5044_v5, %v2284_v47  ;;  %v2296_v50 = vmul.f32 %v5047_v30, %v2288_v49  ;;  %v4476_v20 = vld [vmem:[#allocation11] sm:$0xff] }
 0x4fb   :  { %v1282_v18 = vsub.s32 5, %v4949_v25  ;;  %v1279_v58 = vrot.slane %v4476_v20, %v1278_v51  ;;  %v1287_v60 = vrot.slane %v4476_v20, %v1286_v52  ;;  %v1291_v61 = vrot.slane %v4476_v20, %v1290_v57 }
 0x4fc   :  { %2299 = vperm.xlu0 %4445, %v2293_v19  }
 0x4fd   :  { %v1283_v59 = vrot.slane %v4476_v20, %v1282_v18  ;;  %v4367_v5 = vadd.f32 %v1811_v21, %v1279_v58  ;;  %v4375_v63 = vadd.f32 %v1989_v23, %v1287_v60  ;;  %v4376_v55 = vadd.f32 %v1991_v31, %v1291_v61 }
 0x4fe   :  { %v4369_v3 = vadd.f32 %v1817_v24, %v1279_v58  ;;  %v4377_v6 = vadd.f32 %v1995_v34, %v1287_v60  ;;  %v4371_v53 = vadd.f32 %v1823_v35, %v1279_v58  ;;  %v4378_v10 = vadd.f32 %v1997_v36, %v1291_v61 }
 0x4ff   :  { %v4368_v62 = vadd.f32 %v1813_v22, %v1283_v59  ;;  %v4370_v4 = vadd.f32 %v1819_v33, %v1283_v59  ;;  %v4372_v11 = vadd.f32 %v1825_v37, %v1283_v59  ;;  %v4379_v12 = vadd.f32 %v2001_v38, %v1287_v60 }
 0x500   :  { %2304 = vperm.xlu0 %4445, %v2294_v46  }
 0x504   :  { %2309 = vperm.xlu0 %4445, %v2295_v48  }
 0x508   :  { %2314 = vperm.xlu0 %4445, %v2296_v50   ;;  %v4373_v50 = vadd.f32 %v5058_v39, %v1279_v58 }
 0x57b   :  { %v2300_v0 = vpop.permute.xlu0 %2299 }
 0x57c   :  { %v2317_v30 = vmul.f32 %v4367_v5, %v2300_v0  ;;  %v2318_v1 = vmul.f32 %v4368_v62, %v2300_v0  ;;  %v2319_v27 = vmul.f32 %v4375_v63, %v2300_v0  ;;  %v2320_v2 = vmul.f32 %v4376_v55, %v2300_v0 }
 0x57d   :  { %v4380_v55 = vadd.f32 %v5060_v56, %v1291_v61  ;;  %v4374_v0 = vadd.f32 %v5062_v40, %v1283_v59 }
 0x57e   :  { %v2333_v7 = vrot.slane %v2317_v30, 4  ;;  %v2339_v8 = vrot.slane %v2318_v1, 4  ;;  %v2345_v25 = vrot.slane %v2319_v27, 4  ;;  %v2351_v9 = vrot.slane %v2320_v2, 4 }
 0x57f   :  { %v2305_v13 = vpop.permute.xlu0 %2304 }
 0x580   :  { %v2334_v14 = vadd.f32 %v2333_v7, %v2317_v30  ;;  %v2340_v15 = vadd.f32 %v2339_v8, %v2318_v1  ;;  %v2346_v54 = vadd.f32 %v2345_v25, %v2319_v27  ;;  %v2352_v17 = vadd.f32 %v2351_v9, %v2320_v2 }
 0x581   :  { %v2321_v21 = vmul.f32 %v4369_v3, %v2305_v13  ;;  %v2322_v22 = vmul.f32 %v4370_v4, %v2305_v13  ;;  %v2323_v23 = vmul.f32 %v4377_v6, %v2305_v13  ;;  %v2324_v31 = vmul.f32 %v4378_v10, %v2305_v13 }
 0x582   :  { %v2335_v24 = vrot.slane %v2334_v14, 2  ;;  %v2341_v33 = vrot.slane %v2340_v15, 2  ;;  %v2347_v34 = vrot.slane %v2346_v54, 2  ;;  %v2353_v42 = vrot.slane %v2352_v17, 2 }
 0x583   :  { %v2357_v43 = vrot.slane %v2321_v21, 4  ;;  %v2363_v44 = vrot.slane %v2322_v22, 4  ;;  %v2369_v19 = vrot.slane %v2323_v23, 4  ;;  %v2375_v35 = vrot.slane %v2324_v31, 4  ;;  %v2310_v57 = vpop.permute.xlu0 %2309 }
 0x584   :  { %v2336_v36 = vadd.f32 %v2335_v24, %v2334_v14  ;;  %v2342_v37 = vadd.f32 %v2341_v33, %v2340_v15  ;;  %v2348_v38 = vadd.f32 %v2347_v34, %v2346_v54  ;;  %v2354_v45 = vadd.f32 %v2353_v42, %v2352_v17 }
 0x585   :  { %v2358_v46 = vadd.f32 %v2357_v43, %v2321_v21  ;;  %v2364_v47 = vadd.f32 %v2363_v44, %v2322_v22  ;;  %v2370_v48 = vadd.f32 %v2369_v19, %v2323_v23  ;;  %v2376_v49 = vadd.f32 %v2375_v35, %v2324_v31 }
 0x586   :  { %v2337_v51 = vrot.slane %v2336_v36, 1  ;;  %v2343_v18 = vrot.slane %v2342_v37, 1  ;;  %v2349_v52 = vrot.slane %v2348_v38, 1  ;;  %v2355_v20 = vrot.slane %v2354_v45, 1 }
 0x587   :  { %v2359_v5 = vrot.slane %v2358_v46, 2  ;;  %v2365_v62 = vrot.slane %v2364_v47, 2  ;;  %v2371_v63 = vrot.slane %v2370_v48, 2  ;;  %v4381_v30 = vadd.f32 %v5064_v41, %v1287_v60  ;;  %v2315_v60 = vpop.permute.xlu0 %2314 }
 0x588   :  { %v4382_v1 = vadd.f32 %v5066_v16, %v1291_v61  ;;  %v2377_v39 = vrot.slane %v2376_v49, 2  ;;  %v2325_v58 = vmul.f32 %v4371_v53, %v2310_v57  ;;  %v2326_v4 = vmul.f32 %v4372_v11, %v2310_v57 }
 0x589   :  { %v2360_v27 = vadd.f32 %v2359_v5, %v2358_v46  ;;  %v2366_v2 = vadd.f32 %v2365_v62, %v2364_v47  ;;  %v2372_v3 = vadd.f32 %v2371_v63, %v2370_v48  ;;  %v2327_v6 = vmul.f32 %v4379_v12, %v2310_v57 }
 0x58a   :  { %v2328_v7 = vmul.f32 %v4380_v55, %v2310_v57  ;;  %v5085_v8 = vadd.f32 %v2337_v51, %v2336_v36  ;;  %v5087_v25 = vadd.f32 %v2343_v18, %v2342_v37  ;;  %v5089_v9 = vadd.f32 %v2349_v52, %v2348_v38 }
 0x58b   :  { %v5091_v56 = vadd.f32 %v2355_v20, %v2354_v45  ;;  %v2381_v40 = vrot.slane %v2325_v58, 4  ;;  %v2387_v41 = vrot.slane %v2326_v4, 4  ;;  %v2393_v59 = vrot.slane %v2327_v6, 4 }
 0x58c   :  { %v2399_v16 = vrot.slane %v2328_v7, 4  ;;  %v2361_v61 = vrot.slane %v2360_v27, 1  ;;  %v2367_v10 = vrot.slane %v2366_v2, 1  ;;  %v2373_v13 = vrot.slane %v2372_v3, 1 }
 0x58d   :  { %v2378_v53 = vadd.f32 %v2377_v39, %v2376_v49  ;;  %v2382_v11 = vadd.f32 %v2381_v40, %v2325_v58  ;;  %v2388_v12 = vadd.f32 %v2387_v41, %v2326_v4  ;;  %v2394_v14 = vadd.f32 %v2393_v59, %v2327_v6 }
 0x58e   :  { %v2400_v15 = vadd.f32 %v2399_v16, %v2328_v7  ;;  %v2329_v54 = vmul.f32 %v4373_v50, %v2315_v60  ;;  %v2330_v17 = vmul.f32 %v4374_v0, %v2315_v60  ;;  %v2331_v21 = vmul.f32 %v4381_v30, %v2315_v60 }
 0x58f   :  { %v2332_v22 = vmul.f32 %v4382_v1, %v2315_v60  ;;  %v2383_v23 = vrot.slane %v2382_v11, 2  ;;  %v2389_v31 = vrot.slane %v2388_v12, 2  ;;  %v2395_v24 = vrot.slane %v2394_v14, 2 }
 0x590   :  { %v2401_v33 = vrot.slane %v2400_v15, 2  ;;  %v2405_v34 = vrot.slane %v2329_v54, 4  ;;  %v2411_v42 = vrot.slane %v2330_v17, 4  ;;  %v2417_v43 = vrot.slane %v2331_v21, 4 }
 0x591   :  { %v2423_v44 = vrot.slane %v2332_v22, 4  ;;  %v2384_v19 = vadd.f32 %v2383_v23, %v2382_v11  ;;  %v2390_v35 = vadd.f32 %v2389_v31, %v2388_v12  ;;  %v2396_v36 = vadd.f32 %v2395_v24, %v2394_v14 }
 0x592   :  { %v2402_v37 = vadd.f32 %v2401_v33, %v2400_v15  ;;  %v2406_v38 = vadd.f32 %v2405_v34, %v2329_v54  ;;  %v2412_v45 = vadd.f32 %v2411_v42, %v2330_v17  ;;  %v2418_v46 = vadd.f32 %v2417_v43, %v2331_v21 }
 0x593   :  { %v2424_v47 = vadd.f32 %v2423_v44, %v2332_v22  ;;  %v2379_v48 = vrot.slane %v2378_v53, 1  ;;  %v2385_v49 = vrot.slane %v2384_v19, 1  ;;  %v2391_v50 = vrot.slane %v2390_v35, 1 }
 0x594   :  { %v2397_v51 = vrot.slane %v2396_v36, 1  ;;  %v2407_v18 = vrot.slane %v2406_v38, 2  ;;  %v2413_v52 = vrot.slane %v2412_v45, 2  ;;  %v2419_v57 = vrot.slane %v2418_v46, 2 }
 0x595   :  { %v2425_v20 = vrot.slane %v2424_v47, 2  ;;  %v5093_v5 = vadd.f32 %v2361_v61, %v2360_v27  ;;  %v5095_v62 = vadd.f32 %v2367_v10, %v2366_v2  ;;  %v5097_v63 = vadd.f32 %v2373_v13, %v2372_v3 }
 0x596   :  { %v2403_v55 = vrot.slane %v2402_v37, 1  ;;  %v2408_v0 = vadd.f32 %v2407_v18, %v2406_v38  ;;  %v2414_v30 = vadd.f32 %v2413_v52, %v2412_v45  ;;  %v2420_v1 = vadd.f32 %v2419_v57, %v2418_v46  ;;  %v2692_v38 = vld [vmem:[#allocation13 + $0x38] sm:$0xff]  ;;  %v2685_v45 = vld [vmem:[#allocation13] sm:$0xff]  ;;  %v2698_v52 = vld [vmem:[#allocation13 + $0x68] sm:$0xff] }
 0x597   :  { %v2426_v39 = vadd.f32 %v2425_v20, %v2424_v47  ;;  %v5099_v58 = vadd.f32 %v2379_v48, %v2378_v53  ;;  %v5101_v4 = vadd.f32 %v2385_v49, %v2384_v19  ;;  %v5103_v6 = vadd.f32 %v2391_v50, %v2390_v35  ;;  %v2686_v19 = vld [vmem:[#allocation13 + $0x8] sm:$0xff]  ;;  %v2689_v46 = vld [vmem:[#allocation13 + $0x20] sm:$0xff]  ;;  %v2687_v49 = vld [vmem:[#allocation13 + $0x10] sm:$0xff] }
 0x598   :  { %v5105_v7 = vadd.f32 %v2397_v51, %v2396_v36  ;;  %v2409_v40 = vrot.slane %v2408_v0, 1  ;;  %v2415_v27 = vrot.slane %v2414_v30, 1  ;;  %v2421_v41 = vrot.slane %v2420_v1, 1  ;;  %v2690_v35 = vld [vmem:[#allocation13 + $0x28] sm:$0xff]  ;;  %v2688_v36 = vld [vmem:[#allocation13 + $0x18] sm:$0xff]  ;;  %v2691_v50 = vld [vmem:[#allocation13 + $0x30] sm:$0xff] }
 0x599   :  { %v2427_v2 = vrot.slane %v2426_v39, 1  ;;  %v5107_v59 = vadd.f32 %v2403_v55, %v2402_v37  ;;  %v2445_v3 = vsel %vm2188_vm0, %v5093_v5, %v5085_v8  ;;  %v2448_v16 = vsel %vm2188_vm0, %v5095_v62, %v5087_v25  ;;  %v2694_v51 = vld [vmem:[#allocation13 + $0x48] sm:$0xff]  ;;  %v2696_v57 = vld [vmem:[#allocation13 + $0x58] sm:$0xff] }
 0x59a   :  { %v2451_v60 = vsel %vm2188_vm0, %v5097_v63, %v5089_v9  ;;  %v5118_v61 = vadd.f32 %v2409_v40, %v2408_v0  ;;  %v5120_v10 = vadd.f32 %v2415_v27, %v2414_v30  ;;  %v5122_v13 = vadd.f32 %v2421_v41, %v2420_v1  ;;  %v2700_v20 = vld [vmem:[#allocation13 + $0x78] sm:$0xff]  ;;  %v2693_v30 = vld [vmem:[#allocation13 + $0x40] sm:$0xff]  ;;  %v2699_v27 = vld [vmem:[#allocation13 + $0x70] sm:$0xff] }
 0x59b   :  { %v5124_v53 = vadd.f32 %v2427_v2, %v2426_v39  ;;  %v2446_v11 = vsel %vm2190_vm1, %v5101_v4, %v2445_v3  ;;  %v2449_v12 = vsel %vm2190_vm1, %v5103_v6, %v2448_v16  ;;  %v2452_v14 = vsel %vm2190_vm1, %v5105_v7, %v2451_v60  ;;  %v2697_v1 = vld [vmem:[#allocation13 + $0x60] sm:$0xff]  ;;  %v2695_v39 = vld [vmem:[#allocation13 + $0x50] sm:$0xff]  ;;  %v2702_v41 = vld [vmem:[#allocation13 + $0x88] sm:$0xff] }
 0x59c   :  { %v2447_v15 = vsel %vm2192_vm2, %v5118_v61, %v2446_v11  ;;  %v2450_v54 = vsel %vm2192_vm2, %v5120_v10, %v2449_v12  ;;  %v2453_v17 = vsel %vm2192_vm2, %v5122_v13, %v2452_v14  ;;  %v2454_v21 = vsel %vm2188_vm0, %v5099_v58, %v5091_v56  ;;  %v2706_v2 = vld [vmem:[#allocation13 + $0xa8] sm:$0xff]  ;;  %v2704_v60 = vld [vmem:[#allocation13 + $0x98] sm:$0xff]  ;;  %v2701_v12 = vld [vmem:[#allocation13 + $0x80] sm:$0xff] }
 0x59d   :  { %v2455_v22 = vsel %vm2190_vm1, %v5107_v59, %v2454_v21  ;;  %v2462_v23 = vsel %vm2461_vm4, %v2447_v15, 0.0  ;;  %v2463_v31 = vsel %vm2461_vm4, %v2450_v54, 0.0  ;;  %v2465_v34 = vsel %vm2461_vm4, %v2453_v17, 0.0  ;;  %v2708_v11 = vld [vmem:[#allocation13 + $0xb8] sm:$0xff]  ;;  %v2705_v15 = vld [vmem:[#allocation13 + $0xa0] sm:$0xff]  ;;  %v2703_v54 = vld [vmem:[#allocation13 + $0x90] sm:$0xff] }
 0x59e   :  { %v2456_v24 = vsel %vm2192_vm2, %v5124_v53, %v2455_v22  ;;  %v2464_v33 = vadd.f32 %v2463_v31, %v2462_v23  ;;  %v4091_v37 = vpack.c.bf16 %v2690_v35, %v2686_v19  ;;  %v4219_v47 = vpack.c.bf16 %v2692_v38, %v2688_v36  ;;  %v2707_v17 = vld [vmem:[#allocation13 + $0xb0] sm:$0xff]  ;;  %v2710_v22 = vld [vmem:[#allocation13 + $0xc8] sm:$0xff]  ;;  %v2712_v31 = vld [vmem:[#allocation13 + $0xd8] sm:$0xff] }
 0x59f   :  { %v2467_v43 = vsel %vm2461_vm4, %v2456_v24, 0.0  ;;  %v4093_v48 = vpack.c.bf16 %v2689_v46, %v2685_v45  ;;  %v4221_v18 = vpack.c.bf16 %v2691_v50, %v2687_v49  ;;  %v4095_v55 = vpack.c.bf16 %v2698_v52, %v2694_v51  ;;  %v2714_v23 = vld [vmem:[#allocation13 + $0xe8] sm:$0xff]  ;;  %v2711_v19 = vld [vmem:[#allocation13 + $0xd0] sm:$0xff]  ;;  %v2720_v38 = vld [vmem:[#allocation13 + $0x118] sm:$0xff] }
 0x5a0   :  { %v2466_v42 = vadd.f32 %v2465_v34, %v2464_v33  ;;  %4092 = vmatprep.subr.bf16.mxu0 %v4091_v37  ;;  %4220 = vmatprep.subr.bf16.mxu1 %v4219_v47  ;;  %v4223_v0 = vpack.c.bf16 %v2700_v20, %v2696_v57  ;;  %v4097_v40 = vpack.c.bf16 %v2697_v1, %v2693_v30  ;;  %v2716_v34 = vld [vmem:[#allocation13 + $0xf8] sm:$0xff]  ;;  %v2715_v35 = vld [vmem:[#allocation13 + $0xf0] sm:$0xff]  ;;  %v2718_v36 = vld [vmem:[#allocation13 + $0x108] sm:$0xff] }
 0x5a1   :  { %4094 = vmatpush1.bf16.msra.mxu0 %v4093_v48  ;;  %4222 = vmatpush1.bf16.msra.mxu1 %v4221_v18  ;;  %v4225_v3 = vpack.c.bf16 %v2699_v27, %v2695_v39  ;;  %v4099_v16 = vpack.c.bf16 %v2706_v2, %v2702_v41  ;;  %v4227_v14 = vpack.c.bf16 %v2708_v11, %v2704_v60  ;;  %v2722_v37 = vld [vmem:[#allocation13 + $0x128] sm:$0xff]  ;;  %v2724_v45 = vld [vmem:[#allocation13 + $0x138] sm:$0xff]  ;;  %v2717_v49 = vld [vmem:[#allocation13 + $0x100] sm:$0xff] }
 0x5a2   :  { %v2468_v44 = vadd.f32 %v2467_v43, %v2466_v42  ;;  %4096 = vmatprep.subr.bf16.mxu0 %v4095_v55  ;;  %4224 = vmatprep.subr.bf16.mxu1 %v4223_v0  ;;  %v4101_v21 = vpack.c.bf16 %v2705_v15, %v2701_v12  ;;  %v4229_v24 = vpack.c.bf16 %v2707_v17, %v2703_v54  ;;  %v2709_v42 = vld [vmem:[#allocation13 + $0xc0] sm:$0xff]  ;;  %v2719_v51 = vld [vmem:[#allocation13 + $0x110] sm:$0xff]  ;;  %v2726_v57 = vld [vmem:[#allocation13 + $0x148] sm:$0xff] }
 0x5a3   :  { %v4103_v33 = vpack.c.bf16 %v2714_v23, %v2710_v22  ;;  %v2713_v43 = vld [vmem:[#allocation13 + $0xe0] sm:$0xff]  ;;  %v4233_v47 = vpack.c.bf16 %v2715_v35, %v2711_v19  ;;  %v4107_v48 = vpack.c.bf16 %v2722_v37, %v2718_v36  ;;  %v4235_v18 = vpack.c.bf16 %v2724_v45, %v2720_v38  ;;  %v2723_v52 = vld [vmem:[#allocation13 + $0x130] sm:$0xff]  ;;  %v2730_v20 = vld [vmem:[#allocation13 + $0x168] sm:$0xff] }
 0x5a4   :  { %2469 = vadd.xlane.f32.xlu1 %v2468_v44  ;;  %v4231_v44 = vpack.c.bf16 %v2716_v34, %v2712_v31  ;;  %v4105_v46 = vpack.c.bf16 %v2713_v43, %v2709_v42  ;;  %v2721_v50 = vld [vmem:[#allocation13 + $0x120] sm:$0xff]  ;;  %v2728_v55 = vld [vmem:[#allocation13 + $0x158] sm:$0xff]  ;;  %v4237_v1 = vpack.c.bf16 %v2723_v52, %v2719_v51  ;;  %v4111_v39 = vpack.c.bf16 %v2730_v20, %v2726_v57  ;;  %v2727_v41 = vld [vmem:[#allocation13 + $0x150] sm:$0xff] }
 0x5a5   :  { %4098 = vmatpush1.bf16.msra.mxu0 %v4097_v40  ;;  %4226 = vmatpush1.bf16.msra.mxu1 %v4225_v3  ;;  %v2732_v0 = vld [vmem:[#allocation13 + $0x178] sm:$0xff]  ;;  %v4109_v30 = vpack.c.bf16 %v2721_v50, %v2717_v49  ;;  %v2725_v40 = vld [vmem:[#allocation13 + $0x140] sm:$0xff]  ;;  %v2731_v3 = vld [vmem:[#allocation13 + $0x170] sm:$0xff] }
 0x5a6   :  { %4100 = vmatprep.subr.bf16.mxu0 %v4099_v16  ;;  %4228 = vmatprep.subr.bf16.mxu1 %v4227_v14  ;;  %v2729_v27 = vld [vmem:[#allocation13 + $0x160] sm:$0xff]  ;;  %v4239_v2 = vpack.c.bf16 %v2732_v0, %v2728_v55  ;;  %v2734_v16 = vld [vmem:[#allocation13 + $0x188] sm:$0xff]  ;;  %v2736_v11 = vld [vmem:[#allocation13 + $0x198] sm:$0xff]  ;;  %v4241_v15 = vpack.c.bf16 %v2731_v3, %v2727_v41 }
 0x5a7   :  { %v2738_v60 = vld [vmem:[#allocation13 + $0x1a8] sm:$0xff]  ;;  %v2740_v12 = vld [vmem:[#allocation13 + $0x1b8] sm:$0xff]  ;;  %v4113_v14 = vpack.c.bf16 %v2729_v27, %v2725_v40  ;;  %v2733_v17 = vld [vmem:[#allocation13 + $0x180] sm:$0xff] }
 0x5a8   :  { %v4115_v54 = vpack.c.bf16 %v2738_v60, %v2734_v16  ;;  %v2735_v22 = vld [vmem:[#allocation13 + $0x190] sm:$0xff]  ;;  %v4243_v23 = vpack.c.bf16 %v2740_v12, %v2736_v11  ;;  %v2744_v34 = vld [vmem:[#allocation13 + $0x1d8] sm:$0xff]  ;;  %v2741_v35 = vld [vmem:[#allocation13 + $0x1c0] sm:$0xff] }
 0x5a9   :  { %4102 = vmatpush1.bf16.msra.mxu0 %v4101_v21  ;;  %4230 = vmatpush1.bf16.msra.mxu1 %v4229_v24  ;;  %v2737_v21 = vld [vmem:[#allocation13 + $0x1a0] sm:$0xff]  ;;  %v2739_v31 = vld [vmem:[#allocation13 + $0x1b0] sm:$0xff]  ;;  %v2742_v24 = vld [vmem:[#allocation13 + $0x1c8] sm:$0xff] }
 0x5aa   :  { %4104 = vmatprep.subr.bf16.mxu0 %v4103_v33  ;;  %4232 = vmatprep.subr.bf16.mxu1 %v4231_v44  ;;  %v2746_v33 = vld [vmem:[#allocation13 + $0x1e8] sm:$0xff]  ;;  %v2748_v42 = vld [vmem:[#allocation13 + $0x1f8] sm:$0xff]  ;;  %v4117_v43 = vpack.c.bf16 %v2737_v21, %v2733_v17  ;;  %v4245_v44 = vpack.c.bf16 %v2739_v31, %v2735_v22  ;;  %v2745_v36 = vld [vmem:[#allocation13 + $0x1e0] sm:$0xff] }
 0x5ab   :  { %v4119_v19 = vpack.c.bf16 %v2746_v33, %v2742_v24  ;;  %v2743_v37 = vld [vmem:[#allocation13 + $0x1d0] sm:$0xff]  ;;  %v4247_v38 = vpack.c.bf16 %v2748_v42, %v2744_v34  ;;  %v2756_v49 = vld [vmem:[#allocation13 + $0x238] sm:$0xff]  ;;  %v4121_v50 = vpack.c.bf16 %v2745_v36, %v2741_v35  ;;  %v2749_v52 = vld [vmem:[#allocation13 + $0x200] sm:$0xff] }
 0x5ac   :  { %v2747_v45 = vld [vmem:[#allocation13 + $0x1f0] sm:$0xff]  ;;  %v2753_v57 = vld [vmem:[#allocation13 + $0x220] sm:$0xff] }
 0x5ad   :  { %4106 = vmatpush1.bf16.msra.mxu0 %v4105_v46  ;;  %4234 = vmatpush1.bf16.msra.mxu1 %v4233_v47  ;;  %v2750_v46 = vld [vmem:[#allocation13 + $0x208] sm:$0xff]  ;;  %v4249_v51 = vpack.c.bf16 %v2747_v45, %v2743_v37  ;;  %v2751_v55 = vld [vmem:[#allocation13 + $0x210] sm:$0xff] }
 0x5ae   :  { %4108 = vmatprep.subr.bf16.mxu0 %v4107_v48  ;;  %4236 = vmatprep.subr.bf16.mxu1 %v4235_v18  ;;  %v2754_v47 = vld [vmem:[#allocation13 + $0x228] sm:$0xff]  ;;  %v2752_v48 = vld [vmem:[#allocation13 + $0x218] sm:$0xff]  ;;  %v2755_v0 = vld [vmem:[#allocation13 + $0x230] sm:$0xff] }
 0x5af   :  { %v4123_v18 = vpack.c.bf16 %v2754_v47, %v2750_v46  ;;  %v4251_v20 = vpack.c.bf16 %v2756_v49, %v2752_v48 }
 0x5b1   :  { %4110 = vmatpush1.bf16.msra.mxu0 %v4109_v30  ;;  %4238 = vmatpush1.bf16.msra.mxu1 %v4237_v1  ;;  %v4125_v30 = vpack.c.bf16 %v2753_v57, %v2749_v52  ;;  %v4253_v1 = vpack.c.bf16 %v2755_v0, %v2751_v55 }
 0x5b2   :  { %4112 = vmatprep.subr.bf16.mxu0 %v4111_v39  ;;  %4240 = vmatprep.subr.bf16.mxu1 %v4239_v2 }
 0x5b5   :  { %4114 = vmatpush1.bf16.msra.mxu0 %v4113_v14  ;;  %4242 = vmatpush1.bf16.msra.mxu1 %v4241_v15 }
 0x5b6   :  { %4116 = vmatprep.subr.bf16.mxu0 %v4115_v54  ;;  %4244 = vmatprep.subr.bf16.mxu1 %v4243_v23 }
 0x5b9   :  { %4118 = vmatpush1.bf16.msra.mxu0 %v4117_v43  ;;  %4246 = vmatpush1.bf16.msra.mxu1 %v4245_v44 }
 0x5ba   :  { %4120 = vmatprep.subr.bf16.mxu0 %v4119_v19  ;;  %4248 = vmatprep.subr.bf16.mxu1 %v4247_v38 }
 0x5bd   :  { %4122 = vmatpush1.bf16.msra.mxu0 %v4121_v50  ;;  %4250 = vmatpush1.bf16.msra.mxu1 %v4249_v51 }
 0x5be   :  { %4124 = vmatprep.subr.bf16.mxu0 %v4123_v18  ;;  %4252 = vmatprep.subr.bf16.mxu1 %v4251_v20 }
 0x5c1   :  { %4126 = vmatpush1.bf16.msra.mxu0 %v4125_v30  ;;  %4254 = vmatpush1.bf16.msra.mxu1 %v4253_v1 }
 0x631   :  { %v2470_v39 = vpop.xlane.xlu1 %2469 }
 0x632   :  { %v2472_v40 = vmul.f32 0.001953125, %v2470_v39 }
 0x634   :  { %v2474_v27 = vrot.slane %v2472_v40, 1  ;;  %v2475_v41 = vrot.slane %v2472_v40, 2  ;;  %v2476_v2 = vrot.slane %v2472_v40, 3  ;;  %v5150_v3 = vsub.f32 %v5085_v8, %v2472_v40 }
 0x635   :  { %v5153_v16 = vsub.f32 %v5087_v25, %v2472_v40  ;;  %v5156_v60 = vsub.f32 %v5089_v9, %v2472_v40  ;;  %v5159_v11 = vsub.f32 %v5091_v56, %v2472_v40 }
 0x636   :  { %v5162_v12 = vsub.f32 %v5093_v5, %v2474_v27  ;;  %v5165_v14 = vsub.f32 %v5095_v62, %v2474_v27  ;;  %v5168_v15 = vsub.f32 %v5097_v63, %v2474_v27  ;;  %v5171_v8 = vsub.f32 %v5099_v58, %v2474_v27 }
 0x637   :  { %v5174_v25 = vsub.f32 %v5101_v4, %v2475_v41  ;;  %v5177_v9 = vsub.f32 %v5103_v6, %v2475_v41  ;;  %v5180_v56 = vsub.f32 %v5105_v7, %v2475_v41  ;;  %v5183_v5 = vsub.f32 %v5107_v59, %v2475_v41 }
 0x638   :  { %v5186_v62 = vsub.f32 %v5118_v61, %v2476_v2  ;;  %v5189_v63 = vsub.f32 %v5120_v10, %v2476_v2  ;;  %v5192_v58 = vsub.f32 %v5122_v13, %v2476_v2  ;;  %v5195_v4 = vsub.f32 %v5124_v53, %v2476_v2 }
 0x639   :  { %v2497_v6 = vmul.f32 %v5150_v3, %v5150_v3  ;;  %v2498_v7 = vmul.f32 %v5153_v16, %v5153_v16  ;;  %v2499_v59 = vmul.f32 %v5156_v60, %v5156_v60  ;;  %v2500_v61 = vmul.f32 %v5159_v11, %v5159_v11 }
 0x63a   :  { %v2501_v10 = vmul.f32 %v5162_v12, %v5162_v12  ;;  %v2502_v13 = vmul.f32 %v5165_v14, %v5165_v14  ;;  %v2503_v53 = vmul.f32 %v5168_v15, %v5168_v15  ;;  %v2504_v54 = vmul.f32 %v5171_v8, %v5171_v8 }
 0x63b   :  { %v2505_v17 = vmul.f32 %v5174_v25, %v5174_v25  ;;  %v2506_v21 = vmul.f32 %v5177_v9, %v5177_v9  ;;  %v2507_v22 = vmul.f32 %v5180_v56, %v5180_v56  ;;  %v2508_v23 = vmul.f32 %v5183_v5, %v5183_v5 }
 0x63c   :  { %v2509_v31 = vmul.f32 %v5186_v62, %v5186_v62  ;;  %v2510_v24 = vmul.f32 %v5189_v63, %v5189_v63  ;;  %v2511_v33 = vmul.f32 %v5192_v58, %v5192_v58  ;;  %v2512_v34 = vmul.f32 %v5195_v4, %v5195_v4 }
 0x63d   :  { %v2529_v42 = vrot.slane %v2501_v10, 7  ;;  %v2531_v43 = vrot.slane %v2505_v17, 6  ;;  %v2535_v44 = vrot.slane %v2502_v13, 7  ;;  %v2537_v19 = vrot.slane %v2506_v21, 6  ;;  %v2762_v10 = vld [vmem:[#allocation13 + $0x268] sm:$0xff]  ;;  %v2760_v13 = vld [vmem:[#allocation13 + $0x258] sm:$0xff] }
 0x63e   :  { %v2533_v35 = vrot.slane %v2509_v31, 5  ;;  %v2539_v36 = vrot.slane %v2510_v24, 5  ;;  %v2541_v37 = vrot.slane %v2503_v53, 7  ;;  %v2543_v38 = vrot.slane %v2507_v22, 6  ;;  %v2757_v17 = vld [vmem:[#allocation13 + $0x240] sm:$0xff]  ;;  %v2759_v31 = vld [vmem:[#allocation13 + $0x250] sm:$0xff] }
 0x63f   :  { %v2530_v45 = vsel %vm2188_vm0, %v2529_v42, %v2497_v6  ;;  %v2536_v46 = vsel %vm2188_vm0, %v2535_v44, %v2498_v7  ;;  %v2545_v47 = vrot.slane %v2511_v33, 5  ;;  %v2547_v48 = vrot.slane %v2504_v54, 7  ;;  %v2764_v54 = vld [vmem:[#allocation13 + $0x278] sm:$0xff]  ;;  %v2761_v21 = vld [vmem:[#allocation13 + $0x260] sm:$0xff]  ;;  %v2763_v24 = vld [vmem:[#allocation13 + $0x270] sm:$0xff] }
 0x640   :  { %v2532_v49 = vsel %vm2190_vm1, %v2531_v43, %v2530_v45  ;;  %v2538_v50 = vsel %vm2190_vm1, %v2537_v19, %v2536_v46  ;;  %v2542_v51 = vsel %vm2188_vm0, %v2541_v37, %v2499_v59  ;;  %v2549_v18 = vrot.slane %v2508_v23, 6  ;;  %v2766_v33 = vld [vmem:[#allocation13 + $0x288] sm:$0xff]  ;;  %v2768_v43 = vld [vmem:[#allocation13 + $0x298] sm:$0xff]  ;;  %v2769_v37 = vld [vmem:[#allocation13 + $0x2a0] sm:$0xff] }
 0x641   :  { %v2534_v52 = vsel %vm2192_vm2, %v2533_v35, %v2532_v49  ;;  %v2540_v57 = vsel %vm2192_vm2, %v2539_v36, %v2538_v50  ;;  %v2544_v20 = vsel %vm2190_vm1, %v2543_v38, %v2542_v51  ;;  %v2548_v55 = vsel %vm2188_vm0, %v2547_v48, %v2500_v61  ;;  %v2758_v61 = vld [vmem:[#allocation13 + $0x248] sm:$0xff]  ;;  %v2772_v44 = vld [vmem:[#allocation13 + $0x2b8] sm:$0xff]  ;;  %v2765_v36 = vld [vmem:[#allocation13 + $0x280] sm:$0xff] }
 0x642   :  { %v2546_v0 = vsel %vm2192_vm2, %v2545_v47, %v2544_v20  ;;  %v2550_v30 = vsel %vm2190_vm1, %v2549_v18, %v2548_v55  ;;  %v2551_v1 = vrot.slane %v2512_v34, 5  ;;  %v2557_v39 = vsel %vm2461_vm4, %v2534_v52, 0.0  ;;  %v2770_v42 = vld [vmem:[#allocation13 + $0x2a8] sm:$0xff]  ;;  %v2767_v38 = vld [vmem:[#allocation13 + $0x290] sm:$0xff]  ;;  %v2776_v51 = vld [vmem:[#allocation13 + $0x2d8] sm:$0xff] }
 0x643   :  { %v2558_v40 = vsel %vm2461_vm4, %v2540_v57, 0.0  ;;  %v2560_v2 = vsel %vm2461_vm4, %v2546_v0, 0.0  ;;  %v4127_v53 = vpack.c.bf16 %v2762_v10, %v2758_v61  ;;  %v4255_v22 = vpack.c.bf16 %v2764_v54, %v2760_v13  ;;  %v2771_v46 = vld [vmem:[#allocation13 + $0x2b0] sm:$0xff]  ;;  %v2774_v47 = vld [vmem:[#allocation13 + $0x2c8] sm:$0xff]  ;;  %v2780_v18 = vld [vmem:[#allocation13 + $0x2f8] sm:$0xff] }
 0x644   :  { %v2552_v27 = vsel %vm2192_vm2, %v2551_v1, %v2550_v30  ;;  %v2559_v41 = vadd.f32 %v2558_v40, %v2557_v39  ;;  %v4129_v23 = vpack.c.bf16 %v2761_v21, %v2757_v17  ;;  %v4257_v34 = vpack.c.bf16 %v2763_v24, %v2759_v31  ;;  %v2778_v48 = vld [vmem:[#allocation13 + $0x2e8] sm:$0xff]  ;;  %v2773_v52 = vld [vmem:[#allocation13 + $0x2c0] sm:$0xff]  ;;  %v2775_v55 = vld [vmem:[#allocation13 + $0x2d0] sm:$0xff] }
 0x645   :  { %v2562_v7 = vsel %vm2461_vm4, %v2552_v27, 0.0  ;;  %4128 = vmatprep.subr.bf16.mxu0 %v4127_v53  ;;  %4256 = vmatprep.subr.bf16.mxu1 %v4255_v22  ;;  %v4131_v19 = vpack.c.bf16 %v2770_v42, %v2766_v33  ;;  %v4259_v35 = vpack.c.bf16 %v2772_v44, %v2768_v43  ;;  %v4133_v45 = vpack.c.bf16 %v2769_v37, %v2765_v36  ;;  %v2777_v20 = vld [vmem:[#allocation13 + $0x2e0] sm:$0xff]  ;;  %v2779_v0 = vld [vmem:[#allocation13 + $0x2f0] sm:$0xff]  ;;  %v2782_v1 = vld [vmem:[#allocation13 + $0x308] sm:$0xff] }
 0x646   :  { %v2561_v6 = vadd.f32 %v2560_v2, %v2559_v41  ;;  %4130 = vmatpush1.bf16.msra.mxu0 %v4129_v23  ;;  %4258 = vmatpush1.bf16.msra.mxu1 %v4257_v34  ;;  %v4261_v49 = vpack.c.bf16 %v2771_v46, %v2767_v38  ;;  %v4135_v50 = vpack.c.bf16 %v2778_v48, %v2774_v47  ;;  %v2786_v39 = vld [vmem:[#allocation13 + $0x328] sm:$0xff]  ;;  %v2784_v40 = vld [vmem:[#allocation13 + $0x318] sm:$0xff]  ;;  %v2783_v61 = vld [vmem:[#allocation13 + $0x310] sm:$0xff] }
 0x647   :  { %4132 = vmatprep.subr.bf16.mxu0 %v4131_v19  ;;  %4260 = vmatprep.subr.bf16.mxu1 %v4259_v35  ;;  %v4263_v57 = vpack.c.bf16 %v2780_v18, %v2776_v51  ;;  %v4137_v30 = vpack.c.bf16 %v2777_v20, %v2773_v52  ;;  %v4265_v27 = vpack.c.bf16 %v2779_v0, %v2775_v55  ;;  %v2788_v2 = vld [vmem:[#allocation13 + $0x338] sm:$0xff]  ;;  %v2787_v10 = vld [vmem:[#allocation13 + $0x330] sm:$0xff]  ;;  %v2790_v13 = vld [vmem:[#allocation13 + $0x348] sm:$0xff] }
 0x648   :  { %v2563_v59 = vadd.f32 %v2562_v7, %v2561_v6  ;;  %v4139_v41 = vpack.c.bf16 %v2786_v39, %v2782_v1  ;;  %v2781_v6 = vld [vmem:[#allocation13 + $0x300] sm:$0xff]  ;;  %v2794_v53 = vld [vmem:[#allocation13 + $0x368] sm:$0xff]  ;;  %v2792_v54 = vld [vmem:[#allocation13 + $0x358] sm:$0xff]  ;;  %v4269_v22 = vpack.c.bf16 %v2787_v10, %v2783_v61 }
 0x649   :  { %v2785_v7 = vld [vmem:[#allocation13 + $0x320] sm:$0xff]  ;;  %v2796_v17 = vld [vmem:[#allocation13 + $0x378] sm:$0xff]  ;;  %v4143_v23 = vpack.c.bf16 %v2794_v53, %v2790_v13  ;;  %v2791_v33 = vld [vmem:[#allocation13 + $0x350] sm:$0xff] }
 0x64a   :  { %2564 = vadd.xlane.f32.xlu0 %v2563_v59  ;;  %4134 = vmatpush1.bf16.msra.mxu0 %v4133_v45  ;;  %v4267_v59 = vpack.c.bf16 %v2788_v2, %v2784_v40  ;;  %v4141_v21 = vpack.c.bf16 %v2785_v7, %v2781_v6  ;;  %v2789_v31 = vld [vmem:[#allocation13 + $0x340] sm:$0xff]  ;;  %v4271_v34 = vpack.c.bf16 %v2796_v17, %v2792_v54  ;;  %v2795_v42 = vld [vmem:[#allocation13 + $0x370] sm:$0xff]  ;;  %v2798_v43 = vld [vmem:[#allocation13 + $0x388] sm:$0xff] }
 0x64b   :  { %4262 = vmatpush1.bf16.msra.mxu1 %v4261_v49  ;;  %4136 = vmatprep.subr.bf16.mxu0 %v4135_v50  ;;  %v2793_v24 = vld [vmem:[#allocation13 + $0x360] sm:$0xff]  ;;  %v2802_v44 = vld [vmem:[#allocation13 + $0x3a8] sm:$0xff]  ;;  %v2800_v19 = vld [vmem:[#allocation13 + $0x398] sm:$0xff]  ;;  %v4273_v37 = vpack.c.bf16 %v2795_v42, %v2791_v33 }
 0x64c   :  { %4264 = vmatprep.subr.bf16.mxu1 %v4263_v57  ;;  %v2804_v35 = vld [vmem:[#allocation13 + $0x3b8] sm:$0xff]  ;;  %v4145_v36 = vpack.c.bf16 %v2793_v24, %v2789_v31  ;;  %v4147_v38 = vpack.c.bf16 %v2802_v44, %v2798_v43  ;;  %v2797_v45 = vld [vmem:[#allocation13 + $0x380] sm:$0xff]  ;;  %v2799_v47 = vld [vmem:[#allocation13 + $0x390] sm:$0xff] }
 0x64d   :  { %v2801_v46 = vld [vmem:[#allocation13 + $0x3a0] sm:$0xff]  ;;  %v4275_v48 = vpack.c.bf16 %v2804_v35, %v2800_v19  ;;  %v2803_v49 = vld [vmem:[#allocation13 + $0x3b0] sm:$0xff]  ;;  %v2806_v50 = vld [vmem:[#allocation13 + $0x3c8] sm:$0xff] }
 0x64e   :  { %4138 = vmatpush1.bf16.msra.mxu0 %v4137_v30  ;;  %v2810_v51 = vld [vmem:[#allocation13 + $0x3e8] sm:$0xff]  ;;  %v2808_v18 = vld [vmem:[#allocation13 + $0x3d8] sm:$0xff]  ;;  %v4149_v57 = vpack.c.bf16 %v2801_v46, %v2797_v45  ;;  %v4277_v20 = vpack.c.bf16 %v2803_v49, %v2799_v47  ;;  %v2805_v0 = vld [vmem:[#allocation13 + $0x3c0] sm:$0xff] }
 0x64f   :  { %4266 = vmatpush1.bf16.msra.mxu1 %v4265_v27  ;;  %4140 = vmatprep.subr.bf16.mxu0 %v4139_v41  ;;  %v2812_v52 = vld [vmem:[#allocation13 + $0x3f8] sm:$0xff]  ;;  %v4151_v55 = vpack.c.bf16 %v2810_v51, %v2806_v50  ;;  %v2809_v30 = vld [vmem:[#allocation13 + $0x3e0] sm:$0xff]  ;;  %v2807_v39 = vld [vmem:[#allocation13 + $0x3d0] sm:$0xff] }
 0x650   :  { %4268 = vmatprep.subr.bf16.mxu1 %v4267_v59  ;;  %v4279_v1 = vpack.c.bf16 %v2812_v52, %v2808_v18  ;;  %v2811_v40 = vld [vmem:[#allocation13 + $0x3f0] sm:$0xff]  ;;  %v4153_v27 = vpack.c.bf16 %v2809_v30, %v2805_v0  ;;  %v2814_v2 = vld [vmem:[#allocation13 + $0x408] sm:$0xff]  ;;  %v2816_v7 = vld [vmem:[#allocation13 + $0x418] sm:$0xff] }
 0x651   :  { %v4281_v41 = vpack.c.bf16 %v2811_v40, %v2807_v39  ;;  %v2818_v6 = vld [vmem:[#allocation13 + $0x428] sm:$0xff]  ;;  %v2820_v61 = vld [vmem:[#allocation13 + $0x438] sm:$0xff]  ;;  %v2593_v17 = vld [vmem:[#allocation16] sm:$0xf] }
 0x652   :  { %4142 = vmatpush1.bf16.msra.mxu0 %v4141_v21  ;;  %v4155_v59 = vpack.c.bf16 %v2818_v6, %v2814_v2  ;;  %v4283_v10 = vpack.c.bf16 %v2820_v61, %v2816_v7  ;;  %v2631_v21 = vld [vmem:[#allocation17] sm:$0xf]  ;;  %v5249_v31 = vld [vmem:[#allocation13 + $0x410] sm:$0xff]  ;;  %v5257_v42 = vld [vmem:[#allocation13 + $0x458] sm:$0xff]  ;;  %v5278_v49 = vrot.slane %v2593_v17, %v4961_v32  ;;  %v5284_v51 = vrot.slane %v2593_v17, %v4955_v28 }
 0x653   :  { %4270 = vmatpush1.bf16.msra.mxu1 %v4269_v22  ;;  %4144 = vmatprep.subr.bf16.mxu0 %v4143_v23  ;;  %v5245_v22 = vld [vmem:[#allocation13 + $0x400] sm:$0xff]  ;;  %v5251_v24 = vld [vmem:[#allocation13 + $0x430] sm:$0xff]  ;;  %v5253_v33 = vld [vmem:[#allocation13 + $0x448] sm:$0xff]  ;;  %v5281_v50 = vrot.slane %v2631_v21, %v4961_v32  ;;  %v5297_v0 = vrot.slane %v2631_v21, %v4955_v28 }
 0x654   :  { %4272 = vmatprep.subr.bf16.mxu1 %v4271_v34  ;;  %v5247_v23 = vld [vmem:[#allocation13 + $0x420] sm:$0xff]  ;;  %v5255_v34 = vld [vmem:[#allocation13 + $0x468] sm:$0xff]  ;;  %v5259_v43 = vld [vmem:[#allocation13 + $0x478] sm:$0xff] }
 0x655   :  { %v5261_v44 = vld [vmem:[#allocation13 + $0x440] sm:$0xff]  ;;  %v5265_v35 = vld [vmem:[#allocation13 + $0x450] sm:$0xff]  ;;  %v5272_v46 = vld [vmem:[#allocation13 + $0x488] sm:$0xff] }
 0x656   :  { %4146 = vmatpush1.bf16.msra.mxu0 %v4145_v36  ;;  %v5263_v19 = vld [vmem:[#allocation13 + $0x460] sm:$0xff]  ;;  %v2602_v36 = vrot.slane %v2593_v17, %v4958_v29  ;;  %v5270_v45 = vld [vmem:[#allocation13 + $0x470] sm:$0xff]  ;;  %v5274_v47 = vld [vmem:[#allocation13 + $0x4a8] sm:$0xff] }
 0x657   :  { %4274 = vmatpush1.bf16.msra.mxu1 %v4273_v37  ;;  %4148 = vmatprep.subr.bf16.mxu0 %v4147_v38  ;;  %v2640_v37 = vrot.slane %v2631_v21, %v4958_v29  ;;  %v2598_v38 = vrot.slane %v2593_v17, %v4952_v26 }
 0x658   :  { %4276 = vmatprep.subr.bf16.mxu1 %v4275_v48  ;;  %v2636_v48 = vrot.slane %v2631_v21, %v4952_v26 }
 0x65a   :  { %4150 = vmatpush1.bf16.msra.mxu0 %v4149_v57 }
 0x65b   :  { %4278 = vmatpush1.bf16.msra.mxu1 %v4277_v20  ;;  %4152 = vmatprep.subr.bf16.mxu0 %v4151_v55  ;;  %v5292_v20 = vld [vmem:[#allocation13 + $0x498] sm:$0xff] }
 0x65c   :  { %4280 = vmatprep.subr.bf16.mxu1 %v4279_v1  ;;  %v5294_v55 = vld [vmem:[#allocation13 + $0x4b8] sm:$0xff] }
 0x65e   :  { %4154 = vmatpush1.bf16.msra.mxu0 %v4153_v27 }
 0x65f   :  { %4282 = vmatpush1.bf16.msra.mxu1 %v4281_v41  ;;  %4156 = vmatprep.subr.bf16.mxu0 %v4155_v59 }
 0x660   :  { %4284 = vmatprep.subr.bf16.mxu1 %v4283_v10 }
 0x6d7   :  { %v2565_v13 = vpop.xlane.xlu0 %2564 }
 0x6d8   :  { %v2566_v53 = vmul.f32 0.001953125, %v2565_v13 }
 0x6da   :  { %v2567_v54 = vadd.f32 1e-05, %v2566_v53 }
 0x6dc   :  { %4458 = vrsqrt.f32 %v2567_v54 }
 0x6e6   :  { %v4459_v30 = vpop.eup %4458 }
 0x6e7   :  { %v2570_v41 = vrot.slane %v4459_v30, 1  ;;  %v5307_v2 = vrot.slane %v4459_v30, 2  ;;  %v5309_v6 = vrot.slane %v4459_v30, 3  ;;  %v2578_v7 = vmul.f32 %v4459_v30, %v5153_v16 }
 0x6e8   :  { %v2577_v59 = vmul.f32 %v4459_v30, %v5150_v3  ;;  %v2580_v61 = vmul.f32 %v4459_v30, %v5159_v11  ;;  %v5317_v13 = vmul.f32 %v4459_v30, %v5156_v60 }
 0x6e9   :  { %v2582_v53 = vmul.f32 %v2570_v41, %v5165_v14  ;;  %v2586_v54 = vmul.f32 %v5307_v2, %v5177_v9  ;;  %v2590_v17 = vmul.f32 %v5309_v6, %v5189_v63  ;;  %v2616_v21 = vmul.f32 %v2602_v36, %v2578_v7 }
 0x6ea   :  { %v2581_v16 = vmul.f32 %v2570_v41, %v5162_v12  ;;  %v2585_v3 = vmul.f32 %v5307_v2, %v5174_v25  ;;  %v2589_v11 = vmul.f32 %v5309_v6, %v5186_v62  ;;  %v2615_v10 = vmul.f32 %v2598_v38, %v2577_v59 }
 0x6eb   :  { %v2620_v60 = vmul.f32 %v2602_v36, %v2582_v53  ;;  %v2624_v30 = vmul.f32 %v2602_v36, %v2586_v54  ;;  %v2628_v27 = vmul.f32 %v2602_v36, %v2590_v17  ;;  %v2654_v14 = vadd.f32 %v2640_v37, %v2616_v21 }
 0x6ec   :  { %v2619_v40 = vmul.f32 %v2598_v38, %v2581_v16  ;;  %v2623_v39 = vmul.f32 %v2598_v38, %v2585_v3  ;;  %v2627_v9 = vmul.f32 %v2598_v38, %v2589_v11  ;;  %v2653_v1 = vadd.f32 %v2636_v48, %v2615_v10 }
 0x6ed   :  { %v2658_v57 = vadd.f32 %v2640_v37, %v2620_v60  ;;  %v2662_v63 = vadd.f32 %v2640_v37, %v2624_v30  ;;  %v2666_v7 = vadd.f32 %v2640_v37, %v2628_v27  ;;  %v2670_v52 = vmax.f32 %v2654_v14, 0.0 }
 0x6ee   :  { %v2657_v12 = vadd.f32 %v2636_v48, %v2619_v40  ;;  %v2661_v18 = vadd.f32 %v2636_v48, %v2623_v39  ;;  %v2665_v32 = vadd.f32 %v2636_v48, %v2627_v9  ;;  %v2669_v25 = vmax.f32 %v2653_v1, 0.0 }
 0x6ef   :  { %v2674_v29 = vmax.f32 %v2658_v57, 0.0  ;;  %v2678_v28 = vmax.f32 %v2662_v63, 0.0  ;;  %v2682_v62 = vmax.f32 %v2666_v7, 0.0  ;;  %v2584_v59 = vmul.f32 %v2570_v41, %v5171_v8  ;;  %v2833_v63 = vld [vmem:[#allocation13 + $0x4a0] sm:$0xff] }
 0x6f0   :  { %v2673_v53 = vmax.f32 %v2657_v12, 0.0  ;;  %v2677_v36 = vmax.f32 %v2661_v18, 0.0  ;;  %v2681_v54 = vmax.f32 %v2665_v32, 0.0  ;;  %v2588_v38 = vmul.f32 %v5307_v2, %v5183_v5 }
 0x6f1   :  { %v2985_v10 = vrot.slane %v2674_v29, 7  ;;  %v2987_v17 = vrot.slane %v2678_v28, 6  ;;  %v2989_v21 = vrot.slane %v2682_v62, 5  ;;  %v2592_v37 = vmul.f32 %v5309_v6, %v5195_v4 }
 0x6f2   :  { %v2979_v39 = vrot.slane %v2673_v53, 7  ;;  %v2981_v48 = vrot.slane %v2677_v36, 6  ;;  %v2983_v1 = vrot.slane %v2681_v54, 5  ;;  %v2618_v57 = vmul.f32 %v5278_v49, %v2580_v61  ;;  %v2840_v53 = vld [vmem:[#allocation13 + $0x4d8] sm:$0xff] }
 0x6f3   :  { %v2986_v40 = vsel %vm2188_vm0, %v2985_v10, %v2670_v52  ;;  %v2622_v8 = vmul.f32 %v5278_v49, %v2584_v59  ;;  %v2626_v32 = vmul.f32 %v5278_v49, %v2588_v38  ;;  %v2630_v18 = vmul.f32 %v5278_v49, %v2592_v37  ;;  %v2842_v59 = vld [vmem:[#allocation13 + $0x4e8] sm:$0xff]  ;;  %v2844_v36 = vld [vmem:[#allocation13 + $0x4f8] sm:$0xff]  ;;  %v2837_v37 = vld [vmem:[#allocation13 + $0x4c0] sm:$0xff] }
 0x6f4   :  { %v2988_v29 = vsel %vm2190_vm1, %v2987_v17, %v2986_v40  ;;  %v2980_v28 = vsel %vm2188_vm0, %v2979_v39, %v2669_v25  ;;  %v2656_v5 = vadd.f32 %v5281_v50, %v2618_v57  ;;  %v2583_v4 = vmul.f32 %v2570_v41, %v5168_v15  ;;  %v2841_v39 = vld [vmem:[#allocation13 + $0x4e0] sm:$0xff] }
 0x6f5   :  { %v2990_v27 = vsel %vm2192_vm2, %v2989_v21, %v2988_v29  ;;  %v2982_v61 = vsel %vm2190_vm1, %v2981_v48, %v2980_v28  ;;  %v2660_v52 = vadd.f32 %v5281_v50, %v2622_v8  ;;  %v2664_v16 = vadd.f32 %v5281_v50, %v2626_v32  ;;  %v2839_v8 = vld [vmem:[#allocation13 + $0x4d0] sm:$0xff]  ;;  %v2848_v29 = vld [vmem:[#allocation13 + $0x518] sm:$0xff] }
 0x6f6   :  { %3071 = vmatprep.mubr.f32.mxu0 %v2990_v27  ;;  %3213 = vmatprep.mubr.f32.mxu1 %v2990_v27  ;;  %v2984_v49 = vsel %vm2192_vm2, %v2983_v1, %v2982_v61  ;;  %v2668_v3 = vadd.f32 %v5281_v50, %v2630_v18  ;;  %v2587_v11 = vmul.f32 %v5307_v2, %v5180_v56  ;;  %v2672_v9 = vmax.f32 %v2656_v5, 0.0  ;;  %v2829_v2 = vld [vmem:[#allocation13 + $0x480] sm:$0xff]  ;;  %v2850_v18 = vld [vmem:[#allocation13 + $0x528] sm:$0xff]  ;;  %v2852_v28 = vld [vmem:[#allocation13 + $0x538] sm:$0xff] }
 0x6f7   :  { %3072 = vmatmul.mubr.f32.vlgmr.msra.gmra.mrb[18].mxu0 %v2984_v49  ;;  %3214 = vmatmul.mubr.f32.vlgmr.msra.gmra.mrb[18].mxu1 %v2984_v49  ;;  %v2676_v15 = vmax.f32 %v2660_v52, 0.0  ;;  %v2680_v41 = vmax.f32 %v2664_v16, 0.0  ;;  %v2591_v60 = vmul.f32 %v5309_v6, %v5192_v58  ;;  %v2617_v30 = vmul.f32 %v5284_v51, %v5317_v13 }
 0x6f8   :  { %v5429_v14 = vpack.c.bf16 %v5247_v23, %v5245_v22  ;;  %v5430_v50 = vpack.c.bf16 %v5251_v24, %v5249_v31  ;;  %v2684_v56 = vmax.f32 %v2668_v3, 0.0  ;;  %v2621_v7 = vmul.f32 %v5284_v51, %v2583_v4  ;;  %v2831_v23 = vld [vmem:[#allocation13 + $0x490] sm:$0xff]  ;;  %v2838_v24 = vld [vmem:[#allocation13 + $0x4c8] sm:$0xff] }
 0x6f9   :  { %v2625_v12 = vmul.f32 %v5284_v51, %v2587_v11  ;;  %v2997_v58 = vrot.slane %v2676_v15, 7  ;;  %v2999_v6 = vrot.slane %v2680_v41, 6  ;;  %v5431_v13 = vpack.c.bf16 %v5255_v34, %v5253_v33  ;;  %v2835_v31 = vld [vmem:[#allocation13 + $0x4b0] sm:$0xff]  ;;  %v2854_v15 = vld [vmem:[#allocation13 + $0x548] sm:$0xff] }
 0x6fa   :  { %4158 = vmatpush1.bf16.msra.mxu0 %v5429_v14  ;;  %4286 = vmatpush1.bf16.msra.mxu1 %v5430_v50  ;;  %v5432_v22 = vpack.c.bf16 %v5259_v43, %v5257_v42  ;;  %v2629_v25 = vmul.f32 %v5284_v51, %v2591_v60  ;;  %v2655_v62 = vadd.f32 %v5297_v0, %v2617_v30  ;;  %v3001_v34 = vrot.slane %v2684_v56, 5  ;;  %v2847_v3 = vld [vmem:[#allocation13 + $0x510] sm:$0xff]  ;;  %v2858_v60 = vld [vmem:[#allocation13 + $0x568] sm:$0xff]  ;;  %v2856_v30 = vld [vmem:[#allocation13 + $0x558] sm:$0xff] }
 0x6fb   :  { %4160 = vmatprep.subr.bf16.mxu0 %v5431_v13  ;;  %v2659_v54 = vadd.f32 %v5297_v0, %v2621_v7  ;;  %v2663_v38 = vadd.f32 %v5297_v0, %v2625_v12  ;;  %v2998_v33 = vsel %vm2188_vm0, %v2997_v58, %v2672_v9  ;;  %v4165_v10 = vpack.c.bf16 %v2833_v63, %v2829_v2  ;;  %v2851_v11 = vld [vmem:[#allocation13 + $0x530] sm:$0xff]  ;;  %v2860_v14 = vld [vmem:[#allocation13 + $0x578] sm:$0xff]  ;;  %v2853_v2 = vld [vmem:[#allocation13 + $0x540] sm:$0xff] }
 0x6fc   :  { %4288 = vmatprep.subr.bf16.mxu1 %v5432_v22  ;;  %v2667_v42 = vadd.f32 %v5297_v0, %v2629_v25  ;;  %v3000_v43 = vsel %vm2190_vm1, %v2999_v6, %v2998_v33  ;;  %v5433_v51 = vpack.c.bf16 %v5263_v19, %v5261_v44  ;;  %v5434_v17 = vpack.c.bf16 %v5270_v45, %v5265_v35  ;;  %v2843_v35 = vld [vmem:[#allocation13 + $0x4f0] sm:$0xff]  ;;  %v2846_v45 = vld [vmem:[#allocation13 + $0x508] sm:$0xff]  ;;  %v2857_v63 = vld [vmem:[#allocation13 + $0x560] sm:$0xff] }
 0x6fd   :  { %v4293_v21 = vpack.c.bf16 %v2835_v31, %v2831_v23  ;;  %v2675_v48 = vmax.f32 %v2659_v54, 0.0  ;;  %v2679_v1 = vmax.f32 %v2663_v38, 0.0  ;;  %v3002_v57 = vsel %vm2192_vm2, %v3001_v34, %v3000_v43  ;;  %v2855_v58 = vld [vmem:[#allocation13 + $0x550] sm:$0xff]  ;;  %v2862_v13 = vld [vmem:[#allocation13 + $0x588] sm:$0xff]  ;;  %v2864_v23 = vld [vmem:[#allocation13 + $0x598] sm:$0xff] }
 0x6fe   :  { %4162 = vmatpush1.bf16.msra.mxu0 %v5433_v51  ;;  %4290 = vmatpush1.bf16.msra.mxu1 %v5434_v17  ;;  %v5435_v0 = vpack.c.bf16 %v5274_v47, %v5272_v46  ;;  %v5436_v40 = vpack.c.bf16 %v5294_v55, %v5292_v20  ;;  %v4167_v44 = vpack.c.bf16 %v2842_v59, %v2838_v24  ;;  %v2683_v32 = vmax.f32 %v2667_v42, 0.0  ;;  %v2845_v20 = vld [vmem:[#allocation13 + $0x500] sm:$0xff]  ;;  %v2859_v6 = vld [vmem:[#allocation13 + $0x570] sm:$0xff]  ;;  %v2866_v22 = vld [vmem:[#allocation13 + $0x5a8] sm:$0xff] }
 0x6ff   :  { %v4295_v19 = vpack.c.bf16 %v2844_v36, %v2840_v53  ;;  %3142 = vmatprep.mubr.f32.mxu0 %v3002_v57  ;;  %3284 = vmatprep.mubr.f32.mxu1 %v3002_v57  ;;  %v2671_v5 = vmax.f32 %v2655_v62, 0.0  ;;  %v2991_v4 = vrot.slane %v2675_v48, 7  ;;  %v2993_v27 = vrot.slane %v2679_v1, 6  ;;  %v2849_v55 = vld [vmem:[#allocation13 + $0x520] sm:$0xff]  ;;  %v2868_v31 = vld [vmem:[#allocation13 + $0x5b8] sm:$0xff]  ;;  %v2863_v54 = vld [vmem:[#allocation13 + $0x590] sm:$0xff] }
 0x700   :  { %4164 = vmatprep.subr.bf16.mxu0 %v5435_v0  ;;  %4292 = vmatprep.subr.bf16.mxu1 %v5436_v40  ;;  %v4169_v46 = vpack.c.bf16 %v2841_v39, %v2837_v37  ;;  %v4297_v47 = vpack.c.bf16 %v2843_v35, %v2839_v8  ;;  %v2995_v52 = vrot.slane %v2683_v32, 5  ;;  %v4171_v16 = vpack.c.bf16 %v2850_v18, %v2846_v45  ;;  %v2861_v62 = vld [vmem:[#allocation13 + $0x580] sm:$0xff]  ;;  %v2867_v38 = vld [vmem:[#allocation13 + $0x5b0] sm:$0xff]  ;;  %v2870_v33 = vld [vmem:[#allocation13 + $0x5c8] sm:$0xff] }
 0x701   :  { %v2992_v61 = vsel %vm2188_vm0, %v2991_v4, %v2671_v5  ;;  %v4299_v49 = vpack.c.bf16 %v2852_v28, %v2848_v29  ;;  %v4173_v9 = vpack.c.bf16 %v2849_v55, %v2845_v20  ;;  %v4301_v56 = vpack.c.bf16 %v2851_v11, %v2847_v3  ;;  %v2865_v59 = vld [vmem:[#allocation13 + $0x5a0] sm:$0xff]  ;;  %v2874_v34 = vld [vmem:[#allocation13 + $0x5e8] sm:$0xff]  ;;  %v2876_v42 = vld [vmem:[#allocation13 + $0x5f8] sm:$0xff] }
 0x702   :  { %4166 = vmatpush1.bf16.msra.mxu0 %v4165_v10  ;;  %4294 = vmatpush1.bf16.msra.mxu1 %v4293_v21  ;;  %v2994_v41 = vsel %vm2190_vm1, %v2993_v27, %v2992_v61  ;;  %v4175_v7 = vpack.c.bf16 %v2858_v60, %v2854_v15  ;;  %v4303_v12 = vpack.c.bf16 %v2860_v14, %v2856_v30  ;;  %v2872_v10 = vld [vmem:[#allocation13 + $0x5d8] sm:$0xff]  ;;  %v2869_v17 = vld [vmem:[#allocation13 + $0x5c0] sm:$0xff]  ;;  %v2871_v48 = vld [vmem:[#allocation13 + $0x5d0] sm:$0xff] }
 0x703   :  { %4168 = vmatprep.subr.bf16.mxu0 %v4167_v44  ;;  %4296 = vmatprep.subr.bf16.mxu1 %v4295_v19  ;;  %v5392_v50 = vsel %vm2192_vm2, %v2995_v52, %v2994_v41  ;;  %v4177_v24 = vpack.c.bf16 %v2857_v63, %v2853_v2  ;;  %v4305_v25 = vpack.c.bf16 %v2859_v6, %v2855_v58  ;;  %v2873_v21 = vld [vmem:[#allocation13 + $0x5e0] sm:$0xff]  ;;  %v2875_v1 = vld [vmem:[#allocation13 + $0x5f0] sm:$0xff]  ;;  %v2878_v57 = vld [vmem:[#allocation13 + $0x608] sm:$0xff] }
 0x704   :  { %v4179_v53 = vpack.c.bf16 %v2866_v22, %v2862_v13  ;;  %v4307_v36 = vpack.c.bf16 %v2868_v31, %v2864_v23  ;;  %v4181_v43 = vpack.c.bf16 %v2865_v59, %v2861_v62  ;;  %v4309_v51 = vpack.c.bf16 %v2867_v38, %v2863_v54  ;;  %v2882_v0 = vld [vmem:[#allocation13 + $0x628] sm:$0xff]  ;;  %v2880_v40 = vld [vmem:[#allocation13 + $0x618] sm:$0xff]  ;;  %v2877_v35 = vld [vmem:[#allocation13 + $0x600] sm:$0xff] }
 0x705   :  { %v4183_v37 = vpack.c.bf16 %v2874_v34, %v2870_v33  ;;  %v4311_v39 = vpack.c.bf16 %v2876_v42, %v2872_v10  ;;  %v2884_v44 = vld [vmem:[#allocation13 + $0x638] sm:$0xff]  ;;  %v4185_v19 = vpack.c.bf16 %v2873_v21, %v2869_v17  ;;  %v4313_v8 = vpack.c.bf16 %v2875_v1, %v2871_v48  ;;  %v2881_v45 = vld [vmem:[#allocation13 + $0x620] sm:$0xff]  ;;  %v2879_v29 = vld [vmem:[#allocation13 + $0x610] sm:$0xff] }
 0x706   :  { %4170 = vmatpush1.bf16.msra.mxu0 %v4169_v46  ;;  %4298 = vmatpush1.bf16.msra.mxu1 %v4297_v47  ;;  %v4187_v32 = vpack.c.bf16 %v2882_v0, %v2878_v57  ;;  %v4315_v18 = vpack.c.bf16 %v2884_v44, %v2880_v40  ;;  %v2883_v28 = vld [vmem:[#allocation13 + $0x630] sm:$0xff]  ;;  %v2886_v5 = vld [vmem:[#allocation13 + $0x648] sm:$0xff]  ;;  %v2888_v27 = vld [vmem:[#allocation13 + $0x658] sm:$0xff]  ;;  %v4189_v47 = vpack.c.bf16 %v2881_v45, %v2877_v35 }
 0x707   :  { %4172 = vmatprep.subr.bf16.mxu0 %v4171_v16  ;;  %4300 = vmatprep.subr.bf16.mxu1 %v4299_v49  ;;  %v2890_v4 = vld [vmem:[#allocation13 + $0x668] sm:$0xff]  ;;  %v2892_v46 = vld [vmem:[#allocation13 + $0x678] sm:$0xff]  ;;  %v4317_v20 = vpack.c.bf16 %v2883_v28, %v2879_v29  ;;  %v2885_v55 = vld [vmem:[#allocation13 + $0x640] sm:$0xff] }
 0x708   :  { %v2889_v61 = vld [vmem:[#allocation13 + $0x660] sm:$0xff]  ;;  %v4191_v52 = vpack.c.bf16 %v2890_v4, %v2886_v5  ;;  %v4319_v16 = vpack.c.bf16 %v2892_v46, %v2888_v27  ;;  %v2887_v49 = vld [vmem:[#allocation13 + $0x650] sm:$0xff]  ;;  %v2894_v11 = vld [vmem:[#allocation13 + $0x688] sm:$0xff] }
 0x709   :  { %v2891_v3 = vld [vmem:[#allocation13 + $0x670] sm:$0xff]  ;;  %v2898_v15 = vld [vmem:[#allocation13 + $0x6a8] sm:$0xff]  ;;  %v2896_v41 = vld [vmem:[#allocation13 + $0x698] sm:$0xff]  ;;  %v4193_v30 = vpack.c.bf16 %v2889_v61, %v2885_v55 }
 0x70a   :  { %4174 = vmatpush1.bf16.msra.mxu0 %v4173_v9  ;;  %4302 = vmatpush1.bf16.msra.mxu1 %v4301_v56  ;;  %v2900_v60 = vld [vmem:[#allocation13 + $0x6b8] sm:$0xff]  ;;  %v4321_v14 = vpack.c.bf16 %v2891_v3, %v2887_v49  ;;  %v2893_v9 = vld [vmem:[#allocation13 + $0x680] sm:$0xff]  ;;  %v4195_v2 = vpack.c.bf16 %v2898_v15, %v2894_v11  ;;  %v2902_v58 = vld [vmem:[#allocation13 + $0x6c8] sm:$0xff] }
 0x70b   :  { %4176 = vmatprep.subr.bf16.mxu0 %v4175_v7  ;;  %4304 = vmatprep.subr.bf16.mxu1 %v4303_v12  ;;  %v2897_v56 = vld [vmem:[#allocation13 + $0x6a0] sm:$0xff]  ;;  %v4323_v63 = vpack.c.bf16 %v2900_v60, %v2896_v41  ;;  %v2895_v7 = vld [vmem:[#allocation13 + $0x690] sm:$0xff]  ;;  %v2906_v6 = vld [vmem:[#allocation13 + $0x6e8] sm:$0xff] }
 0x70c   :  { %v2899_v12 = vld [vmem:[#allocation13 + $0x6b0] sm:$0xff]  ;;  %v2904_v13 = vld [vmem:[#allocation13 + $0x6d8] sm:$0xff]  ;;  %v4197_v23 = vpack.c.bf16 %v2897_v56, %v2893_v9  ;;  %v4199_v62 = vpack.c.bf16 %v2906_v6, %v2902_v58  ;;  %v2910_v54 = vld [vmem:[#allocation13 + $0x708] sm:$0xff] }
 0x70d   :  { %v2908_v22 = vld [vmem:[#allocation13 + $0x6f8] sm:$0xff]  ;;  %v4325_v31 = vpack.c.bf16 %v2899_v12, %v2895_v7  ;;  %v2914_v38 = vld [vmem:[#allocation13 + $0x728] sm:$0xff]  ;;  %v2937_v56 = vld [vmem:[#allocation13 + $0x7e0] sm:$0xff] }
 0x70e   :  { %4178 = vmatpush1.bf16.msra.mxu0 %v4177_v24  ;;  %4306 = vmatpush1.bf16.msra.mxu1 %v4305_v25  ;;  %v2901_v24 = vld [vmem:[#allocation13 + $0x6c0] sm:$0xff]  ;;  %v4327_v59 = vpack.c.bf16 %v2908_v22, %v2904_v13  ;;  %v2912_v33 = vld [vmem:[#allocation13 + $0x718] sm:$0xff]  ;;  %v4203_v17 = vpack.c.bf16 %v2914_v38, %v2910_v54  ;;  %v2918_v48 = vld [vmem:[#allocation13 + $0x748] sm:$0xff] }
 0x70f   :  { %4180 = vmatprep.subr.bf16.mxu0 %v4179_v53  ;;  %4308 = vmatprep.subr.bf16.mxu1 %v4307_v36  ;;  %v2905_v25 = vld [vmem:[#allocation13 + $0x6e0] sm:$0xff]  ;;  %v2903_v53 = vld [vmem:[#allocation13 + $0x6d0] sm:$0xff]  ;;  %v2916_v34 = vld [vmem:[#allocation13 + $0x738] sm:$0xff] }
 0x710   :  { %v2907_v36 = vld [vmem:[#allocation13 + $0x6f0] sm:$0xff]  ;;  %v4201_v10 = vpack.c.bf16 %v2905_v25, %v2901_v24  ;;  %v4331_v21 = vpack.c.bf16 %v2916_v34, %v2912_v33  ;;  %v2922_v1 = vld [vmem:[#allocation13 + $0x768] sm:$0xff]  ;;  %v2920_v57 = vld [vmem:[#allocation13 + $0x758] sm:$0xff] }
 0x711   :  { %v4329_v42 = vpack.c.bf16 %v2907_v36, %v2903_v53  ;;  %v2924_v0 = vld [vmem:[#allocation13 + $0x778] sm:$0xff]  ;;  %v4207_v35 = vpack.c.bf16 %v2922_v1, %v2918_v48  ;;  %v2926_v29 = vld [vmem:[#allocation13 + $0x788] sm:$0xff]  ;;  %v2941_v58 = vld [vmem:[#allocation14] sm:$0xf] }
 0x712   :  { %4182 = vmatpush1.bf16.msra.mxu0 %v4181_v43  ;;  %4310 = vmatpush1.bf16.msra.mxu1 %v4309_v51  ;;  %v2909_v43 = vld [vmem:[#allocation13 + $0x700] sm:$0xff]  ;;  %v4335_v45 = vpack.c.bf16 %v2924_v0, %v2920_v57  ;;  %v2930_v28 = vld [vmem:[#allocation13 + $0x7a8] sm:$0xff]  ;;  %v2928_v5 = vld [vmem:[#allocation13 + $0x798] sm:$0xff]  ;;  %v2946_v6 = vrot.slane %v2941_v58, %v4952_v26 }
 0x713   :  { %4184 = vmatprep.subr.bf16.mxu0 %v4183_v37  ;;  %4312 = vmatprep.subr.bf16.mxu1 %v4311_v39  ;;  %v2913_v51 = vld [vmem:[#allocation13 + $0x720] sm:$0xff]  ;;  %v2911_v37 = vld [vmem:[#allocation13 + $0x710] sm:$0xff]  ;;  %v2932_v4 = vld [vmem:[#allocation13 + $0x7b8] sm:$0xff]  ;;  %v4211_v55 = vpack.c.bf16 %v2930_v28, %v2926_v29 }
 0x714   :  { %v2915_v39 = vld [vmem:[#allocation13 + $0x730] sm:$0xff]  ;;  %v4205_v40 = vpack.c.bf16 %v2913_v51, %v2909_v43  ;;  %v4339_v61 = vpack.c.bf16 %v2932_v4, %v2928_v5  ;;  %v2934_v49 = vld [vmem:[#allocation13 + $0x7c8] sm:$0xff]  ;;  %v2936_v11 = vld [vmem:[#allocation13 + $0x7d8] sm:$0xff] }
 0x715   :  { %v4333_v44 = vpack.c.bf16 %v2915_v39, %v2911_v37  ;;  %v2938_v3 = vld [vmem:[#allocation13 + $0x7e8] sm:$0xff]  ;;  %v2940_v15 = vld [vmem:[#allocation13 + $0x7f8] sm:$0xff] }
 0x716   :  { %4186 = vmatpush1.bf16.msra.mxu0 %v4185_v19  ;;  %4314 = vmatpush1.bf16.msra.mxu1 %v4313_v8  ;;  %v2917_v19 = vld [vmem:[#allocation13 + $0x740] sm:$0xff]  ;;  %v4343_v9 = vpack.c.bf16 %v2940_v15, %v2936_v11  ;;  %v5439_v24 = vld [vmem:[#allocation29_spill] sm:$0xff] }
 0x717   :  { %4188 = vmatprep.subr.bf16.mxu0 %v4187_v32  ;;  %4316 = vmatprep.subr.bf16.mxu1 %v4315_v18  ;;  %v2921_v8 = vld [vmem:[#allocation13 + $0x760] sm:$0xff]  ;;  %v2919_v32 = vld [vmem:[#allocation13 + $0x750] sm:$0xff]  ;;  %v2958_v25 = vrot.slane %v2941_v58, %v5439_v24 }
 0x718   :  { %v2923_v18 = vld [vmem:[#allocation13 + $0x770] sm:$0xff]  ;;  %v4209_v27 = vpack.c.bf16 %v2921_v8, %v2917_v19  ;;  %v5437_v13 = vld [vmem:[#allocation27_spill] sm:$0xff] }
 0x719   :  { %v4337_v46 = vpack.c.bf16 %v2923_v18, %v2919_v32  ;;  %v2954_v22 = vrot.slane %v2941_v58, %v5437_v13  ;;  %v4478_v43 = vld [vmem:[#allocation2 + $0x8] sm:$0xff] }
 0x71a   :  { %4190 = vmatpush1.bf16.msra.mxu0 %v4189_v47  ;;  %4318 = vmatpush1.bf16.msra.mxu1 %v4317_v20  ;;  %v2925_v47 = vld [vmem:[#allocation13 + $0x780] sm:$0xff] }
 0x71b   :  { %4192 = vmatprep.subr.bf16.mxu0 %v4191_v52  ;;  %4320 = vmatprep.subr.bf16.mxu1 %v4319_v16  ;;  %v2929_v20 = vld [vmem:[#allocation13 + $0x7a0] sm:$0xff]  ;;  %v2927_v52 = vld [vmem:[#allocation13 + $0x790] sm:$0xff] }
 0x71c   :  { %v2931_v16 = vld [vmem:[#allocation13 + $0x7b0] sm:$0xff]  ;;  %v4213_v41 = vpack.c.bf16 %v2929_v20, %v2925_v47 }
 0x71d   :  { %v4341_v60 = vpack.c.bf16 %v2931_v16, %v2927_v52 }
 0x71e   :  { %4194 = vmatpush1.bf16.msra.mxu0 %v4193_v30  ;;  %4322 = vmatpush1.bf16.msra.mxu1 %v4321_v14  ;;  %v2933_v30 = vld [vmem:[#allocation13 + $0x7c0] sm:$0xff]  ;;  %v4215_v14 = vpack.c.bf16 %v2938_v3, %v2934_v49 }
 0x71f   :  { %4196 = vmatprep.subr.bf16.mxu0 %v4195_v2  ;;  %4324 = vmatprep.subr.bf16.mxu1 %v4323_v63  ;;  %v2935_v2 = vld [vmem:[#allocation13 + $0x7d0] sm:$0xff]  ;;  %v4217_v7 = vpack.c.bf16 %v2937_v56, %v2933_v30 }
 0x720   :  { %v2939_v63 = vld [vmem:[#allocation13 + $0x7f0] sm:$0xff] }
 0x721   :  { %v4345_v12 = vpack.c.bf16 %v2939_v63, %v2935_v2 }
 0x722   :  { %4198 = vmatpush1.bf16.msra.mxu0 %v4197_v23  ;;  %4326 = vmatpush1.bf16.msra.mxu1 %v4325_v31  ;;  %v5438_v23 = vld [vmem:[#allocation28_spill] sm:$0xff] }
 0x723   :  { %4200 = vmatprep.subr.bf16.mxu0 %v4199_v62  ;;  %4328 = vmatprep.subr.bf16.mxu1 %v4327_v59  ;;  %v2950_v31 = vrot.slane %v2941_v58, %v5438_v23 }
 0x726   :  { %4202 = vmatpush1.bf16.msra.mxu0 %v4201_v10  ;;  %4330 = vmatpush1.bf16.msra.mxu1 %v4329_v42  ;;  %v4477_v42 = vld [vmem:[#allocation2] sm:$0xff] }
 0x727   :  { %4204 = vmatprep.subr.bf16.mxu0 %v4203_v17  ;;  %4332 = vmatprep.subr.bf16.mxu1 %v4331_v21 }
 0x72a   :  { %4206 = vmatpush1.bf16.msra.mxu0 %v4205_v40  ;;  %4334 = vmatpush1.bf16.msra.mxu1 %v4333_v44 }
 0x72b   :  { %4208 = vmatprep.subr.bf16.mxu0 %v4207_v35  ;;  %4336 = vmatprep.subr.bf16.mxu1 %v4335_v45 }
 0x72e   :  { %4210 = vmatpush1.bf16.msra.mxu0 %v4209_v27  ;;  %4338 = vmatpush1.bf16.msra.mxu1 %v4337_v46 }
 0x72f   :  { %4212 = vmatprep.subr.bf16.mxu0 %v4211_v55  ;;  %4340 = vmatprep.subr.bf16.mxu1 %v4339_v61 }
 0x732   :  { %4214 = vmatpush1.bf16.msra.mxu0 %v4213_v41  ;;  %4342 = vmatpush1.bf16.msra.mxu1 %v4341_v60 }
 0x733   :  { %4216 = vmatprep.subr.bf16.mxu0 %v4215_v14  ;;  %4344 = vmatprep.subr.bf16.mxu1 %v4343_v9 }
 0x736   :  { %4218 = vmatpush1.bf16.msra.mxu0 %v4217_v7  ;;  %4346 = vmatpush1.bf16.msra.mxu1 %v4345_v12 }
 0x739   :  { %3143 = vmatmul.mubr.f32.vlgmr.msra.gmra.mrb[18].mxu0 %v5392_v50  ;;  %3285 = vmatmul.mubr.f32.vlgmr.msra.gmra.mrb[18].mxu1 %v5392_v50 }
 0x80c   :  { %v3144_v62 = vpop.f32.mrb[18].mxu0  ;;  %v3286_v59 = vpop.f32.mrb[18].mxu1 }
 0x80d   :  { %v4383_v53 = vadd.f32 %v3144_v62, %v2946_v6  ;;  %v4385_v36 = vadd.f32 %v3286_v59, %v2954_v22  ;;  %v3146_v54 = vpop.f32.mrb[19].mxu0  ;;  %v3288_v38 = vpop.f32.mrb[19].mxu1 }
 0x80e   :  { %v4384_v33 = vadd.f32 %v3146_v54, %v2950_v31  ;;  %v4386_v34 = vadd.f32 %v3288_v38, %v2958_v25 }
 0x810   :  { %v3295_v50 = vcombine.low %v4383_v53, %v4384_v33  ;;  %v3296_v10 = vcombine.low %v4385_v36, %v4386_v34 }
 0x812   :  { %v3299_v26 = vadd.f32 %v4477_v42, %v3295_v50  ;;  %v3300_v51 = vadd.f32 %v4478_v43, %v3296_v10 }
 0x814   :  { %3301 = vst [vmem:[#allocation19] sm:$0xff] %v3299_v26  ;;  %3302 = vst [vmem:[#allocation19 + $0x8] sm:$0xff] %v3300_v51 }
 0x815   :  { %4710 = shalt.err (!%p4707_p0)
}
 0x816   :  { %s4711_s4 = scalar_lea.hbm %s5422_s10, 256 }
 0x817   :  { %p4712_p1 = scmp.ne.s32.totalorder %s5422_s10, %s4711_s4  ;;  %p4715_p2 = scmp.lt.u32.totalorder %s4711_s4, %s5422_s10 }
 0x819   :  { %p4717_p3 = pnand %p4715_p2, %p4712_p1 }
 0x81b   :  { %4720 = shalt.err (!%p4717_p3)
}
 0x81c   :  { %3312 = dma.vmem_to_hbm [thread:$0]  %s3310_s22, 256, %s5422_s10, [#allocation4]  }
 0x81d   :  { %4733 = dma.done.wait [#allocation4], 256  }
 0x81e   :  { %4734 = vsyncadd [#allocation4], 4294967040 }
 0x81f   :  { %3316 = vsyncpa [#allocation3], 1 }
 0x820   :  { %3317 = vsyncpa [#allocation6], 1 }
 0x821   :  { %3318 = vsyncpa [#allocation9], 1 }
 0x822   :  { %3319 = vsyncpa [#allocation12], 1 }
 0x823   :  { %3320 = vsyncpa [#allocation15], 1 }
 0x824   :  { %3321 = vsyncpa [#allocation18], 1 }
 0x825   :  { %3322 = vsyncpa [#allocation4], 1 }

</bundles_post_ra>
